<compile_context>
chip_gen: v5e
topology: v5e:2x2
jax: 0.10.0
libtpu: 0.0.40
codegen_flags: <defaults>
</compile_context>

<pallas_src>
import math

import jax
import jax.numpy as jnp
from jax.experimental import pallas as pl
from jax.experimental.pallas import tpu as pltpu


HIDDEN = (256, 512, 1024)
OUT_FEATURES = 784   # 28 * 28
OUT_PADDED = 896     # 7 * 128 -> lane-dense output width (zero-padded, sliced off outside)


def _round_up(x, m):
    return (x + m - 1) // m * m


def _leaky_relu(x, negative_slope=0.2):
    # For 0 < slope < 1, max(x, slope*x) == LeakyReLU(slope): one fewer VALU op.
    return jnp.maximum(x, negative_slope * x)


def generator_kernel(x_ref,
                     w1_ref, b1_ref,
                     w2_ref, b2_ref,
                     w3_ref, b3_ref,
                     w4_ref, b4_ref,
                     out_ref):
    """Fused 4-layer MLP on one batch tile: bf16 matmuls, f32 accumulation."""
    h = x_ref[...].astype(jnp.bfloat16)

    h = jnp.dot(h, w1_ref[...], preferred_element_type=jnp.float32) + b1_ref[...]
    h = _leaky_relu(h).astype(jnp.bfloat16)

    h = jnp.dot(h, w2_ref[...], preferred_element_type=jnp.float32) + b2_ref[...]
    h = _leaky_relu(h).astype(jnp.bfloat16)

    h = jnp.dot(h, w3_ref[...], preferred_element_type=jnp.float32) + b3_ref[...]
    h = _leaky_relu(h).astype(jnp.bfloat16)

    h = jnp.dot(h, w4_ref[...], preferred_element_type=jnp.float32) + b4_ref[...]
    out_ref[...] = jnp.tanh(h).astype(out_ref.dtype)


def init_generator_params(latent_dimension: int, key):
    """Init matching PyTorch nn.Linear default U(-1/sqrt(fan_in), 1/sqrt(fan_in)).
    Weights stored [in, out] in bf16; biases [1, out] in f32.
    Last layer zero-padded from 784 to 896 output columns."""
    dims = (latent_dimension,) + HIDDEN + (OUT_FEATURES,)
    params = []
    keys = jax.random.split(key, 2 * (len(dims) - 1))
    for i in range(len(dims) - 1):
        fan_in, fan_out = dims[i], dims[i + 1]
        bound = 1.0 / math.sqrt(fan_in)
        w = jax.random.uniform(keys[2 * i], (fan_in, fan_out),
                               minval=-bound, maxval=bound, dtype=jnp.float32)
        b = jax.random.uniform(keys[2 * i + 1], (1, fan_out),
                               minval=-bound, maxval=bound, dtype=jnp.float32)
        if fan_out == OUT_FEATURES:
            pad = OUT_PADDED - OUT_FEATURES
            w = jnp.pad(w, ((0, 0), (0, pad)))
            b = jnp.pad(b, ((0, 0), (0, pad)))
        params.append((w.astype(jnp.bfloat16), b))
    return params


def generator_forward(x, params, *, tm_pref=256):
    """x: [batch, latent] (f32)  ->  [batch, 1, 28, 28] (f32)"""
    batch, latent = x.shape

    # Pick the batch tile: 256 for large batches, otherwise the (>=8)-padded batch.
    padded_batch = _round_up(max(batch, 8), 8)
    if padded_batch >= tm_pref:
        tm = tm_pref
        padded_batch = _round_up(padded_batch, tm)
    else:
        tm = padded_batch
    if padded_batch != batch:
        x = jnp.pad(x, ((0, padded_batch - batch), (0, 0)))

    grid = (padded_batch // tm,)

    flat_args = [x]
    in_specs = [pl.BlockSpec((tm, latent), lambda i: (i, 0))]
    for w, b in params:
        flat_args.extend([w, b])
        # Constant index_map -> weights/biases stay resident in VMEM across steps.
        in_specs.append(pl.BlockSpec(w.shape, lambda i: (0, 0)))
        in_specs.append(pl.BlockSpec(b.shape, lambda i: (0, 0)))

    out_spec = pl.BlockSpec((tm, OUT_PADDED), lambda i: (i, 0))

    # Advisory cost hint so XLA can overlap the weight DMA with surrounding ops.
    flops = 2 * padded_batch * (latent * 256 + 256 * 512 + 512 * 1024 + 1024 * OUT_PADDED)
    bytes_accessed = sum(int(a.size) * a.dtype.itemsize for a in flat_args) \
        + padded_batch * OUT_PADDED * 4
    cost = pl.CostEstimate(flops=flops,
                           transcendentals=padded_batch * OUT_PADDED,
                           bytes_accessed=bytes_accessed)

    out_padded = pl.pallas_call(
        generator_kernel,
        out_shape=jax.ShapeDtypeStruct((padded_batch, OUT_PADDED), jnp.float32),
        grid_spec=pltpu.PrefetchScalarGridSpec(
            num_scalar_prefetch=0,
            grid=grid,
            in_specs=in_specs,
            out_specs=out_spec,
        ),
        compiler_params=pltpu.CompilerParams(
            dimension_semantics=("parallel",),
        ),
        cost_estimate=cost,
    )(*flat_args)

    return out_padded[:batch, :OUT_FEATURES].reshape(batch, 1, 28, 28)


def generator_reference(x, params):
    """Pure-JAX reference mirroring the kernel's bf16 weight/activation quantization."""
    h = x
    n = len(params)
    for i, (w, b) in enumerate(params):
        h_q = h.astype(jnp.bfloat16).astype(jnp.float32)
        h = jnp.dot(h_q, w.astype(jnp.float32)) + b
        if i < n - 1:
            h = jnp.maximum(h, 0.2 * h)
        else:
            h = jnp.tanh(h)
    return h[:, :OUT_FEATURES].reshape(-1, 1, 28, 28)


if __name__ == "__main__":
    latent_dimension = 64
    batch = 2

    key = jax.random.PRNGKey(0)
    k_params, k_x = jax.random.split(key)

    params = init_generator_params(latent_dimension, k_params)
    x = jax.random.normal(k_x, (batch, latent_dimension), dtype=jnp.float32)

    out = generator_forward(x, params)
    out = jax.block_until_ready(out)

    assert out.shape == (batch, 1, 28, 28), out.shape

    ref = jax.block_until_ready(generator_reference(x, params))
    err = float(jnp.max(jnp.abs(out - ref)))
    assert jnp.allclose(out, ref, atol=1e-2, rtol=1e-2), err

    print("KERNEL_OK")
</pallas_src>

<mosaic_0001>
module attributes {stable_mosaic.version = 11 : i64} {
  func.func @generator_kernel(%arg0: i32, %arg1: memref<8x64xf32, #tpu.memory_space<vmem>>, %arg2: memref<64x256xbf16, #tpu.memory_space<vmem>>, %arg3: memref<1x256xf32, #tpu.memory_space<vmem>>, %arg4: memref<256x512xbf16, #tpu.memory_space<vmem>>, %arg5: memref<1x512xf32, #tpu.memory_space<vmem>>, %arg6: memref<512x1024xbf16, #tpu.memory_space<vmem>>, %arg7: memref<1x1024xf32, #tpu.memory_space<vmem>>, %arg8: memref<1024x896xbf16, #tpu.memory_space<vmem>>, %arg9: memref<1x896xf32, #tpu.memory_space<vmem>>, %arg10: memref<8x896xf32, #tpu.memory_space<vmem>>) attributes {dimension_semantics = [#tpu.dimension_semantics<parallel>], iteration_bounds = array<i64: 1>, scalar_prefetch = 0 : i64, scratch_operands = 0 : i64, tpu.core_type = #tpu.core_type<tc>, window_params = [{transform_indices = @transform_0, window_bounds = array<i64: 8, 64>}, {pipeline_mode = #tpu.pipeline_mode<synchronous>, transform_indices = @transform_1, window_bounds = array<i64: 64, 256>}, {pipeline_mode = #tpu.pipeline_mode<synchronous>, transform_indices = @transform_2, window_bounds = array<i64: 1, 256>}, {pipeline_mode = #tpu.pipeline_mode<synchronous>, transform_indices = @transform_3, window_bounds = array<i64: 256, 512>}, {pipeline_mode = #tpu.pipeline_mode<synchronous>, transform_indices = @transform_4, window_bounds = array<i64: 1, 512>}, {pipeline_mode = #tpu.pipeline_mode<synchronous>, transform_indices = @transform_5, window_bounds = array<i64: 512, 1024>}, {pipeline_mode = #tpu.pipeline_mode<synchronous>, transform_indices = @transform_6, window_bounds = array<i64: 1, 1024>}, {pipeline_mode = #tpu.pipeline_mode<synchronous>, transform_indices = @transform_7, window_bounds = array<i64: 1024, 896>}, {pipeline_mode = #tpu.pipeline_mode<synchronous>, transform_indices = @transform_8, window_bounds = array<i64: 1, 896>}, {transform_indices = @transform_9, window_bounds = array<i64: 8, 896>}]} {
    %c0 = arith.constant 0 : index
    %c0_0 = arith.constant 0 : index
    %0 = vector.load %arg1[%c0, %c0_0] : memref<8x64xf32, #tpu.memory_space<vmem>>, vector<8x64xf32>
    %1 = arith.truncf %0 : vector<8x64xf32> to vector<8x64xbf16>
    %c0_1 = arith.constant 0 : index
    %c0_2 = arith.constant 0 : index
    %2 = vector.load %arg2[%c0_1, %c0_2] : memref<64x256xbf16, #tpu.memory_space<vmem>>, vector<64x256xbf16>
    %cst = arith.constant dense<0.000000e+00> : vector<8x256xf32>
    %3 = tpu.matmul %1, %2, %cst {dimension_numbers = #tpu.dot_dimension_numbers<[1], [0], [0], [1], [0, 0, 1, 1], [], []>} : vector<8x64xbf16>, vector<64x256xbf16>, vector<8x256xf32> -> vector<8x256xf32>
    %c0_3 = arith.constant 0 : index
    %c0_4 = arith.constant 0 : index
    %4 = vector.load %arg3[%c0_3, %c0_4] : memref<1x256xf32, #tpu.memory_space<vmem>>, vector<1x256xf32>
    %5 = vector.broadcast %4 : vector<1x256xf32> to vector<8x256xf32>
    %6 = arith.addf %3, %5 : vector<8x256xf32>
    %cst_5 = arith.constant 2.000000e-01 : f32
    %7 = vector.broadcast %cst_5 : f32 to vector<8x256xf32>
    %8 = arith.mulf %7, %6 : vector<8x256xf32>
    %9 = arith.maximumf %6, %8 : vector<8x256xf32>
    %10 = arith.truncf %9 : vector<8x256xf32> to vector<8x256xbf16>
    %c0_6 = arith.constant 0 : index
    %c0_7 = arith.constant 0 : index
    %11 = vector.load %arg4[%c0_6, %c0_7] : memref<256x512xbf16, #tpu.memory_space<vmem>>, vector<256x512xbf16>
    %cst_8 = arith.constant dense<0.000000e+00> : vector<8x512xf32>
    %12 = tpu.matmul %10, %11, %cst_8 {dimension_numbers = #tpu.dot_dimension_numbers<[1], [0], [0], [1], [0, 0, 1, 1], [], []>} : vector<8x256xbf16>, vector<256x512xbf16>, vector<8x512xf32> -> vector<8x512xf32>
    %c0_9 = arith.constant 0 : index
    %c0_10 = arith.constant 0 : index
    %13 = vector.load %arg5[%c0_9, %c0_10] : memref<1x512xf32, #tpu.memory_space<vmem>>, vector<1x512xf32>
    %14 = vector.broadcast %13 : vector<1x512xf32> to vector<8x512xf32>
    %15 = arith.addf %12, %14 : vector<8x512xf32>
    %cst_11 = arith.constant 2.000000e-01 : f32
    %16 = vector.broadcast %cst_11 : f32 to vector<8x512xf32>
    %17 = arith.mulf %16, %15 : vector<8x512xf32>
    %18 = arith.maximumf %15, %17 : vector<8x512xf32>
    %19 = arith.truncf %18 : vector<8x512xf32> to vector<8x512xbf16>
    %c0_12 = arith.constant 0 : index
    %c0_13 = arith.constant 0 : index
    %20 = vector.load %arg6[%c0_12, %c0_13] : memref<512x1024xbf16, #tpu.memory_space<vmem>>, vector<512x1024xbf16>
    %cst_14 = arith.constant dense<0.000000e+00> : vector<8x1024xf32>
    %21 = tpu.matmul %19, %20, %cst_14 {dimension_numbers = #tpu.dot_dimension_numbers<[1], [0], [0], [1], [0, 0, 1, 1], [], []>} : vector<8x512xbf16>, vector<512x1024xbf16>, vector<8x1024xf32> -> vector<8x1024xf32>
    %c0_15 = arith.constant 0 : index
    %c0_16 = arith.constant 0 : index
    %22 = vector.load %arg7[%c0_15, %c0_16] : memref<1x1024xf32, #tpu.memory_space<vmem>>, vector<1x1024xf32>
    %23 = vector.broadcast %22 : vector<1x1024xf32> to vector<8x1024xf32>
    %24 = arith.addf %21, %23 : vector<8x1024xf32>
    %cst_17 = arith.constant 2.000000e-01 : f32
    %25 = vector.broadcast %cst_17 : f32 to vector<8x1024xf32>
    %26 = arith.mulf %25, %24 : vector<8x1024xf32>
    %27 = arith.maximumf %24, %26 : vector<8x1024xf32>
    %28 = arith.truncf %27 : vector<8x1024xf32> to vector<8x1024xbf16>
    %c0_18 = arith.constant 0 : index
    %c0_19 = arith.constant 0 : index
    %29 = vector.load %arg8[%c0_18, %c0_19] : memref<1024x896xbf16, #tpu.memory_space<vmem>>, vector<1024x896xbf16>
    %cst_20 = arith.constant dense<0.000000e+00> : vector<8x896xf32>
    %30 = tpu.matmul %28, %29, %cst_20 {dimension_numbers = #tpu.dot_dimension_numbers<[1], [0], [0], [1], [0, 0, 1, 1], [], []>} : vector<8x1024xbf16>, vector<1024x896xbf16>, vector<8x896xf32> -> vector<8x896xf32>
    %c0_21 = arith.constant 0 : index
    %c0_22 = arith.constant 0 : index
    %31 = vector.load %arg9[%c0_21, %c0_22] : memref<1x896xf32, #tpu.memory_space<vmem>>, vector<1x896xf32>
    %32 = vector.broadcast %31 : vector<1x896xf32> to vector<8x896xf32>
    %33 = arith.addf %30, %32 : vector<8x896xf32>
    %34 = math.tanh %33 : vector<8x896xf32>
    %c0_23 = arith.constant 0 : index
    %c0_24 = arith.constant 0 : index
    %35 = vector.load %arg10[%c0_23, %c0_24] : memref<8x896xf32, #tpu.memory_space<vmem>>, vector<8x896xf32>
    tpu.vector_store %arg10[%c0_23, %c0_24], %34 {strides = array<i32>} : memref<8x896xf32, #tpu.memory_space<vmem>>, vector<8x896xf32>,
    return
  }
  func.func @transform_0(%arg0: i32) -> (i32, i32) {
    %c0_i32 = arith.constant 0 : i32
    %c0_i32_0 = arith.constant 0 : i32
    return %arg0, %c0_i32 : i32, i32
  }
  func.func @transform_1(%arg0: i32) -> (i32, i32) {
    %c0_i32 = arith.constant 0 : i32
    %c0_i32_0 = arith.constant 0 : i32
    %c0_i32_1 = arith.constant 0 : i32
    return %c0_i32, %c0_i32_0 : i32, i32
  }
  func.func @transform_2(%arg0: i32) -> (i32, i32) {
    %c0_i32 = arith.constant 0 : i32
    %c0_i32_0 = arith.constant 0 : i32
    %c0_i32_1 = arith.constant 0 : i32
    return %c0_i32, %c0_i32_0 : i32, i32
  }
  func.func @transform_3(%arg0: i32) -> (i32, i32) {
    %c0_i32 = arith.constant 0 : i32
    %c0_i32_0 = arith.constant 0 : i32
    %c0_i32_1 = arith.constant 0 : i32
    return %c0_i32, %c0_i32_0 : i32, i32
  }
  func.func @transform_4(%arg0: i32) -> (i32, i32) {
    %c0_i32 = arith.constant 0 : i32
    %c0_i32_0 = arith.constant 0 : i32
    %c0_i32_1 = arith.constant 0 : i32
    return %c0_i32, %c0_i32_0 : i32, i32
  }
  func.func @transform_5(%arg0: i32) -> (i32, i32) {
    %c0_i32 = arith.constant 0 : i32
    %c0_i32_0 = arith.constant 0 : i32
    %c0_i32_1 = arith.constant 0 : i32
    return %c0_i32, %c0_i32_0 : i32, i32
  }
  func.func @transform_6(%arg0: i32) -> (i32, i32) {
    %c0_i32 = arith.constant 0 : i32
    %c0_i32_0 = arith.constant 0 : i32
    %c0_i32_1 = arith.constant 0 : i32
    return %c0_i32, %c0_i32_0 : i32, i32
  }
  func.func @transform_7(%arg0: i32) -> (i32, i32) {
    %c0_i32 = arith.constant 0 : i32
    %c0_i32_0 = arith.constant 0 : i32
    %c0_i32_1 = arith.constant 0 : i32
    return %c0_i32, %c0_i32_0 : i32, i32
  }
  func.func @transform_8(%arg0: i32) -> (i32, i32) {
    %c0_i32 = arith.constant 0 : i32
    %c0_i32_0 = arith.constant 0 : i32
    %c0_i32_1 = arith.constant 0 : i32
    return %c0_i32, %c0_i32_0 : i32, i32
  }
  func.func @transform_9(%arg0: i32) -> (i32, i32) {
    %c0_i32 = arith.constant 0 : i32
    %c0_i32_0 = arith.constant 0 : i32
    return %arg0, %c0_i32 : i32, i32
  }
}

</mosaic_0001>

<bundles_post_ra>
// kernel: tpu_custom_call.1
= control target key start
LH: loop header
LB: loop body
LE: loop exit
PB: predicated region body
PF: predicated region fallthrough
CT: control target
= control target key end

     0   :  { %14 = vsyncpa [#allocation3], 0  ;;  %s10897_s0 = inlined_call_operand.hbm [shape: f32[8,64], index: 0, kind: input, shape index: {}]   ;;  %s10898_s1 = inlined_call_operand.hbm [shape: bf16[64,256], index: 1, kind: input, shape index: {}]   ;;  %s10899_s2 = inlined_call_operand.hbm [shape: f32[1,256], index: 2, kind: input, shape index: {}]   ;;  %s10900_s3 = inlined_call_operand.hbm [shape: bf16[256,512], index: 3, kind: input, shape index: {}]   ;;  %s10901_s4 = inlined_call_operand.hbm [shape: f32[1,512], index: 4, kind: input, shape index: {}]   ;;  %s10902_s5 = inlined_call_operand.hbm [shape: bf16[512,1024], index: 5, kind: input, shape index: {}]   ;;  %s10903_s6 = inlined_call_operand.hbm [shape: f32[1,1024], index: 6, kind: input, shape index: {}]   ;;  %s10904_s7 = inlined_call_operand.hbm [shape: bf16[1024,896], index: 7, kind: input, shape index: {}]   ;;  %s10905_s8 = inlined_call_operand.hbm [shape: f32[1,896], index: 8, kind: input, shape index: {}]   ;;  %s10906_s9 = inlined_call_operand.hbm [shape: f32[8,896], index: 9, kind: output, shape index: {}]  }
   0x1   :  { %15 = vsyncpa [#allocation6], 0 }
   0x2   :  { %16 = vsyncpa [#allocation9], 0 }
   0x3   :  { %17 = vsyncpa [#allocation12], 0 }
   0x4   :  { %18 = vsyncpa [#allocation15], 0  ;;  %s35_s11 = sshll.u32 %s10898_s1, 4  ;;  %s36_s11 = int_to_ptr.hbm [resolvable:$true] %s35_s11 }
   0x5   :  { %19 = vsyncpa [#allocation4], 0  ;;  %s10524_s12 = smov [#allocation5]   ;;  %s59_s16 = sshll.u32 %s10900_s3, 4  ;;  %s60_s16 = int_to_ptr.hbm [resolvable:$true] %s59_s16 }
   0x6   :  { %s37_s13 = sshll.u32 %s10524_s12, 4  ;;  %s10525_s17 = smov 128   ;;  %s38_s13 = int_to_ptr.vmem [resolvable:$true] %s37_s13 }
   0x7   :  { %s10526_s18 = smov 8   ;;  %s10527_s19 = smov [#allocation8]  }
   0x8   :  { %43 = dma.hbm_to_vmem [thread:$0]  %s36_s11, 1024, %s38_s13, [#allocation6], %s10525_s17, %s10525_s17, %s10526_s18  }
   0x9   :  { %s61_s20 = sshll.u32 %s10527_s19, 4  ;;  %s10528_s21 = smov 256   ;;  %s62_s20 = int_to_ptr.vmem [resolvable:$true] %s61_s20 }
   0xa   :  { %s10529_s22 = smov 16   ;;  %s83_s24 = sshll.u32 %s10902_s5, 4  ;;  %s84_s24 = int_to_ptr.hbm [resolvable:$true] %s83_s24 }
   0xb   :  { %67 = dma.hbm_to_vmem [thread:$0]  %s60_s16, 8192, %s62_s20, [#allocation9], %s10528_s21, %s10528_s21, %s10529_s22  }
   0xc   :  { %s10530_s25 = smov [#allocation11]   ;;  %s107_s28 = sshll.u32 %s10904_s7, 4  ;;  %s108_s28 = int_to_ptr.hbm [resolvable:$true] %s107_s28 }
   0xd   :  { %s85_s26 = sshll.u32 %s10530_s25, 4  ;;  %s10531_s29 = smov 512   ;;  %s86_s26 = int_to_ptr.vmem [resolvable:$true] %s85_s26 }
   0xe   :  { %s10532_s30 = smov 32   ;;  %s10533_s10 = smov [#allocation14]  }
   0xf   :  { %91 = dma.hbm_to_vmem [thread:$0]  %s84_s24, 32768, %s86_s26, [#allocation12], %s10531_s29, %s10531_s29, %s10532_s30  }
  0x10   :  { %s109_s11 = sshll.u32 %s10533_s10, 4  ;;  %s10534_s12 = smov 448   ;;  %s110_s11 = int_to_ptr.vmem [resolvable:$true] %s109_s11 }
  0x11   :  { %s10535_s13 = smov 28   ;;  %s25_s15 = sshll.u32 %s10897_s0, 4  ;;  %s26_s15 = int_to_ptr.hbm [resolvable:$true] %s25_s15 }
  0x12   :  { %115 = dma.hbm_to_vmem [thread:$0]  %s108_s28, 57344, %s110_s11, [#allocation15], %s10534_s12, %s10534_s12, %s10535_s13  }
  0x13   :  { %s10536_s16 = smov [#allocation2]   ;;  %s49_s19 = sshll.u32 %s10899_s2, 4  ;;  %s50_s19 = int_to_ptr.hbm [resolvable:$true] %s49_s19 }
  0x14   :  { %s27_s17 = sshll.u32 %s10536_s16, 4  ;;  %s10537_s20 = smov [#allocation7]   ;;  %s28_s17 = int_to_ptr.vmem [resolvable:$true] %s27_s17 }
  0x15   :  { %30 = dma.hbm_to_vmem [thread:$0]  %s26_s15, 128, %s28_s17, [#allocation3]  }
  0x16   :  { %s51_s21 = sshll.u32 %s10537_s20, 4  ;;  %s73_s23 = sshll.u32 %s10901_s4, 4  ;;  %s52_s21 = int_to_ptr.vmem [resolvable:$true] %s51_s21  ;;  %s74_s23 = int_to_ptr.hbm [resolvable:$true] %s73_s23 }
  0x17   :  { %54 = dma.hbm_to_vmem [thread:$0]  %s50_s19, 32, %s52_s21, [#allocation6]  }
  0x18   :  { %s97_s25 = sshll.u32 %s10903_s6, 4  ;;  %s10538_s26 = smov [#allocation10]   ;;  %s98_s25 = int_to_ptr.hbm [resolvable:$true] %s97_s25 }
  0x19   :  { %s75_s27 = sshll.u32 %s10538_s26, 4  ;;  %s10539_s2 = smov [#allocation13]   ;;  %s76_s27 = int_to_ptr.vmem [resolvable:$true] %s75_s27 }
  0x1a   :  { %78 = dma.hbm_to_vmem [thread:$0]  %s74_s23, 64, %s76_s27, [#allocation9]  }
  0x1b   :  { %s99_s3 = sshll.u32 %s10539_s2, 4  ;;  %s121_s30 = sshll.u32 %s10905_s8, 4  ;;  %s100_s3 = int_to_ptr.vmem [resolvable:$true] %s99_s3  ;;  %s122_s30 = int_to_ptr.hbm [resolvable:$true] %s121_s30 }
  0x1c   :  { %102 = dma.hbm_to_vmem [thread:$0]  %s98_s25, 128, %s100_s3, [#allocation12]  }
  0x1d   :  { %s10540_s4 = smov [#allocation16]  }
  0x1e   :  { %s123_s10 = sshll.u32 %s10540_s4, 4  ;;  %s124_s10 = int_to_ptr.vmem [resolvable:$true] %s123_s10 }
  0x1f   :  { %126 = dma.hbm_to_vmem [thread:$0]  %s122_s30, 112, %s124_s10, [#allocation15]  }
  0x20   :  { %10512 = dma.done.wait [#allocation3], 128  }
  0x21   :  { %10513 = vsyncadd [#allocation3], 4294967168 }
  0x22   :  { %10514 = dma.done.wait [#allocation6], 1056  }
  0x23   :  { %10515 = vsyncadd [#allocation6], 4294966240 }
  0x24   :  { %10516 = dma.done.wait [#allocation9], 8256  }
  0x25   :  { %10517 = vsyncadd [#allocation9], 4294959040 }
  0x26   :  { %10518 = dma.done.wait [#allocation12], 32896  }
  0x27   :  { %10519 = vsyncadd [#allocation12], 4294934400 }
  0x28   :  { %10520 = dma.done.wait [#allocation15], 57456  }
  0x29   :  { %10521 = vsyncadd [#allocation15], 4294909840  ;;  %v6381_v0 = vld [vmem:[#allocation5 + $0x30] sm:$0xf]  ;;  %v9468_v1 = vld [vmem:[#allocation5 + $0x34] sm:$0xf0] }
  0x2a   :  { %v9467_v2 = vld [vmem:[#allocation5 + $0x34] sm:$0xf]  ;;  %v6382_v3 = vor.u32 %v9468_v1, %v6381_v0  ;;  %v6383_v4 = vld [vmem:[#allocation5 + $0x38] sm:$0xf0]  ;;  %v6373_v5 = vld [vmem:[#allocation5 + $0x20] sm:$0xf] }
  0x2b   :  { %v9466_v6 = vld [vmem:[#allocation5 + $0x24] sm:$0xf0]  ;;  %v6386_v7 = vor.u32 %v9467_v2, %v6383_v4  ;;  %v9465_v8 = vld [vmem:[#allocation5 + $0x24] sm:$0xf]  ;;  %v6375_v9 = vld [vmem:[#allocation5 + $0x28] sm:$0xf0] }
  0x2c   :  { %228 = vmatpush.bf16.msra.mxu0 %v6382_v3  ;;  %v6374_v10 = vor.u32 %v9466_v6, %v6373_v5  ;;  %v6378_v11 = vor.u32 %v9465_v8, %v6375_v9  ;;  %v6365_v12 = vld [vmem:[#allocation5 + $0x10] sm:$0xf]  ;;  %v9464_v13 = vld [vmem:[#allocation5 + $0x14] sm:$0xf0]  ;;  %v9463_v14 = vld [vmem:[#allocation5 + $0x14] sm:$0xf] }
  0x2d   :  { %241 = vmatpush.bf16.msra.mxu1 %v6386_v7  ;;  %v6367_v15 = vld [vmem:[#allocation5 + $0x18] sm:$0xf0]  ;;  %v6503_v16 = vld [vmem:[#allocation8 + $0xe0] sm:$0xf]  ;;  %v9499_v18 = vld [vmem:[#allocation8 + $0xec] sm:$0xf0]  ;;  %v6366_v21 = vor.u32 %v9464_v13, %v6365_v12 }
  0x2e   :  { %v6357_v17 = vld [vmem:[#allocation5] sm:$0xf]  ;;  %v9531_v20 = vld [vmem:[#allocation8 + $0x1ec] sm:$0xf0]  ;;  %v9462_v22 = vld [vmem:[#allocation5 + $0x4] sm:$0xf0]  ;;  %v6504_v25 = vor.u32 %v9499_v18, %v6503_v16  ;;  %v6370_v27 = vor.u32 %v9463_v14, %v6367_v15 }
  0x2f   :  { %v6631_v19 = vld [vmem:[#allocation8 + $0x1e0] sm:$0xf]  ;;  %v6359_v24 = vld [vmem:[#allocation5 + $0x8] sm:$0xf0]  ;;  %v9497_v28 = vld [vmem:[#allocation8 + $0xe4] sm:$0xf]  ;;  %v6358_v39 = vor.u32 %v9462_v22, %v6357_v17 }
  0x30   :  { %229 = vmatpush.bf16.msra.mxu0 %v6374_v10  ;;  %v9461_v23 = vld [vmem:[#allocation5 + $0x4] sm:$0xf]  ;;  %v6632_v26 = vor.u32 %v9531_v20, %v6631_v19  ;;  %v9495_v30 = vld [vmem:[#allocation8 + $0xcc] sm:$0xf0]  ;;  %650 = vmatpush.bf16.msra.mxu2 %v6504_v25  ;;  %v6505_v31 = vld [vmem:[#allocation8 + $0xf0] sm:$0xf0] }
  0x31   :  { %242 = vmatpush.bf16.msra.mxu1 %v6378_v11  ;;  %v6487_v29 = vld [vmem:[#allocation8 + $0xc0] sm:$0xf]  ;;  %v9527_v34 = vld [vmem:[#allocation8 + $0x1cc] sm:$0xf0]  ;;  %v164_v35 = vld [vmem:[#allocation2] sm:$0xff]  ;;  %v6362_v43 = vor.u32 %v9461_v23, %v6359_v24  ;;  %v6508_v44 = vor.u32 %v9497_v28, %v6505_v31  ;;  %vm220_vm0 = vcmask 523264  }
  0x32   :  { %663 = vmatpush.bf16.msra.mxu3 %v6632_v26  ;;  %v6488_v32 = vor.u32 %v9495_v30, %v6487_v29  ;;  %v6615_v33 = vld [vmem:[#allocation8 + $0x1c0] sm:$0xf]  ;;  %v9529_v36 = vld [vmem:[#allocation8 + $0x1e4] sm:$0xf]  ;;  %v6633_v37 = vld [vmem:[#allocation8 + $0x1f0] sm:$0xf0]  ;;  %v165_v51 = vpack.c.bf16 %v164_v35, %v164_v35 }
  0x33   :  { %v6616_v38 = vor.u32 %v9527_v34, %v6615_v33  ;;  %v6471_v40 = vld [vmem:[#allocation8 + $0xa0] sm:$0xf]  ;;  %v9491_v41 = vld [vmem:[#allocation8 + $0xac] sm:$0xf0]  ;;  %v6636_v46 = vor.u32 %v9529_v36, %v6633_v37  ;;  %v9493_v47 = vld [vmem:[#allocation8 + $0xc4] sm:$0xf] }
  0x34   :  { %230 = vmatpush.bf16.msra.mxu0 %v6366_v21  ;;  %v6599_v42 = vld [vmem:[#allocation8 + $0x1a0] sm:$0xf]  ;;  %v9523_v45 = vld [vmem:[#allocation8 + $0x1ac] sm:$0xf0]  ;;  %651 = vmatpush.bf16.msra.mxu2 %v6488_v32  ;;  %v6489_v48 = vld [vmem:[#allocation8 + $0xd0] sm:$0xf0]  ;;  %v6472_v50 = vor.u32 %v9491_v41, %v6471_v40 }
  0x35   :  { %243 = vmatpush.bf16.msra.mxu1 %v6370_v27  ;;  %v9525_v49 = vld [vmem:[#allocation8 + $0x1c4] sm:$0xf]  ;;  %v6617_v52 = vld [vmem:[#allocation8 + $0x1d0] sm:$0xf0]  ;;  %v6600_v53 = vor.u32 %v9523_v45, %v6599_v42  ;;  %v6455_v54 = vld [vmem:[#allocation8 + $0x80] sm:$0xf]  ;;  %v6492_v58 = vor.u32 %v9493_v47, %v6489_v48 }
  0x36   :  { %664 = vmatpush.bf16.msra.mxu3 %v6616_v38  ;;  %v9487_v55 = vld [vmem:[#allocation8 + $0x8c] sm:$0xf0]  ;;  %v6583_v56 = vld [vmem:[#allocation8 + $0x180] sm:$0xf]  ;;  %v6620_v59 = vor.u32 %v9525_v49, %v6617_v52  ;;  %v9489_v60 = vld [vmem:[#allocation8 + $0xa4] sm:$0xf] }
  0x37   :  { %v9519_v57 = vld [vmem:[#allocation8 + $0x18c] sm:$0xf0]  ;;  %v6473_v61 = vld [vmem:[#allocation8 + $0xb0] sm:$0xf0]  ;;  %v9521_v62 = vld [vmem:[#allocation8 + $0x1a4] sm:$0xf]  ;;  %v6456_v63 = vor.u32 %v9487_v55, %v6455_v54 }
  0x38   :  { %231 = vmatpush.bf16.msra.mxu0 %v6358_v39  ;;  %652 = vmatpush.bf16.msra.mxu2 %v6472_v50  ;;  %v6601_v0 = vld [vmem:[#allocation8 + $0x1b0] sm:$0xf0]  ;;  %v6584_v1 = vor.u32 %v9519_v57, %v6583_v56  ;;  %v6439_v2 = vld [vmem:[#allocation8 + $0x60] sm:$0xf]  ;;  %v9483_v3 = vld [vmem:[#allocation8 + $0x6c] sm:$0xf0]  ;;  %v6476_v6 = vor.u32 %v9489_v60, %v6473_v61 }
  0x39   :  { %244 = vmatpush.bf16.msra.mxu1 %v6362_v43  ;;  %v6567_v4 = vld [vmem:[#allocation8 + $0x160] sm:$0xf]  ;;  %v9515_v5 = vld [vmem:[#allocation8 + $0x16c] sm:$0xf0]  ;;  %v6604_v7 = vor.u32 %v9521_v62, %v6601_v0  ;;  %v9485_v8 = vld [vmem:[#allocation8 + $0x84] sm:$0xf]  ;;  %v6440_v11 = vor.u32 %v9483_v3, %v6439_v2 }
  0x3a   :  { %665 = vmatpush.bf16.msra.mxu3 %v6600_v53  ;;  %v6457_v9 = vld [vmem:[#allocation8 + $0x90] sm:$0xf0]  ;;  %v9517_v10 = vld [vmem:[#allocation8 + $0x184] sm:$0xf]  ;;  %v6568_v13 = vor.u32 %v9515_v5, %v6567_v4  ;;  %v6423_v14 = vld [vmem:[#allocation8 + $0x40] sm:$0xf] }
  0x3b   :  { %6387 = vmatmul.msk.bf16.vlgmr.msra.gmra.mxu0 %vm220_vm0, %v165_v51  ;;  %v6585_v12 = vld [vmem:[#allocation8 + $0x190] sm:$0xf0]  ;;  %v9479_v15 = vld [vmem:[#allocation8 + $0x4c] sm:$0xf0]  ;;  %v6551_v16 = vld [vmem:[#allocation8 + $0x140] sm:$0xf]  ;;  %v6460_v18 = vor.u32 %v9485_v8, %v6457_v9 }
  0x3c   :  { %676 = vmatpush.bf16.msrb.mxu0 %v6508_v44  ;;  %6388 = vmatmul.msk.bf16.vlgmr.msra.gmra.mxu1 %vm220_vm0, %v165_v51  ;;  %v9511_v17 = vld [vmem:[#allocation8 + $0x14c] sm:$0xf0]  ;;  %v6588_v19 = vor.u32 %v9517_v10, %v6585_v12  ;;  %v9481_v20 = vld [vmem:[#allocation8 + $0x64] sm:$0xf]  ;;  %v6441_v21 = vld [vmem:[#allocation8 + $0x70] sm:$0xf0]  ;;  %v6424_v23 = vor.u32 %v9479_v15, %v6423_v14 }
  0x3d   :  { %689 = vmatpush.bf16.msrb.mxu1 %v6636_v46  ;;  %653 = vmatpush.bf16.msra.mxu2 %v6456_v63  ;;  %v9513_v22 = vld [vmem:[#allocation8 + $0x164] sm:$0xf]  ;;  %v6569_v24 = vld [vmem:[#allocation8 + $0x170] sm:$0xf0]  ;;  %v6552_v25 = vor.u32 %v9511_v17, %v6551_v16  ;;  %v6407_v26 = vld [vmem:[#allocation8 + $0x20] sm:$0xf]  ;;  %v6444_v30 = vor.u32 %v9481_v20, %v6441_v21 }
  0x3e   :  { %666 = vmatpush.bf16.msra.mxu3 %v6584_v1  ;;  %v9475_v27 = vld [vmem:[#allocation8 + $0x2c] sm:$0xf0]  ;;  %v6535_v28 = vld [vmem:[#allocation8 + $0x120] sm:$0xf]  ;;  %v9477_v31 = vld [vmem:[#allocation8 + $0x44] sm:$0xf]  ;;  %v6572_v32 = vor.u32 %v9513_v22, %v6569_v24 }
  0x3f   :  { %v9507_v29 = vld [vmem:[#allocation8 + $0x12c] sm:$0xf0]  ;;  %v6425_v33 = vld [vmem:[#allocation8 + $0x50] sm:$0xf0]  ;;  %v9509_v34 = vld [vmem:[#allocation8 + $0x144] sm:$0xf]  ;;  %v6408_v36 = vor.u32 %v9475_v27, %v6407_v26 }
  0x40   :  { %677 = vmatpush.bf16.msrb.mxu0 %v6492_v58  ;;  %v6553_v35 = vld [vmem:[#allocation8 + $0x150] sm:$0xf0]  ;;  %v6536_v37 = vor.u32 %v9507_v29, %v6535_v28  ;;  %v6391_v38 = vld [vmem:[#allocation8] sm:$0xf]  ;;  %v9471_v39 = vld [vmem:[#allocation8 + $0xc] sm:$0xf0]  ;;  %v6428_v44 = vor.u32 %v9477_v31, %v6425_v33 }
  0x41   :  { %690 = vmatpush.bf16.msrb.mxu1 %v6620_v59  ;;  %654 = vmatpush.bf16.msra.mxu2 %v6440_v11  ;;  %v6519_v40 = vld [vmem:[#allocation8 + $0x100] sm:$0xf]  ;;  %v9503_v41 = vld [vmem:[#allocation8 + $0x10c] sm:$0xf0]  ;;  %v6511_v42 = vld [vmem:[#allocation8 + $0xe8] sm:$0xf]  ;;  %v6556_v47 = vor.u32 %v9509_v34, %v6553_v35  ;;  %v6392_v50 = vor.u32 %v9471_v39, %v6391_v38 }
  0x42   :  { %667 = vmatpush.bf16.msra.mxu3 %v6568_v13  ;;  %v9500_v43 = vld [vmem:[#allocation8 + $0xf4] sm:$0xf0]  ;;  %v6639_v45 = vld [vmem:[#allocation8 + $0x1e8] sm:$0xf]  ;;  %v9473_v48 = vld [vmem:[#allocation8 + $0x24] sm:$0xf]  ;;  %v6520_v53 = vor.u32 %v9503_v41, %v6519_v40 }
  0x43   :  { %v9532_v46 = vld [vmem:[#allocation8 + $0x1f4] sm:$0xf0]  ;;  %v6409_v49 = vld [vmem:[#allocation8 + $0x30] sm:$0xf0]  ;;  %v9505_v51 = vld [vmem:[#allocation8 + $0x124] sm:$0xf]  ;;  %v6512_v54 = vor.u32 %v9500_v43, %v6511_v42 }
  0x44   :  { %678 = vmatpush.bf16.msrb.mxu0 %v6476_v6  ;;  %v6537_v52 = vld [vmem:[#allocation8 + $0x130] sm:$0xf0]  ;;  %v6640_v55 = vor.u32 %v9532_v46, %v6639_v45  ;;  %v6495_v56 = vld [vmem:[#allocation8 + $0xc8] sm:$0xf]  ;;  %v9496_v57 = vld [vmem:[#allocation8 + $0xd4] sm:$0xf0]  ;;  %v6412_v58 = vor.u32 %v9473_v48, %v6409_v49 }
  0x45   :  { %691 = vmatpush.bf16.msrb.mxu1 %v6604_v7  ;;  %655 = vmatpush.bf16.msra.mxu2 %v6424_v23  ;;  %v6623_v59 = vld [vmem:[#allocation8 + $0x1c8] sm:$0xf]  ;;  %v9528_v60 = vld [vmem:[#allocation8 + $0x1d4] sm:$0xf0]  ;;  %v6540_v61 = vor.u32 %v9505_v51, %v6537_v52  ;;  %v9469_v62 = vld [vmem:[#allocation8 + $0x4] sm:$0xf]  ;;  %v6496_v4 = vor.u32 %v9496_v57, %v6495_v56 }
  0x46   :  { %668 = vmatpush.bf16.msra.mxu3 %v6552_v25  ;;  %v6393_v63 = vld [vmem:[#allocation8 + $0x10] sm:$0xf0]  ;;  %v9501_v0 = vld [vmem:[#allocation8 + $0x104] sm:$0xf]  ;;  %v9498_v2 = vld [vmem:[#allocation8 + $0xec] sm:$0xf]  ;;  %v6624_v7 = vor.u32 %v9528_v60, %v6623_v59 }
  0x47   :  { %v6521_v1 = vld [vmem:[#allocation8 + $0x110] sm:$0xf0]  ;;  %v6513_v3 = vld [vmem:[#allocation8 + $0xf8] sm:$0xf0]  ;;  %v9530_v5 = vld [vmem:[#allocation8 + $0x1ec] sm:$0xf]  ;;  %v6396_v8 = vor.u32 %v9469_v62, %v6393_v63 }
  0x48   :  { %679 = vmatpush.bf16.msrb.mxu0 %v6460_v18  ;;  %v6641_v6 = vld [vmem:[#allocation8 + $0x1f8] sm:$0xf0]  ;;  %v6524_v9 = vor.u32 %v9501_v0, %v6521_v1  ;;  %v6516_v10 = vor.u32 %v9498_v2, %v6513_v3  ;;  %v9494_v12 = vld [vmem:[#allocation8 + $0xcc] sm:$0xf]  ;;  %v6479_v18 = vld [vmem:[#allocation8 + $0xa8] sm:$0xf] }
  0x49   :  { %692 = vmatpush.bf16.msrb.mxu1 %v6588_v19  ;;  %656 = vmatpush.bf16.msra.mxu2 %v6408_v36  ;;  %v6644_v11 = vor.u32 %v9530_v5, %v6641_v6  ;;  %v6497_v13 = vld [vmem:[#allocation8 + $0xd8] sm:$0xf0]  ;;  %v9526_v14 = vld [vmem:[#allocation8 + $0x1cc] sm:$0xf]  ;;  %v9492_v19 = vld [vmem:[#allocation8 + $0xb4] sm:$0xf0] }
  0x4a   :  { %669 = vmatpush.bf16.msra.mxu3 %v6536_v37  ;;  %v6625_v15 = vld [vmem:[#allocation8 + $0x1d8] sm:$0xf0]  ;;  %v6500_v16 = vor.u32 %v9494_v12, %v6497_v13  ;;  %v6480_v20 = vor.u32 %v9492_v19, %v6479_v18  ;;  %v6607_v21 = vld [vmem:[#allocation8 + $0x1a8] sm:$0xf]  ;;  %v9524_v22 = vld [vmem:[#allocation8 + $0x1b4] sm:$0xf0] }
  0x4b   :  { %v6628_v17 = vor.u32 %v9526_v14, %v6625_v15  ;;  %v9490_v23 = vld [vmem:[#allocation8 + $0xac] sm:$0xf]  ;;  %v6608_v24 = vor.u32 %v9524_v22, %v6607_v21  ;;  %v6481_v25 = vld [vmem:[#allocation8 + $0xb8] sm:$0xf0]  ;;  %v9488_v31 = vld [vmem:[#allocation8 + $0x94] sm:$0xf0] }
  0x4c   :  { %680 = vmatpush.bf16.msrb.mxu0 %v6444_v30  ;;  %v9522_v26 = vld [vmem:[#allocation8 + $0x1ac] sm:$0xf]  ;;  %v6609_v27 = vld [vmem:[#allocation8 + $0x1b8] sm:$0xf0]  ;;  %v6484_v28 = vor.u32 %v9490_v23, %v6481_v25  ;;  %v6463_v30 = vld [vmem:[#allocation8 + $0x88] sm:$0xf] }
  0x4d   :  { %693 = vmatpush.bf16.msrb.mxu1 %v6572_v32  ;;  %657 = vmatpush.bf16.msra.mxu2 %v6392_v50  ;;  %v6612_v29 = vor.u32 %v9522_v26, %v6609_v27  ;;  %v6591_v32 = vld [vmem:[#allocation8 + $0x188] sm:$0xf]  ;;  %v6464_v33 = vor.u32 %v9488_v31, %v6463_v30  ;;  %v9520_v34 = vld [vmem:[#allocation8 + $0x194] sm:$0xf0]  ;;  %v9486_v35 = vld [vmem:[#allocation8 + $0x8c] sm:$0xf] }
  0x4e   :  { %670 = vmatpush.bf16.msra.mxu3 %v6520_v53  ;;  %v6465_v36 = vld [vmem:[#allocation8 + $0x98] sm:$0xf0]  ;;  %v6592_v37 = vor.u32 %v9520_v34, %v6591_v32  ;;  %v9518_v39 = vld [vmem:[#allocation8 + $0x18c] sm:$0xf]  ;;  %v6447_v42 = vld [vmem:[#allocation8 + $0x68] sm:$0xf] }
  0x4f   :  { %v6468_v38 = vor.u32 %v9486_v35, %v6465_v36  ;;  %v6593_v40 = vld [vmem:[#allocation8 + $0x198] sm:$0xf0]  ;;  %v9484_v43 = vld [vmem:[#allocation8 + $0x74] sm:$0xf0]  ;;  %v9514_v51 = vld [vmem:[#allocation8 + $0x16c] sm:$0xf] }
  0x50   :  { %681 = vmatpush.bf16.msrb.mxu0 %v6428_v44  ;;  %v6596_v41 = vor.u32 %v9518_v39, %v6593_v40  ;;  %v6575_v44 = vld [vmem:[#allocation8 + $0x168] sm:$0xf]  ;;  %v6448_v45 = vor.u32 %v9484_v43, %v6447_v42  ;;  %v9516_v46 = vld [vmem:[#allocation8 + $0x174] sm:$0xf0]  ;;  %v6449_v48 = vld [vmem:[#allocation8 + $0x78] sm:$0xf0] }
  0x51   :  { %694 = vmatpush.bf16.msrb.mxu1 %v6556_v47  ;;  %702 = vmatpush.bf16.msrb.mxu2 %v6512_v54  ;;  %v9482_v47 = vld [vmem:[#allocation8 + $0x6c] sm:$0xf]  ;;  %v6576_v49 = vor.u32 %v9516_v46, %v6575_v44  ;;  %v6577_v52 = vld [vmem:[#allocation8 + $0x178] sm:$0xf0]  ;;  %v6431_v53 = vld [vmem:[#allocation8 + $0x48] sm:$0xf] }
  0x52   :  { %715 = vmatpush.bf16.msrb.mxu3 %v6640_v55  ;;  %v6452_v50 = vor.u32 %v9482_v47, %v6449_v48  ;;  %v6580_v54 = vor.u32 %v9514_v51, %v6577_v52  ;;  %v9480_v55 = vld [vmem:[#allocation8 + $0x54] sm:$0xf0]  ;;  %v6559_v56 = vld [vmem:[#allocation8 + $0x148] sm:$0xf]  ;;  %v9478_v60 = vld [vmem:[#allocation8 + $0x4c] sm:$0xf] }
  0x53   :  { %v9512_v57 = vld [vmem:[#allocation8 + $0x154] sm:$0xf0]  ;;  %v9510_v62 = vld [vmem:[#allocation8 + $0x14c] sm:$0xf]  ;;  %v6561_v0 = vld [vmem:[#allocation8 + $0x158] sm:$0xf0] }
  0x54   :  { %682 = vmatpush.bf16.msrb.mxu0 %v6412_v58  ;;  %v6432_v58 = vor.u32 %v9480_v55, %v6431_v53  ;;  %v6560_v59 = vor.u32 %v9512_v57, %v6559_v56  ;;  %v6415_v1 = vld [vmem:[#allocation8 + $0x28] sm:$0xf]  ;;  %v9476_v2 = vld [vmem:[#allocation8 + $0x34] sm:$0xf0]  ;;  %v6564_v3 = vor.u32 %v9510_v62, %v6561_v0  ;;  %v9474_v6 = vld [vmem:[#allocation8 + $0x2c] sm:$0xf] }
  0x55   :  { %695 = vmatpush.bf16.msrb.mxu1 %v6540_v61  ;;  %703 = vmatpush.bf16.msrb.mxu2 %v6496_v4  ;;  %v6433_v61 = vld [vmem:[#allocation8 + $0x58] sm:$0xf0]  ;;  %v6543_v4 = vld [vmem:[#allocation8 + $0x128] sm:$0xf]  ;;  %v9508_v5 = vld [vmem:[#allocation8 + $0x134] sm:$0xf0] }
  0x56   :  { %716 = vmatpush.bf16.msrb.mxu3 %v6624_v7  ;;  %v6436_v63 = vor.u32 %v9478_v60, %v6433_v61  ;;  %v6416_v7 = vor.u32 %v9476_v2, %v6415_v1  ;;  %v6399_v12 = vld [vmem:[#allocation8 + $0x8] sm:$0xf]  ;;  %v9472_v13 = vld [vmem:[#allocation8 + $0x14] sm:$0xf0]  ;;  %v9470_v18 = vld [vmem:[#allocation8 + $0xc] sm:$0xf] }
  0x57   :  { %v6401_v19 = vld [vmem:[#allocation8 + $0x18] sm:$0xf0]  ;;  %v6400_v22 = vor.u32 %v9472_v13, %v6399_v12  ;;  %v9657_v35 = vld [vmem:[#allocation11 + $0x3dc] sm:$0xf0]  ;;  %s10541_s6 = smov [#allocation17]   ;;  %s6341_s13 = sshll.u32 %s10906_s9, 4  ;;  %s6342_s13 = int_to_ptr.hbm [resolvable:$true] %s6341_s13 }
  0x58   :  { %683 = vmatpush.bf16.msrb.mxu0 %v6396_v8  ;;  %v6417_v8 = vld [vmem:[#allocation8 + $0x38] sm:$0xf0]  ;;  %v6871_v36 = vld [vmem:[#allocation11 + $0x1c0] sm:$0xf]  ;;  %s6339_s8 = sshll.u32 %s10541_s6, 4  ;;  %s6340_s8 = int_to_ptr.vmem [resolvable:$true] %s6339_s8 }
  0x59   :  { %696 = vmatpush.bf16.msrb.mxu1 %v6524_v9  ;;  %704 = vmatpush.bf16.msrb.mxu2 %v6480_v20  ;;  %v9506_v9 = vld [vmem:[#allocation8 + $0x12c] sm:$0xf]  ;;  %v6420_v14 = vor.u32 %v9474_v6, %v6417_v8  ;;  %v6529_v21 = vld [vmem:[#allocation8 + $0x118] sm:$0xf0]  ;;  %v7639_v39 = vld [vmem:[#allocation11 + $0x7c0] sm:$0xf] }
  0x5a   :  { %717 = vmatpush.bf16.msrb.mxu3 %v6608_v24  ;;  %v9502_v20 = vld [vmem:[#allocation8 + $0x10c] sm:$0xf]  ;;  %v6404_v24 = vor.u32 %v9470_v18, %v6401_v19  ;;  %v174_v26 = vld [vmem:[#allocation7] sm:$0x3]  ;;  %v7383_v42 = vld [vmem:[#allocation11 + $0x5c0] sm:$0xf] }
  0x5b   :  { %v6532_v25 = vor.u32 %v9502_v20, %v6529_v21  ;;  %v176_v27 = vperm.slane %v174_v26, 0  ;;  %v9721_v43 = vld [vmem:[#allocation11 + $0x5dc] sm:$0xf0] }
  0x5c   :  { %728 = vmatpush.bf16.msra.mxu0 %v6516_v10  ;;  %v6545_v10 = vld [vmem:[#allocation8 + $0x138] sm:$0xf0]  ;;  %v7095_v47 = vld [vmem:[#allocation11 + $0x380] sm:$0xf]  ;;  %v7384_v56 = vor.u32 %v9721_v43, %v7383_v42 }
  0x5d   :  { %741 = vmatpush.bf16.msra.mxu1 %v6644_v11  ;;  %705 = vmatpush.bf16.msrb.mxu2 %v6464_v33  ;;  %v6544_v11 = vor.u32 %v9508_v5, %v6543_v4  ;;  %v6548_v15 = vor.u32 %v9506_v9, %v6545_v10  ;;  %v7127_v33 = vld [vmem:[#allocation11 + $0x3c0] sm:$0xf] }
  0x5e   :  { %718 = vmatpush.bf16.msrb.mxu3 %v6592_v37  ;;  %v7128_v46 = vor.u32 %v9657_v35, %v7127_v33  ;;  %v9649_v48 = vld [vmem:[#allocation11 + $0x39c] sm:$0xf0] }
  0x5f   :  { %v6839_v52 = vld [vmem:[#allocation11 + $0x180] sm:$0xf]  ;;  %v7096_v61 = vor.u32 %v9649_v48, %v7095_v47 }
  0x60   :  { %729 = vmatpush.bf16.msra.mxu0 %v6500_v16  ;;  %v6527_v16 = vld [vmem:[#allocation8 + $0x108] sm:$0xf]  ;;  %v9585_v53 = vld [vmem:[#allocation11 + $0x19c] sm:$0xf0] }
  0x61   :  { %742 = vmatpush.bf16.msra.mxu1 %v6628_v17  ;;  %706 = vmatpush.bf16.msrb.mxu2 %v6448_v45  ;;  %v9504_v17 = vld [vmem:[#allocation8 + $0x114] sm:$0xf0]  ;;  %v7607_v55 = vld [vmem:[#allocation11 + $0x780] sm:$0xf]  ;;  %v6840_v0 = vor.u32 %v9585_v53, %v6839_v52 }
  0x62   :  { %719 = vmatpush.bf16.msrb.mxu3 %v6576_v49  ;;  %v6528_v23 = vor.u32 %v9504_v17, %v6527_v16  ;;  %v9713_v60 = vld [vmem:[#allocation11 + $0x59c] sm:$0xf0] }
  0x63   :  { %v7063_v62 = vld [vmem:[#allocation11 + $0x340] sm:$0xf] }
  0x64   :  { %730 = vmatpush.bf16.msra.mxu0 %v6484_v28  ;;  %v177_v28 = vperm.slane %v174_v26, 1  ;;  %v6807_v1 = vld [vmem:[#allocation11 + $0x140] sm:$0xf] }
  0x65   :  { %743 = vmatpush.bf16.msra.mxu1 %v6612_v29  ;;  %707 = vmatpush.bf16.msrb.mxu2 %v6432_v58  ;;  %v9777_v58 = vld [vmem:[#allocation11 + $0x79c] sm:$0xf0] }
  0x66   :  { %720 = vmatpush.bf16.msrb.mxu3 %v6560_v59  ;;  %v7351_v59 = vld [vmem:[#allocation11 + $0x580] sm:$0xf] }
  0x67   :  { %v9577_v2 = vld [vmem:[#allocation11 + $0x15c] sm:$0xf0]  ;;  %v7352_v5 = vor.u32 %v9713_v60, %v7351_v59 }
  0x68   :  { %731 = vmatpush.bf16.msra.mxu0 %v6468_v38  ;;  %v9593_v38 = vld [vmem:[#allocation11 + $0x1dc] sm:$0xf0]  ;;  %v6808_v12 = vor.u32 %v9577_v2, %v6807_v1  ;;  %v7129_v2 = vld [vmem:[#allocation11 + $0x3e0] sm:$0xf0] }
  0x69   :  { %744 = vmatpush.bf16.msra.mxu1 %v6596_v41  ;;  %708 = vmatpush.bf16.msrb.mxu2 %v6416_v7  ;;  %v9785_v41 = vld [vmem:[#allocation11 + $0x7dc] sm:$0xf0]  ;;  %v6872_v49 = vor.u32 %v9593_v38, %v6871_v36 }
  0x6a   :  { %721 = vmatpush.bf16.msrb.mxu3 %v6544_v11  ;;  %v7575_v4 = vld [vmem:[#allocation11 + $0x740] sm:$0xf] }
  0x6b   :  { %v9769_v6 = vld [vmem:[#allocation11 + $0x75c] sm:$0xf0] }
  0x6c   :  { %732 = vmatpush.bf16.msra.mxu0 %v6452_v50  ;;  %v7319_v7 = vld [vmem:[#allocation11 + $0x540] sm:$0xf] }
  0x6d   :  { %745 = vmatpush.bf16.msra.mxu1 %v6580_v54  ;;  %709 = vmatpush.bf16.msrb.mxu2 %v6400_v22  ;;  %v7640_v54 = vor.u32 %v9785_v41, %v7639_v39  ;;  %v9705_v8 = vld [vmem:[#allocation11 + $0x55c] sm:$0xf0] }
  0x6e   :  { %722 = vmatpush.bf16.msrb.mxu3 %v6528_v23  ;;  %v7031_v10 = vld [vmem:[#allocation11 + $0x300] sm:$0xf]  ;;  %v7320_v17 = vor.u32 %v9705_v8, %v7319_v7 }
  0x6f   :  { %v9633_v11 = vld [vmem:[#allocation11 + $0x31c] sm:$0xf0] }
  0x70   :  { %733 = vmatpush.bf16.msra.mxu0 %v6436_v63  ;;  %v9641_v63 = vld [vmem:[#allocation11 + $0x35c] sm:$0xf0]  ;;  %v7032_v21 = vor.u32 %v9633_v11, %v7031_v10  ;;  %v7641_v10 = vld [vmem:[#allocation11 + $0x7e0] sm:$0xf0] }
  0x71   :  { %746 = vmatpush.bf16.msra.mxu1 %v6564_v3  ;;  %v7608_v3 = vor.u32 %v9777_v58, %v7607_v55  ;;  %v7064_v9 = vor.u32 %v9641_v63, %v7063_v62  ;;  %v6775_v13 = vld [vmem:[#allocation11 + $0x100] sm:$0xf] }
  0x72   :  { %v7543_v16 = vld [vmem:[#allocation11 + $0x700] sm:$0xf] }
  0x73   :  { %v9761_v18 = vld [vmem:[#allocation11 + $0x71c] sm:$0xf0] }
  0x74   :  { %734 = vmatpush.bf16.msra.mxu0 %v6420_v14  ;;  %v9569_v14 = vld [vmem:[#allocation11 + $0x11c] sm:$0xf0] }
  0x75   :  { %747 = vmatpush.bf16.msra.mxu1 %v6548_v15  ;;  %v7576_v15 = vor.u32 %v9769_v6, %v7575_v4  ;;  %v7287_v19 = vld [vmem:[#allocation11 + $0x500] sm:$0xf]  ;;  %v6873_v4 = vld [vmem:[#allocation11 + $0x1e0] sm:$0xf0] }
  0x76   :  { %v9697_v20 = vld [vmem:[#allocation11 + $0x51c] sm:$0xf0] }
  0x77   :  { %v6999_v22 = vld [vmem:[#allocation11 + $0x2c0] sm:$0xf] }
  0x78   :  { %735 = vmatpush.bf16.msra.mxu0 %v6404_v24  ;;  %v9625_v23 = vld [vmem:[#allocation11 + $0x2dc] sm:$0xf0]  ;;  %v6776_v24 = vor.u32 %v9569_v14, %v6775_v13  ;;  %v7097_v14 = vld [vmem:[#allocation11 + $0x3a0] sm:$0xf0] }
  0x79   :  { %748 = vmatpush.bf16.msra.mxu1 %v6532_v25  ;;  %v6743_v25 = vld [vmem:[#allocation11 + $0xc0] sm:$0xf]  ;;  %v7000_v33 = vor.u32 %v9625_v23, %v6999_v22  ;;  %v7065_v22 = vld [vmem:[#allocation11 + $0x360] sm:$0xf0] }
  0x7a   :  { %v9561_v26 = vld [vmem:[#allocation11 + $0xdc] sm:$0xf0]  ;;  %v9573_v23 = vld [vmem:[#allocation11 + $0x144] sm:$0xf] }
  0x7b   :  { %v9617_v35 = vld [vmem:[#allocation11 + $0x29c] sm:$0xf0]  ;;  %v6744_v36 = vor.u32 %v9561_v26, %v6743_v25 }
  0x7c   :  { %v9553_v38 = vld [vmem:[#allocation11 + $0x9c] sm:$0xf0] }
  0x7d   :  { %v9745_v42 = vld [vmem:[#allocation11 + $0x69c] sm:$0xf0] }
  0x7e   :  { %v7223_v43 = vld [vmem:[#allocation11 + $0x480] sm:$0xf] }
  0x7f   :  { %v6935_v47 = vld [vmem:[#allocation11 + $0x240] sm:$0xf] }
  0x80   :  { %v9609_v48 = vld [vmem:[#allocation11 + $0x25c] sm:$0xf0] }
  0x81   :  { %v9545_v52 = vld [vmem:[#allocation11 + $0x5c] sm:$0xf0]  ;;  %v6936_v58 = vor.u32 %v9609_v48, %v6935_v47  ;;  %v6745_v47 = vld [vmem:[#allocation11 + $0xe0] sm:$0xf0] }
  0x82   :  { %v9737_v55 = vld [vmem:[#allocation11 + $0x65c] sm:$0xf0]  ;;  %v9717_v48 = vld [vmem:[#allocation11 + $0x5c4] sm:$0xf] }
  0x83   :  { %v9601_v59 = vld [vmem:[#allocation11 + $0x21c] sm:$0xf0] }
  0x84   :  { %v6647_v62 = vld [vmem:[#allocation11] sm:$0xf] }
  0x85   :  { %v9537_v63 = vld [vmem:[#allocation11 + $0x1c] sm:$0xf0] }
  0x86   :  { %v9729_v6 = vld [vmem:[#allocation11 + $0x61c] sm:$0xf0]  ;;  %v6648_v8 = vor.u32 %v9537_v63, %v6647_v62  ;;  %v9597_v63 = vld [vmem:[#allocation11 + $0x204] sm:$0xf] }
  0xb8   :  { %v233_v29 = vpop.f32.mrf.mxu0 }
  0xb9   :  { %v234_v30 = vadd.f32 %v233_v29, %v176_v27  ;;  %v246_v31 = vpop.f32.mrf.mxu1  ;;  %v7544_v27 = vor.u32 %v9761_v18, %v7543_v16  ;;  %v7288_v29 = vor.u32 %v9697_v20, %v7287_v19  ;;  %v6841_v16 = vld [vmem:[#allocation11 + $0x1a0] sm:$0xf0] }
  0xba   :  { %v247_v32 = vadd.f32 %v246_v31, %v177_v28  ;;  %v7511_v28 = vld [vmem:[#allocation11 + $0x6c0] sm:$0xf]  ;;  %v9637_v20 = vld [vmem:[#allocation11 + $0x344] sm:$0xf] }
  0xbb   :  { %v250_v34 = vmul.f32 0.2, %v234_v30  ;;  %v7255_v31 = vld [vmem:[#allocation11 + $0x4c0] sm:$0xf]  ;;  %v7068_v25 = vor.u32 %v9637_v20, %v7065_v22  ;;  %v9741_v20 = vld [vmem:[#allocation11 + $0x684] sm:$0xf] }
  0xbc   :  { %v251_v37 = vmul.f32 0.2, %v247_v32 }
  0xbd   :  { %v252_v40 = vmax.f32 %v234_v30, %v250_v34  ;;  %v9753_v30 = vld [vmem:[#allocation11 + $0x6dc] sm:$0xf0] }
  0xbe   :  { %v253_v44 = vmax.f32 %v247_v32, %v251_v37  ;;  %v9689_v32 = vld [vmem:[#allocation11 + $0x4dc] sm:$0xf0]  ;;  %v7512_v39 = vor.u32 %v9753_v30, %v7511_v28  ;;  %v7033_v28 = vld [vmem:[#allocation11 + $0x320] sm:$0xf0] }
  0xbf   :  { %v10621_v45 = vpack.c.bf16 %v252_v40, %v252_v40  ;;  %v6967_v34 = vld [vmem:[#allocation11 + $0x280] sm:$0xf]  ;;  %v7256_v41 = vor.u32 %v9689_v32, %v7255_v31  ;;  %v9621_v30 = vld [vmem:[#allocation11 + $0x2c4] sm:$0xf] }
  0xc0   :  { %v10623_v50 = vpack.c.bf16 %v253_v44, %v253_v44  ;;  %v235_v51 = vpop.f32.mrf.mxu0  ;;  %v6711_v37 = vld [vmem:[#allocation11 + $0x80] sm:$0xf]  ;;  %v7001_v31 = vld [vmem:[#allocation11 + $0x2e0] sm:$0xf0] }
  0xc1   :  { %v248_v57 = vpop.f32.mrf.mxu1  ;;  %658 = vmatmul.bf16.vlgmr.msra.gmra.mxu2 %v10621_v45  ;;  %684 = vmatmul.bf16.vlgmr.msrb.gmra.mxu0 %v10621_v45  ;;  %v7479_v40 = vld [vmem:[#allocation11 + $0x680] sm:$0xf]  ;;  %v7004_v32 = vor.u32 %v9621_v30, %v7001_v31  ;;  %v7225_v30 = vld [vmem:[#allocation11 + $0x4a0] sm:$0xf0] }
  0xc2   :  { %671 = vmatmul.bf16.vlgmr.msra.gmra.mxu3 %v10623_v50  ;;  %697 = vmatmul.bf16.vlgmr.msrb.gmra.mxu1 %v10623_v50  ;;  %v9681_v44 = vld [vmem:[#allocation11 + $0x49c] sm:$0xf0]  ;;  %v7480_v53 = vor.u32 %v9745_v42, %v7479_v40  ;;  %v7609_v40 = vld [vmem:[#allocation11 + $0x7a0] sm:$0xf0] }
  0xc3   :  { %2333 = vmatpush.bf16.msra.mxu3 %v7128_v46  ;;  %2320 = vmatpush.bf16.msra.mxu2 %v6872_v49  ;;  %v6968_v46 = vor.u32 %v9617_v35, %v6967_v34  ;;  %v6712_v49 = vor.u32 %v9553_v38, %v6711_v37  ;;  %v6679_v51 = vld [vmem:[#allocation11 + $0x40] sm:$0xf]  ;;  %v6777_v34 = vld [vmem:[#allocation11 + $0x120] sm:$0xf0] }
  0xc4   :  { %2359 = vmatpush.bf16.msrb.mxu1 %v7640_v54  ;;  %2346 = vmatpush.bf16.msrb.mxu0 %v7384_v56  ;;  %v7447_v54 = vld [vmem:[#allocation11 + $0x640] sm:$0xf]  ;;  %v6680_v60 = vor.u32 %v9545_v52, %v6679_v51  ;;  %v6969_v37 = vld [vmem:[#allocation11 + $0x2a0] sm:$0xf0] }
  0xc5   :  { %v7191_v56 = vld [vmem:[#allocation11 + $0x440] sm:$0xf]  ;;  %v9773_v38 = vld [vmem:[#allocation11 + $0x784] sm:$0xf] }
  0xc6   :  { %v9673_v57 = vld [vmem:[#allocation11 + $0x45c] sm:$0xf0]  ;;  %v7385_v51 = vld [vmem:[#allocation11 + $0x5e0] sm:$0xf0] }
  0xc7   :  { %2334 = vmatpush.bf16.msra.mxu3 %v7096_v61  ;;  %2321 = vmatpush.bf16.msra.mxu2 %v6840_v0  ;;  %v9653_v61 = vld [vmem:[#allocation11 + $0x3c4] sm:$0xf]  ;;  %v7448_v0 = vor.u32 %v9737_v55, %v7447_v54  ;;  %v7192_v1 = vor.u32 %v9673_v57, %v7191_v56  ;;  %v9665_v42 = vld [vmem:[#allocation11 + $0x41c] sm:$0xf0]  ;;  %v7388_v52 = vor.u32 %v9717_v48, %v7385_v51  ;;  %v7135_v51 = vld [vmem:[#allocation11 + $0x3c8] sm:$0xf] }
  0xc8   :  { %2360 = vmatpush.bf16.msrb.mxu1 %v7608_v3  ;;  %2347 = vmatpush.bf16.msrb.mxu0 %v7352_v5  ;;  %v9589_v3 = vld [vmem:[#allocation11 + $0x1c4] sm:$0xf]  ;;  %v7415_v5 = vld [vmem:[#allocation11 + $0x600] sm:$0xf]  ;;  %v7132_v11 = vor.u32 %v9653_v61, %v7129_v2 }
  0xc9   :  { %v6876_v13 = vor.u32 %v9589_v3, %v6873_v4  ;;  %v6937_v54 = vld [vmem:[#allocation11 + $0x260] sm:$0xf0] }
  0xca   :  { %v7577_v56 = vld [vmem:[#allocation11 + $0x760] sm:$0xf0] }
  0xcb   :  { %2335 = vmatpush.bf16.msra.mxu3 %v7064_v9  ;;  %2322 = vmatpush.bf16.msra.mxu2 %v6808_v12  ;;  %v9781_v9 = vld [vmem:[#allocation11 + $0x7c4] sm:$0xf] }
  0xcc   :  { %2361 = vmatpush.bf16.msrb.mxu1 %v7576_v15  ;;  %2348 = vmatpush.bf16.msrb.mxu0 %v7320_v17  ;;  %v9645_v12 = vld [vmem:[#allocation11 + $0x384] sm:$0xf]  ;;  %v7416_v17 = vor.u32 %v9729_v6, %v7415_v5  ;;  %v7644_v18 = vor.u32 %v9781_v9, %v7641_v10 }
  0xcd   :  { %v9581_v15 = vld [vmem:[#allocation11 + $0x184] sm:$0xf]  ;;  %v7100_v19 = vor.u32 %v9645_v12, %v7097_v14 }
  0xce   :  { %v7353_v61 = vld [vmem:[#allocation11 + $0x5a0] sm:$0xf0] }
  0xcf   :  { %2336 = vmatpush.bf16.msra.mxu3 %v7032_v21  ;;  %2323 = vmatpush.bf16.msra.mxu2 %v6776_v24  ;;  %v6844_v21 = vor.u32 %v9581_v15, %v6841_v16  ;;  %v6809_v24 = vld [vmem:[#allocation11 + $0x160] sm:$0xf0] }
  0xd0   :  { %2362 = vmatpush.bf16.msrb.mxu1 %v7544_v27  ;;  %2349 = vmatpush.bf16.msrb.mxu0 %v7288_v29  ;;  %v6812_v26 = vor.u32 %v9573_v23, %v6809_v24  ;;  %v9629_v27 = vld [vmem:[#allocation11 + $0x304] sm:$0xf] }
  0xd1   :  { %710 = vmatmul.bf16.vlgmr.msrb.gmra.mxu2 %v10621_v45  ;;  %736 = vmatmul.bf16.vlgmr.msra.gmra.mxu0 %v10621_v45  ;;  %v7224_v45 = vor.u32 %v9681_v44, %v7223_v43  ;;  %v7036_v29 = vor.u32 %v9629_v27, %v7033_v28  ;;  %v7612_v43 = vor.u32 %v9773_v38, %v7609_v40  ;;  %v7545_v3 = vld [vmem:[#allocation11 + $0x720] sm:$0xf0] }
  0xd2   :  { %723 = vmatmul.bf16.vlgmr.msrb.gmra.mxu3 %v10623_v50  ;;  %749 = vmatmul.bf16.vlgmr.msra.gmra.mxu1 %v10623_v50  ;;  %v6903_v50 = vld [vmem:[#allocation11 + $0x200] sm:$0xf]  ;;  %v9541_v5 = vld [vmem:[#allocation11 + $0x44] sm:$0xf] }
  0xd3   :  { %2337 = vmatpush.bf16.msra.mxu3 %v7000_v33  ;;  %2324 = vmatpush.bf16.msra.mxu2 %v6744_v36  ;;  %v6904_v7 = vor.u32 %v9601_v59, %v6903_v50  ;;  %v9565_v33 = vld [vmem:[#allocation11 + $0x104] sm:$0xf] }
  0xd4   :  { %2363 = vmatpush.bf16.msrb.mxu1 %v7512_v39  ;;  %2350 = vmatpush.bf16.msrb.mxu0 %v7256_v41  ;;  %v6780_v35 = vor.u32 %v9565_v33, %v6777_v34  ;;  %v9613_v36 = vld [vmem:[#allocation11 + $0x284] sm:$0xf]  ;;  %v7159_v41 = vld [vmem:[#allocation11 + $0x400] sm:$0xf] }
  0xd5   :  { %v6972_v39 = vor.u32 %v9613_v36, %v6969_v37  ;;  %v7160_v44 = vor.u32 %v9665_v42, %v7159_v41  ;;  %v6713_v50 = vld [vmem:[#allocation11 + $0xa0] sm:$0xf0] }
  0xd6   :  { %v6681_v6 = vld [vmem:[#allocation11 + $0x60] sm:$0xf0] }
  0xd7   :  { %2338 = vmatpush.bf16.msra.mxu3 %v6968_v46  ;;  %2325 = vmatpush.bf16.msra.mxu2 %v6712_v49  ;;  %v9557_v46 = vld [vmem:[#allocation11 + $0xc4] sm:$0xf] }
  0xd8   :  { %2364 = vmatpush.bf16.msrb.mxu1 %v7480_v53  ;;  %2351 = vmatpush.bf16.msrb.mxu0 %v7224_v45  ;;  %v6748_v49 = vor.u32 %v9557_v46, %v6745_v47  ;;  %v9605_v53 = vld [vmem:[#allocation11 + $0x244] sm:$0xf] }
  0xd9   :  { %v9765_v45 = vld [vmem:[#allocation11 + $0x744] sm:$0xf]  ;;  %v6940_v55 = vor.u32 %v9605_v53, %v6937_v54 }
  0xda   :  { %v7580_v57 = vor.u32 %v9765_v45, %v7577_v56  ;;  %v7321_v9 = vld [vmem:[#allocation11 + $0x560] sm:$0xf0] }
  0xdb   :  { %2339 = vmatpush.bf16.msra.mxu3 %v6936_v58  ;;  %2326 = vmatpush.bf16.msra.mxu2 %v6680_v60  ;;  %v9549_v58 = vld [vmem:[#allocation11 + $0x84] sm:$0xf] }
  0xdc   :  { %2365 = vmatpush.bf16.msrb.mxu1 %v7448_v0  ;;  %2352 = vmatpush.bf16.msrb.mxu0 %v7192_v1  ;;  %v6716_v59 = vor.u32 %v9549_v58, %v6713_v50  ;;  %v9709_v60 = vld [vmem:[#allocation11 + $0x584] sm:$0xf] }
  0xdd   :  { %v7356_v62 = vor.u32 %v9709_v60, %v7353_v61  ;;  %v6905_v0 = vld [vmem:[#allocation11 + $0x220] sm:$0xf0]  ;;  %v7103_v60 = vld [vmem:[#allocation11 + $0x388] sm:$0xf] }
  0xde   :  { %v9757_v1 = vld [vmem:[#allocation11 + $0x704] sm:$0xf]  ;;  %v6908_v2 = vor.u32 %v9597_v63, %v6905_v0  ;;  %v9650_v61 = vld [vmem:[#allocation11 + $0x3a4] sm:$0xf0] }
  0xdf   :  { %2340 = vmatpush.bf16.msra.mxu3 %v6904_v7  ;;  %2327 = vmatpush.bf16.msra.mxu2 %v6648_v8  ;;  %v7548_v4 = vor.u32 %v9757_v1, %v7545_v3  ;;  %v9701_v7 = vld [vmem:[#allocation11 + $0x544] sm:$0xf]  ;;  %v6684_v8 = vor.u32 %v9541_v5, %v6681_v6  ;;  %v6879_v63 = vld [vmem:[#allocation11 + $0x1c8] sm:$0xf]  ;;  %v7104_v1 = vor.u32 %v9650_v61, %v7103_v60 }
  0xe0   :  { %2366 = vmatpush.bf16.msrb.mxu1 %v7416_v17  ;;  %2353 = vmatpush.bf16.msrb.mxu0 %v7160_v44  ;;  %v7324_v10 = vor.u32 %v9701_v7, %v7321_v9  ;;  %v7513_v12 = vld [vmem:[#allocation11 + $0x6e0] sm:$0xf0]  ;;  %v9594_v0 = vld [vmem:[#allocation11 + $0x1e4] sm:$0xf0] }
  0xe1   :  { %v9533_v14 = vld [vmem:[#allocation11 + $0x4] sm:$0xf]  ;;  %v9642_v5 = vld [vmem:[#allocation11 + $0x364] sm:$0xf0]  ;;  %v6880_v7 = vor.u32 %v9594_v0, %v6879_v63 }
  0xe2   :  { %v6649_v15 = vld [vmem:[#allocation11 + $0x20] sm:$0xf0]  ;;  %v6719_v63 = vld [vmem:[#allocation11 + $0x88] sm:$0xf] }
  0xe3   :  { %2385 = vmatpush.bf16.msrb.mxu3 %v7132_v11  ;;  %2372 = vmatpush.bf16.msrb.mxu2 %v6876_v13  ;;  %v9749_v11 = vld [vmem:[#allocation11 + $0x6c4] sm:$0xf]  ;;  %v6652_v17 = vor.u32 %v9533_v14, %v6649_v15 }
  0xe4   :  { %2411 = vmatpush.bf16.msra.mxu1 %v7644_v18  ;;  %2398 = vmatpush.bf16.msra.mxu0 %v7388_v52  ;;  %v7516_v13 = vor.u32 %v9749_v11, %v7513_v12  ;;  %v9693_v16 = vld [vmem:[#allocation11 + $0x504] sm:$0xf]  ;;  %v9658_v52 = vld [vmem:[#allocation11 + $0x3e4] sm:$0xf0] }
  0xe5   :  { %v7289_v18 = vld [vmem:[#allocation11 + $0x520] sm:$0xf0]  ;;  %v9586_v11 = vld [vmem:[#allocation11 + $0x1a4] sm:$0xf0] }
  0xe6   :  { %v9685_v23 = vld [vmem:[#allocation11 + $0x4c4] sm:$0xf] }
  0xe7   :  { %2386 = vmatpush.bf16.msrb.mxu3 %v7100_v19  ;;  %2373 = vmatpush.bf16.msrb.mxu2 %v6844_v21  ;;  %v7292_v19 = vor.u32 %v9693_v16, %v7289_v18  ;;  %v7481_v21 = vld [vmem:[#allocation11 + $0x6a0] sm:$0xf0]  ;;  %v7039_v16 = vld [vmem:[#allocation11 + $0x308] sm:$0xf] }
  0xe8   :  { %2412 = vmatpush.bf16.msra.mxu1 %v7612_v43  ;;  %2399 = vmatpush.bf16.msra.mxu0 %v7356_v62  ;;  %v7484_v22 = vor.u32 %v9741_v20, %v7481_v21  ;;  %v7257_v24 = vld [vmem:[#allocation11 + $0x4e0] sm:$0xf0]  ;;  %v6815_v21 = vld [vmem:[#allocation11 + $0x148] sm:$0xf] }
  0xe9   :  { %v7449_v27 = vld [vmem:[#allocation11 + $0x660] sm:$0xf0] }
  0xea   :  { %v7417_v33 = vld [vmem:[#allocation11 + $0x620] sm:$0xf0] }
  0xeb   :  { %2387 = vmatpush.bf16.msrb.mxu3 %v7068_v25  ;;  %2374 = vmatpush.bf16.msrb.mxu2 %v6812_v26  ;;  %v7260_v25 = vor.u32 %v9685_v23, %v7257_v24  ;;  %v9733_v26 = vld [vmem:[#allocation11 + $0x644] sm:$0xf]  ;;  %v7007_v24 = vld [vmem:[#allocation11 + $0x2c8] sm:$0xf] }
  0xec   :  { %2413 = vmatpush.bf16.msra.mxu1 %v7580_v57  ;;  %2400 = vmatpush.bf16.msra.mxu0 %v7324_v10  ;;  %v7452_v28 = vor.u32 %v9733_v26, %v7449_v27  ;;  %v9669_v36 = vld [vmem:[#allocation11 + $0x444] sm:$0xf]  ;;  %v7136_v57 = vor.u32 %v9658_v52, %v7135_v51  ;;  %v6847_v10 = vld [vmem:[#allocation11 + $0x188] sm:$0xf] }
  0xed   :  { %v7193_v37 = vld [vmem:[#allocation11 + $0x460] sm:$0xf0]  ;;  %v6848_v18 = vor.u32 %v9586_v11, %v6847_v10  ;;  %v7647_v27 = vld [vmem:[#allocation11 + $0x7c8] sm:$0xf] }
  0xee   :  { %v7196_v38 = vor.u32 %v9669_v36, %v7193_v37  ;;  %v9661_v40 = vld [vmem:[#allocation11 + $0x404] sm:$0xf]  ;;  %v9570_v36 = vld [vmem:[#allocation11 + $0x124] sm:$0xf0] }
  0xef   :  { %2388 = vmatpush.bf16.msrb.mxu3 %v7036_v29  ;;  %2375 = vmatpush.bf16.msrb.mxu2 %v6780_v35  ;;  %v9677_v29 = vld [vmem:[#allocation11 + $0x484] sm:$0xf]  ;;  %v10633_v35 = vld [vmem:[#allocation10] sm:$0xf]  ;;  %v7391_v52 = vld [vmem:[#allocation11 + $0x5c8] sm:$0xf] }
  0xf0   :  { %2414 = vmatpush.bf16.msra.mxu1 %v7548_v4  ;;  %2401 = vmatpush.bf16.msra.mxu0 %v7292_v19  ;;  %v7228_v31 = vor.u32 %v9677_v29, %v7225_v30  ;;  %v7161_v41 = vld [vmem:[#allocation11 + $0x420] sm:$0xf0]  ;;  %v322_v48 = vperm.slane %v10633_v35, 0  ;;  %v325_v3 = vperm.slane %v10633_v35, 3  ;;  %v7071_v4 = vld [vmem:[#allocation11 + $0x348] sm:$0xf] }
  0xf1   :  { %v7164_v42 = vor.u32 %v9661_v40, %v7161_v41  ;;  %v324_v20 = vperm.slane %v10633_v35, 2  ;;  %v7551_v10 = vld [vmem:[#allocation11 + $0x708] sm:$0xf] }
  0xf2   :  { %v9762_v11 = vld [vmem:[#allocation11 + $0x724] sm:$0xf0] }
  0xf3   :  { %2389 = vmatpush.bf16.msrb.mxu3 %v7004_v32  ;;  %2376 = vmatpush.bf16.msrb.mxu2 %v6748_v49  ;;  %v9725_v32 = vld [vmem:[#allocation11 + $0x604] sm:$0xf] }
  0xf4   :  { %2415 = vmatpush.bf16.msra.mxu1 %v7516_v13  ;;  %2402 = vmatpush.bf16.msra.mxu0 %v7260_v25  ;;  %v7420_v34 = vor.u32 %v9725_v32, %v7417_v33  ;;  %v7072_v13 = vor.u32 %v9642_v5, %v7071_v4  ;;  %v9626_v25 = vld [vmem:[#allocation11 + $0x2e4] sm:$0xf0] }
  0xf5   :  { %v9714_v4 = vld [vmem:[#allocation11 + $0x5a4] sm:$0xf0] }
  0xf7   :  { %2390 = vmatpush.bf16.msrb.mxu3 %v6972_v39  ;;  %2377 = vmatpush.bf16.msrb.mxu2 %v6716_v59  ;;  %v323_v39 = vperm.slane %v10633_v35, 1  ;;  %v7008_v35 = vor.u32 %v9626_v25, %v7007_v24  ;;  %v9754_v24 = vld [vmem:[#allocation11 + $0x6e4] sm:$0xf0] }
  0xf8   :  { %2416 = vmatpush.bf16.msra.mxu1 %v7484_v22  ;;  %2403 = vmatpush.bf16.msra.mxu0 %v7228_v31  ;;  %v9578_v22 = vld [vmem:[#allocation11 + $0x164] sm:$0xf0] }
  0xf9   :  { %v6816_v30 = vor.u32 %v9578_v22, %v6815_v21  ;;  %v7552_v21 = vor.u32 %v9762_v11, %v7551_v10  ;;  %v7199_v10 = vld [vmem:[#allocation11 + $0x448] sm:$0xf] }
  0xfa   :  { %v9674_v11 = vld [vmem:[#allocation11 + $0x464] sm:$0xf0] }
  0xfb   :  { %2391 = vmatpush.bf16.msrb.mxu3 %v6940_v55  ;;  %2378 = vmatpush.bf16.msrb.mxu2 %v6684_v8 }
  0xfc   :  { %2417 = vmatpush.bf16.msra.mxu1 %v7452_v28  ;;  %2404 = vmatpush.bf16.msra.mxu0 %v7196_v38  ;;  %v9786_v28 = vld [vmem:[#allocation11 + $0x7e4] sm:$0xf0] }
  0xfd   :  { %v7648_v38 = vor.u32 %v9786_v28, %v7647_v27  ;;  %v9646_v27 = vld [vmem:[#allocation11 + $0x38c] sm:$0xf] }
  0xfe   :  { %v7105_v28 = vld [vmem:[#allocation11 + $0x3a8] sm:$0xf0] }
  0xff   :  { %2392 = vmatpush.bf16.msrb.mxu3 %v6908_v2  ;;  %2379 = vmatpush.bf16.msrb.mxu2 %v6652_v17  ;;  %v9634_v17 = vld [vmem:[#allocation11 + $0x324] sm:$0xf0] }
 0x100   :  { %2418 = vmatpush.bf16.msra.mxu1 %v7420_v34  ;;  %2405 = vmatpush.bf16.msra.mxu0 %v7164_v42  ;;  %v7040_v23 = vor.u32 %v9634_v17, %v7039_v16  ;;  %v6783_v34 = vld [vmem:[#allocation11 + $0x108] sm:$0xf] }
 0x101   :  { %v6687_v16 = vld [vmem:[#allocation11 + $0x48] sm:$0xf] }
 0x102   :  { %v9546_v17 = vld [vmem:[#allocation11 + $0x64] sm:$0xf0] }
 0x103   :  { %v6688_v25 = vor.u32 %v9546_v17, %v6687_v16  ;;  %v9614_v17 = vld [vmem:[#allocation11 + $0x28c] sm:$0xf] }
 0x13e   :  { %v685_v43 = vpop.f32.mrf.mxu0 }
 0x13f   :  { %v686_v44 = vadd.f32 %v685_v43, %v323_v39  ;;  %v698_v46 = vpop.f32.mrf.mxu1  ;;  %v6975_v39 = vld [vmem:[#allocation11 + $0x288] sm:$0xf] }
 0x140   :  { %v9618_v43 = vld [vmem:[#allocation11 + $0x2a4] sm:$0xf0] }
 0x141   :  { %v699_v47 = vadd.f32 %v698_v46, %v686_v44  ;;  %v7615_v44 = vld [vmem:[#allocation11 + $0x788] sm:$0xf] }
 0x142   :  { %v9778_v46 = vld [vmem:[#allocation11 + $0x7a4] sm:$0xf0] }
 0x143   :  { %v755_v49 = vmul.f32 0.2, %v699_v47 }
 0x144   :  { %v659_v53 = vpop.f32.mrf.mxu2 }
 0x145   :  { %v759_v54 = vmax.f32 %v699_v47, %v755_v49  ;;  %v660_v45 = vadd.f32 %v659_v53, %v322_v48  ;;  %v672_v55 = vpop.f32.mrf.mxu3  ;;  %v6784_v47 = vor.u32 %v9570_v36, %v6783_v34  ;;  %v6751_v48 = vld [vmem:[#allocation11 + $0xc8] sm:$0xf]  ;;  %v9590_v34 = vld [vmem:[#allocation11 + $0x1cc] sm:$0xf] }
 0x146   :  { %v687_v56 = vpop.f32.mrf.mxu0  ;;  %v9562_v49 = vld [vmem:[#allocation11 + $0xe4] sm:$0xf0]  ;;  %v6881_v36 = vld [vmem:[#allocation11 + $0x1e8] sm:$0xf0] }
 0x147   :  { %v10637_v58 = vpack.c.bf16 %v759_v54, %v759_v54  ;;  %v673_v50 = vadd.f32 %v672_v55, %v660_v45  ;;  %v700_v59 = vpop.f32.mrf.mxu1  ;;  %v9722_v53 = vld [vmem:[#allocation11 + $0x5e4] sm:$0xf0]  ;;  %v6976_v54 = vor.u32 %v9618_v43, %v6975_v39  ;;  %v7616_v45 = vor.u32 %v9778_v46, %v7615_v44  ;;  %v7073_v43 = vld [vmem:[#allocation11 + $0x368] sm:$0xf0] }
 0x148   :  { %v6943_v55 = vld [vmem:[#allocation11 + $0x248] sm:$0xf]  ;;  %v6752_v61 = vor.u32 %v9562_v49, %v6751_v48  ;;  %v6884_v44 = vor.u32 %v9590_v34, %v6881_v36  ;;  %v9582_v49 = vld [vmem:[#allocation11 + $0x18c] sm:$0xf] }
 0x149   :  { %v754_v62 = vmul.f32 0.2, %v673_v50  ;;  %2341 = vmatmul.bf16.vlgmr.msra.gmra.mxu3 %v10637_v58  ;;  %v9770_v59 = vld [vmem:[#allocation11 + $0x764] sm:$0xf0]  ;;  %v9766_v34 = vld [vmem:[#allocation11 + $0x74c] sm:$0xf] }
 0x14a   :  { %2437 = vmatpush.bf16.msra.mxu3 %v7136_v57  ;;  %v9610_v57 = vld [vmem:[#allocation11 + $0x264] sm:$0xf0]  ;;  %v7585_v36 = vld [vmem:[#allocation11 + $0x768] sm:$0xf0] }
 0x14b   :  { %v758_v2 = vmax.f32 %v673_v50, %v754_v62  ;;  %v7583_v50 = vld [vmem:[#allocation11 + $0x748] sm:$0xf]  ;;  %v7392_v62 = vor.u32 %v9722_v53, %v7391_v52  ;;  %v6944_v5 = vor.u32 %v9610_v57, %v6943_v55  ;;  %v9630_v55 = vld [vmem:[#allocation11 + $0x30c] sm:$0xf] }
 0x14c   :  { %v661_v6 = vpop.f32.mrf.mxu2  ;;  %v7263_v46 = vld [vmem:[#allocation11 + $0x4c8] sm:$0xf] }
 0x14d   :  { %v10641_v8 = vpack.c.bf16 %v758_v2, %v758_v2  ;;  %v674_v9 = vpop.f32.mrf.mxu3  ;;  %v9554_v2 = vld [vmem:[#allocation11 + $0xa4] sm:$0xf0]  ;;  %v7584_v6 = vor.u32 %v9770_v59, %v7583_v50 }
 0x14e   :  { %2438 = vmatpush.bf16.msra.mxu3 %v7104_v1  ;;  %v737_v12 = vpop.f32.mrf.mxu0  ;;  %v9602_v9 = vld [vmem:[#allocation11 + $0x224] sm:$0xf0] }
 0x14f   :  { %v738_v14 = vadd.f32 %v737_v12, %v325_v3  ;;  %v750_v15 = vpop.f32.mrf.mxu1  ;;  %2328 = vmatmul.bf16.vlgmr.msra.gmra.mxu2 %v10641_v8  ;;  %v7359_v3 = vld [vmem:[#allocation11 + $0x588] sm:$0xf]  ;;  %v6720_v12 = vor.u32 %v9554_v2, %v6719_v63 }
 0x150   :  { %2424 = vmatpush.bf16.msra.mxu2 %v6880_v7  ;;  %v6911_v7 = vld [vmem:[#allocation11 + $0x208] sm:$0xf] }
 0x151   :  { %v751_v19 = vadd.f32 %v750_v15, %v738_v14  ;;  %v9654_v14 = vld [vmem:[#allocation11 + $0x3cc] sm:$0xf]  ;;  %v7455_v53 = vld [vmem:[#allocation11 + $0x648] sm:$0xf] }
 0x152   :  { %2439 = vmatpush.bf16.msra.mxu3 %v7072_v13  ;;  %v7360_v13 = vor.u32 %v9714_v4, %v7359_v3  ;;  %v7137_v15 = vld [vmem:[#allocation11 + $0x3e8] sm:$0xf0]  ;;  %v7231_v50 = vld [vmem:[#allocation11 + $0x488] sm:$0xf] }
 0x153   :  { %v757_v26 = vmul.f32 0.2, %v751_v19  ;;  %v7140_v22 = vor.u32 %v9654_v14, %v7137_v15  ;;  %v9682_v59 = vld [vmem:[#allocation11 + $0x4a4] sm:$0xf0]  ;;  %v9622_v3 = vld [vmem:[#allocation11 + $0x2cc] sm:$0xf] }
 0x154   :  { %2425 = vmatpush.bf16.msra.mxu2 %v6848_v18  ;;  %v711_v29 = vpop.f32.mrf.mxu2  ;;  %v7327_v18 = vld [vmem:[#allocation11 + $0x548] sm:$0xf]  ;;  %v7232_v4 = vor.u32 %v9682_v59, %v7231_v50  ;;  %v6785_v14 = vld [vmem:[#allocation11 + $0x128] sm:$0xf0] }
 0x155   :  { %v761_v31 = vmax.f32 %v751_v19, %v757_v26  ;;  %v712_v32 = vadd.f32 %v711_v29, %v324_v20  ;;  %v724_v33 = vpop.f32.mrf.mxu3  ;;  %v9706_v19 = vld [vmem:[#allocation11 + $0x564] sm:$0xf0]  ;;  %v6912_v20 = vor.u32 %v9602_v9, %v6911_v7  ;;  %v7649_v7 = vld [vmem:[#allocation11 + $0x7e8] sm:$0xf0] }
 0x156   :  { %2440 = vmatpush.bf16.msra.mxu3 %v7040_v23  ;;  %v739_v37 = vpop.f32.mrf.mxu0  ;;  %v7519_v23 = vld [vmem:[#allocation11 + $0x6c8] sm:$0xf]  ;;  %v7328_v26 = vor.u32 %v9706_v19, %v7327_v18  ;;  %v7200_v18 = vor.u32 %v9674_v11, %v7199_v10  ;;  %v6977_v19 = vld [vmem:[#allocation11 + $0x2a8] sm:$0xf0]  ;;  %v6887_v10 = vld [vmem:[#allocation11 + $0x1d0] sm:$0xf] }
 0x157   :  { %v10645_v40 = vpack.c.bf16 %v761_v31, %v761_v31  ;;  %v725_v41 = vadd.f32 %v724_v33, %v712_v32  ;;  %v752_v42 = vpop.f32.mrf.mxu1  ;;  %v6655_v29 = vld [vmem:[#allocation11 + $0x8] sm:$0xf]  ;;  %v7520_v33 = vor.u32 %v9754_v24, %v7519_v23  ;;  %v7108_v37 = vor.u32 %v9646_v27, %v7105_v28  ;;  %v9718_v27 = vld [vmem:[#allocation11 + $0x5cc] sm:$0xf]  ;;  %v9595_v11 = vld [vmem:[#allocation11 + $0x1ec] sm:$0xf0] }
 0x158   :  { %2426 = vmatpush.bf16.msra.mxu2 %v6816_v30  ;;  %v9538_v30 = vld [vmem:[#allocation11 + $0x24] sm:$0xf0]  ;;  %v9638_v42 = vld [vmem:[#allocation11 + $0x34c] sm:$0xf] }
 0x159   :  { %v756_v51 = vmul.f32 0.2, %v725_v41  ;;  %2367 = vmatmul.bf16.vlgmr.msrb.gmra.mxu1 %v10645_v40  ;;  %2393 = vmatmul.bf16.vlgmr.msrb.gmra.mxu3 %v10637_v58  ;;  %v7295_v31 = vld [vmem:[#allocation11 + $0x508] sm:$0xf]  ;;  %v6656_v39 = vor.u32 %v9538_v30, %v6655_v29  ;;  %v7076_v52 = vor.u32 %v9638_v42, %v7073_v43  ;;  %v7393_v28 = vld [vmem:[#allocation11 + $0x5e8] sm:$0xf0]  ;;  %v6980_v29 = vor.u32 %v9614_v17, %v6977_v19 }
 0x15a   :  { %2441 = vmatpush.bf16.msra.mxu3 %v7008_v35  ;;  %2463 = vmatpush.bf16.msrb.mxu1 %v7648_v38  ;;  %v9698_v32 = vld [vmem:[#allocation11 + $0x524] sm:$0xf0]  ;;  %v7361_v42 = vld [vmem:[#allocation11 + $0x5a8] sm:$0xf0]  ;;  %v7079_v17 = vld [vmem:[#allocation11 + $0x350] sm:$0xf]  ;;  %v6888_v19 = vor.u32 %v9595_v11, %v6887_v10 }
 0x15b   :  { %v760_v56 = vmax.f32 %v725_v41, %v756_v51  ;;  %v7487_v35 = vld [vmem:[#allocation11 + $0x688] sm:$0xf]  ;;  %v7296_v41 = vor.u32 %v9698_v32, %v7295_v31  ;;  %v6849_v51 = vld [vmem:[#allocation11 + $0x1a8] sm:$0xf0] }
 0x15c   :  { %2427 = vmatpush.bf16.msra.mxu2 %v6784_v47  ;;  %v713_v60 = vpop.f32.mrf.mxu2  ;;  %v9746_v38 = vld [vmem:[#allocation11 + $0x6a4] sm:$0xf0]  ;;  %v6852_v57 = vor.u32 %v9582_v49, %v6849_v51  ;;  %v9606_v31 = vld [vmem:[#allocation11 + $0x24c] sm:$0xf] }
 0x15d   :  { %v10649_v0 = vpack.c.bf16 %v760_v56, %v760_v56  ;;  %v726_v1 = vpop.f32.mrf.mxu3  ;;  %v9690_v47 = vld [vmem:[#allocation11 + $0x4e4] sm:$0xf0]  ;;  %v7488_v48 = vor.u32 %v9746_v38, %v7487_v35  ;;  %v7041_v56 = vld [vmem:[#allocation11 + $0x328] sm:$0xf0]  ;;  %v7396_v35 = vor.u32 %v9718_v27, %v7393_v28 }
 0x15e   :  { %2442 = vmatpush.bf16.msra.mxu3 %v6976_v54  ;;  %2464 = vmatpush.bf16.msrb.mxu1 %v7616_v45  ;;  %v9738_v54 = vld [vmem:[#allocation11 + $0x664] sm:$0xf0]  ;;  %v7264_v45 = vor.u32 %v9690_v47, %v7263_v46  ;;  %v7044_v63 = vor.u32 %v9630_v55, %v7041_v56  ;;  %v9550_v38 = vld [vmem:[#allocation11 + $0x8c] sm:$0xf] }
 0x15f   :  { %2354 = vmatmul.bf16.vlgmr.msrb.gmra.mxu0 %v10649_v0  ;;  %2380 = vmatmul.bf16.vlgmr.msrb.gmra.mxu2 %v10641_v8  ;;  %v7456_v60 = vor.u32 %v9738_v54, %v7455_v53  ;;  %v7423_v1 = vld [vmem:[#allocation11 + $0x608] sm:$0xf]  ;;  %v9598_v46 = vld [vmem:[#allocation11 + $0x20c] sm:$0xf]  ;;  %v7143_v53 = vld [vmem:[#allocation11 + $0x3d0] sm:$0xf] }
 0x160   :  { %2428 = vmatpush.bf16.msra.mxu2 %v6752_v61  ;;  %2450 = vmatpush.bf16.msrb.mxu0 %v7392_v62  ;;  %v9574_v61 = vld [vmem:[#allocation11 + $0x14c] sm:$0xf]  ;;  %v9730_v2 = vld [vmem:[#allocation11 + $0x624] sm:$0xf0]  ;;  %v9659_v54 = vld [vmem:[#allocation11 + $0x3ec] sm:$0xf0] }
 0x161   :  { %v6817_v62 = vld [vmem:[#allocation11 + $0x168] sm:$0xf0]  ;;  %v7167_v23 = vld [vmem:[#allocation11 + $0x408] sm:$0xf] }
 0x162   :  { %2443 = vmatpush.bf16.msra.mxu3 %v6944_v5  ;;  %2465 = vmatpush.bf16.msrb.mxu1 %v7584_v6  ;;  %v7009_v5 = vld [vmem:[#allocation11 + $0x2e8] sm:$0xf0]  ;;  %v6820_v9 = vor.u32 %v9574_v61, %v6817_v62  ;;  %v9666_v24 = vld [vmem:[#allocation11 + $0x424] sm:$0xf0] }
 0x163   :  { %v9782_v6 = vld [vmem:[#allocation11 + $0x7cc] sm:$0xf]  ;;  %v7012_v15 = vor.u32 %v9622_v3, %v7009_v5  ;;  %v7168_v32 = vor.u32 %v9666_v24, %v7167_v23  ;;  %v9651_v3 = vld [vmem:[#allocation11 + $0x3ac] sm:$0xf0] }
 0x164   :  { %2429 = vmatpush.bf16.msra.mxu2 %v6720_v12  ;;  %2451 = vmatpush.bf16.msrb.mxu0 %v7360_v13  ;;  %v7424_v12 = vor.u32 %v9730_v2, %v7423_v1  ;;  %v9566_v13 = vld [vmem:[#allocation11 + $0x10c] sm:$0xf]  ;;  %v7652_v16 = vor.u32 %v9782_v6, %v7649_v7  ;;  %v7111_v2 = vld [vmem:[#allocation11 + $0x390] sm:$0xf] }
 0x165   :  { %v6913_v47 = vld [vmem:[#allocation11 + $0x228] sm:$0xf0]  ;;  %v6855_v23 = vld [vmem:[#allocation11 + $0x190] sm:$0xf] }
 0x166   :  { %2444 = vmatpush.bf16.msra.mxu3 %v6912_v20  ;;  %2466 = vmatpush.bf16.msrb.mxu1 %v7552_v21  ;;  %v9774_v20 = vld [vmem:[#allocation11 + $0x78c] sm:$0xf]  ;;  %v6916_v50 = vor.u32 %v9598_v46, %v6913_v47  ;;  %v9587_v24 = vld [vmem:[#allocation11 + $0x1ac] sm:$0xf0] }
 0x167   :  { %v7617_v21 = vld [vmem:[#allocation11 + $0x7a8] sm:$0xf0]  ;;  %v9787_v46 = vld [vmem:[#allocation11 + $0x7ec] sm:$0xf0] }
 0x168   :  { %2430 = vmatpush.bf16.msra.mxu2 %v6688_v25  ;;  %2452 = vmatpush.bf16.msrb.mxu0 %v7328_v26  ;;  %v9558_v25 = vld [vmem:[#allocation11 + $0xcc] sm:$0xf]  ;;  %v7620_v30 = vor.u32 %v9774_v20, %v7617_v21 }
 0x169   :  { %2419 = vmatmul.bf16.vlgmr.msra.gmra.mxu1 %v10645_v40  ;;  %2445 = vmatmul.bf16.vlgmr.msra.gmra.mxu3 %v10637_v58  ;;  %v6753_v26 = vld [vmem:[#allocation11 + $0xe8] sm:$0xf0] }
 0x16a   :  { %2489 = vmatpush.bf16.msrb.mxu3 %v7140_v22  ;;  %2467 = vmatpush.bf16.msrb.mxu1 %v7520_v33  ;;  %v6788_v22 = vor.u32 %v9566_v13, %v6785_v14  ;;  %v6945_v33 = vld [vmem:[#allocation11 + $0x268] sm:$0xf0] }
 0x16b   :  { %v6948_v43 = vor.u32 %v9606_v31, %v6945_v33  ;;  %v7553_v49 = vld [vmem:[#allocation11 + $0x728] sm:$0xf0]  ;;  %v6856_v31 = vor.u32 %v9587_v24, %v6855_v23  ;;  %v9763_v23 = vld [vmem:[#allocation11 + $0x72c] sm:$0xf0] }
 0x16c   :  { %2431 = vmatpush.bf16.msra.mxu2 %v6656_v39  ;;  %2453 = vmatpush.bf16.msrb.mxu0 %v7296_v41  ;;  %v6721_v39 = vld [vmem:[#allocation11 + $0xa8] sm:$0xf0] }
 0x16d   :  { %v9710_v41 = vld [vmem:[#allocation11 + $0x58c] sm:$0xf]  ;;  %v6724_v51 = vor.u32 %v9550_v38, %v6721_v39 }
 0x16e   :  { %2490 = vmatpush.bf16.msrb.mxu3 %v7108_v37  ;;  %2468 = vmatpush.bf16.msrb.mxu1 %v7488_v48  ;;  %v6756_v37 = vor.u32 %v9558_v25, %v6753_v26  ;;  %v9758_v48 = vld [vmem:[#allocation11 + $0x70c] sm:$0xf] }
 0x16f   :  { %2406 = vmatmul.bf16.vlgmr.msra.gmra.mxu0 %v10649_v0  ;;  %2432 = vmatmul.bf16.vlgmr.msra.gmra.mxu2 %v10641_v8  ;;  %v6689_v55 = vld [vmem:[#allocation11 + $0x68] sm:$0xf0]  ;;  %v7556_v59 = vor.u32 %v9758_v48, %v7553_v49 }
 0x170   :  { %2476 = vmatpush.bf16.msrb.mxu2 %v6884_v44  ;;  %2454 = vmatpush.bf16.msrb.mxu0 %v7264_v45  ;;  %v7588_v44 = vor.u32 %v9766_v34, %v7585_v36  ;;  %v9542_v45 = vld [vmem:[#allocation11 + $0x4c] sm:$0xf]  ;;  %v6823_v36 = vld [vmem:[#allocation11 + $0x150] sm:$0xf] }
 0x171   :  { %v9702_v56 = vld [vmem:[#allocation11 + $0x54c] sm:$0xf] }
 0x172   :  { %2491 = vmatpush.bf16.msrb.mxu3 %v7076_v52  ;;  %2469 = vmatpush.bf16.msrb.mxu1 %v7456_v60  ;;  %v7364_v52 = vor.u32 %v9710_v41, %v7361_v42  ;;  %v7144_v60 = vor.u32 %v9659_v54, %v7143_v53  ;;  %v9750_v61 = vld [vmem:[#allocation11 + $0x6cc] sm:$0xf]  ;;  %v7015_v41 = vld [vmem:[#allocation11 + $0x2d0] sm:$0xf] }
 0x173   :  { %v7521_v62 = vld [vmem:[#allocation11 + $0x6e8] sm:$0xf0]  ;;  %v9571_v53 = vld [vmem:[#allocation11 + $0x12c] sm:$0xf0] }
 0x174   :  { %2477 = vmatpush.bf16.msrb.mxu2 %v6852_v57  ;;  %2455 = vmatpush.bf16.msrb.mxu0 %v7232_v4  ;;  %v7329_v57 = vld [vmem:[#allocation11 + $0x568] sm:$0xf0] }
 0x175   :  { %v7332_v1 = vor.u32 %v9702_v56, %v7329_v57  ;;  %v9534_v4 = vld [vmem:[#allocation11 + $0xc] sm:$0xf]  ;;  %v9619_v57 = vld [vmem:[#allocation11 + $0x2ac] sm:$0xf0] }
 0x176   :  { %2492 = vmatpush.bf16.msrb.mxu3 %v7044_v63  ;;  %2470 = vmatpush.bf16.msrb.mxu1 %v7424_v12  ;;  %v6692_v63 = vor.u32 %v9542_v45, %v6689_v55  ;;  %v6657_v5 = vld [vmem:[#allocation11 + $0x28] sm:$0xf0]  ;;  %v7112_v12 = vor.u32 %v9651_v3, %v7111_v2  ;;  %v6983_v55 = vld [vmem:[#allocation11 + $0x290] sm:$0xf] }
 0x177   :  { %v9694_v6 = vld [vmem:[#allocation11 + $0x50c] sm:$0xf]  ;;  %v7399_v2 = vld [vmem:[#allocation11 + $0x5d0] sm:$0xf] }
 0x178   :  { %2478 = vmatpush.bf16.msrb.mxu2 %v6820_v9  ;;  %2456 = vmatpush.bf16.msrb.mxu0 %v7200_v18  ;;  %v7297_v7 = vld [vmem:[#allocation11 + $0x528] sm:$0xf0]  ;;  %v7524_v9 = vor.u32 %v9750_v61, %v7521_v62  ;;  %v9643_v18 = vld [vmem:[#allocation11 + $0x36c] sm:$0xf0] }
 0x179   :  { %2471 = vmatmul.bf16.vlgmr.msrb.gmra.mxu1 %v10645_v40  ;;  %v9742_v13 = vld [vmem:[#allocation11 + $0x68c] sm:$0xf]  ;;  %v7080_v25 = vor.u32 %v9643_v18, %v7079_v17  ;;  %v9723_v3 = vld [vmem:[#allocation11 + $0x5ec] sm:$0xf0] }
 0x17a   :  { %2493 = vmatpush.bf16.msrb.mxu3 %v7012_v15  ;;  %2515 = vmatpush.bf16.msra.mxu1 %v7652_v16  ;;  %v7489_v14 = vld [vmem:[#allocation11 + $0x6a8] sm:$0xf0]  ;;  %v6660_v15 = vor.u32 %v9534_v4, %v6657_v5  ;;  %v7300_v16 = vor.u32 %v9694_v6, %v7297_v7  ;;  %v6984_v4 = vor.u32 %v9619_v57, %v6983_v55  ;;  %v6951_v7 = vld [vmem:[#allocation11 + $0x250] sm:$0xf]  ;;  %v9639_v55 = vld [vmem:[#allocation11 + $0x354] sm:$0xf] }
 0x17b   :  { %v9686_v20 = vld [vmem:[#allocation11 + $0x4cc] sm:$0xf]  ;;  %v7400_v11 = vor.u32 %v9723_v3, %v7399_v2  ;;  %v9715_v17 = vld [vmem:[#allocation11 + $0x5ac] sm:$0xf0]  ;;  %v7081_v57 = vld [vmem:[#allocation11 + $0x370] sm:$0xf0] }
 0x17c   :  { %2479 = vmatpush.bf16.msrb.mxu2 %v6788_v22  ;;  %2457 = vmatpush.bf16.msrb.mxu0 %v7168_v32  ;;  %v7265_v21 = vld [vmem:[#allocation11 + $0x4e8] sm:$0xf0]  ;;  %v7492_v22 = vor.u32 %v9742_v13, %v7489_v14  ;;  %v9771_v13 = vld [vmem:[#allocation11 + $0x76c] sm:$0xf0] }
 0x17d   :  { %v9734_v26 = vld [vmem:[#allocation11 + $0x64c] sm:$0xf]  ;;  %v7268_v28 = vor.u32 %v9686_v20, %v7265_v21  ;;  %v6727_v14 = vld [vmem:[#allocation11 + $0x90] sm:$0xf] }
 0x17e   :  { %2494 = vmatpush.bf16.msrb.mxu3 %v6980_v29  ;;  %2516 = vmatpush.bf16.msra.mxu1 %v7620_v30  ;;  %v7457_v27 = vld [vmem:[#allocation11 + $0x668] sm:$0xf0]  ;;  %v7047_v29 = vld [vmem:[#allocation11 + $0x310] sm:$0xf] }
 0x17f   :  { %2458 = vmatmul.bf16.vlgmr.msrb.gmra.mxu0 %v10649_v0  ;;  %v9635_v30 = vld [vmem:[#allocation11 + $0x32c] sm:$0xf0]  ;;  %v9678_v32 = vld [vmem:[#allocation11 + $0x48c] sm:$0xf]  ;;  %v7460_v34 = vor.u32 %v9734_v26, %v7457_v27  ;;  %v9655_v26 = vld [vmem:[#allocation11 + $0x3d4] sm:$0xf] }
 0x180   :  { %2480 = vmatpush.bf16.msrb.mxu2 %v6756_v37  ;;  %2502 = vmatpush.bf16.msra.mxu0 %v7396_v35  ;;  %v7233_v33 = vld [vmem:[#allocation11 + $0x4a8] sm:$0xf0]  ;;  %v9579_v37 = vld [vmem:[#allocation11 + $0x16c] sm:$0xf0]  ;;  %v7048_v35 = vor.u32 %v9635_v30, %v7047_v29  ;;  %v7145_v27 = vld [vmem:[#allocation11 + $0x3f0] sm:$0xf0] }
 0x181   :  { %v9726_v38 = vld [vmem:[#allocation11 + $0x60c] sm:$0xf]  ;;  %v7236_v42 = vor.u32 %v9678_v32, %v7233_v33  ;;  %v6824_v47 = vor.u32 %v9579_v37, %v6823_v36  ;;  %v9603_v21 = vld [vmem:[#allocation11 + $0x22c] sm:$0xf0] }
 0x182   :  { %2495 = vmatpush.bf16.msrb.mxu3 %v6948_v43  ;;  %2517 = vmatpush.bf16.msra.mxu1 %v7588_v44  ;;  %v7425_v39 = vld [vmem:[#allocation11 + $0x628] sm:$0xf0]  ;;  %v9627_v43 = vld [vmem:[#allocation11 + $0x2ec] sm:$0xf0] }
 0x183   :  { %v7655_v44 = vld [vmem:[#allocation11 + $0x7d0] sm:$0xf]  ;;  %v9670_v48 = vld [vmem:[#allocation11 + $0x44c] sm:$0xf]  ;;  %v7016_v54 = vor.u32 %v9627_v43, %v7015_v41  ;;  %v7113_v41 = vld [vmem:[#allocation11 + $0x3b0] sm:$0xf0] }
 0x184   :  { %2481 = vmatpush.bf16.msrb.mxu2 %v6724_v51  ;;  %2503 = vmatpush.bf16.msra.mxu0 %v7364_v52  ;;  %v7201_v49 = vld [vmem:[#allocation11 + $0x468] sm:$0xf0]  ;;  %v7428_v51 = vor.u32 %v9726_v38, %v7425_v39  ;;  %v6791_v52 = vld [vmem:[#allocation11 + $0x110] sm:$0xf]  ;;  %v7656_v45 = vor.u32 %v9787_v46, %v7655_v44  ;;  %v9647_v39 = vld [vmem:[#allocation11 + $0x394] sm:$0xf] }
 0x185   :  { %v7204_v56 = vor.u32 %v9670_v48, %v7201_v49  ;;  %v9662_v61 = vld [vmem:[#allocation11 + $0x40c] sm:$0xf]  ;;  %v9547_v29 = vld [vmem:[#allocation11 + $0x6c] sm:$0xf0]  ;;  %v6889_v48 = vld [vmem:[#allocation11 + $0x1f0] sm:$0xf0] }
 0x186   :  { %2496 = vmatpush.bf16.msrb.mxu3 %v6916_v50  ;;  %2518 = vmatpush.bf16.msra.mxu1 %v7556_v59  ;;  %v7623_v50 = vld [vmem:[#allocation11 + $0x790] sm:$0xf]  ;;  %v7169_v62 = vld [vmem:[#allocation11 + $0x428] sm:$0xf0] }
 0x187   :  { %v9779_v59 = vld [vmem:[#allocation11 + $0x7ac] sm:$0xf0]  ;;  %v7172_v6 = vor.u32 %v9662_v61, %v7169_v62  ;;  %v6857_v61 = vld [vmem:[#allocation11 + $0x1b0] sm:$0xf0] }
 0x188   :  { %2482 = vmatpush.bf16.msrb.mxu2 %v6692_v63  ;;  %2504 = vmatpush.bf16.msra.mxu0 %v7332_v1  ;;  %v6759_v63 = vld [vmem:[#allocation11 + $0xd0] sm:$0xf]  ;;  %v7624_v5 = vor.u32 %v9779_v59, %v7623_v50 }
 0x189   :  { %2497 = vmatmul.bf16.vlgmr.msrb.gmra.mxu3 %v10637_v58  ;;  %v9563_v1 = vld [vmem:[#allocation11 + $0xec] sm:$0xf0] }
 0x18a   :  { %2541 = vmatpush.bf16.msra.mxu3 %v7144_v60  ;;  %2519 = vmatpush.bf16.msra.mxu1 %v7524_v9  ;;  %v6792_v60 = vor.u32 %v9571_v53, %v6791_v52  ;;  %v9611_v9 = vld [vmem:[#allocation11 + $0x26c] sm:$0xf0]  ;;  %v6760_v10 = vor.u32 %v9563_v1, %v6759_v63  ;;  %v7084_v63 = vor.u32 %v9639_v55, %v7081_v57  ;;  %v7369_v55 = vld [vmem:[#allocation11 + $0x5b0] sm:$0xf0] }
 0x18b   :  { %v6952_v18 = vor.u32 %v9611_v9, %v6951_v7  ;;  %v7335_v30 = vld [vmem:[#allocation11 + $0x550] sm:$0xf]  ;;  %v9599_v57 = vld [vmem:[#allocation11 + $0x214] sm:$0xf] }
 0x18c   :  { %2483 = vmatpush.bf16.msrb.mxu2 %v6660_v15  ;;  %2505 = vmatpush.bf16.msra.mxu0 %v7300_v16  ;;  %v9555_v15 = vld [vmem:[#allocation11 + $0xac] sm:$0xf0] }
 0x18d   :  { %v7367_v16 = vld [vmem:[#allocation11 + $0x590] sm:$0xf]  ;;  %v6728_v24 = vor.u32 %v9555_v15, %v6727_v14 }
 0x18e   :  { %2542 = vmatpush.bf16.msra.mxu3 %v7112_v12  ;;  %2520 = vmatpush.bf16.msra.mxu1 %v7492_v22  ;;  %v7591_v12 = vld [vmem:[#allocation11 + $0x750] sm:$0xf] }
 0x18f   :  { %2484 = vmatmul.bf16.vlgmr.msrb.gmra.mxu2 %v10641_v8  ;;  %v7592_v20 = vor.u32 %v9771_v13, %v7591_v12  ;;  %v7559_v22 = vld [vmem:[#allocation11 + $0x710] sm:$0xf] }
 0x190   :  { %2528 = vmatpush.bf16.msra.mxu2 %v6888_v19  ;;  %2506 = vmatpush.bf16.msra.mxu0 %v7268_v28  ;;  %v6919_v19 = vld [vmem:[#allocation11 + $0x210] sm:$0xf]  ;;  %v7560_v33 = vor.u32 %v9763_v23, %v7559_v22 }
 0x191   :  { %v6695_v28 = vld [vmem:[#allocation11 + $0x50] sm:$0xf]  ;;  %v6920_v32 = vor.u32 %v9603_v21, %v6919_v19  ;;  %v7657_v21 = vld [vmem:[#allocation11 + $0x7f0] sm:$0xf0] }
 0x192   :  { %2543 = vmatpush.bf16.msra.mxu3 %v7080_v25  ;;  %2521 = vmatpush.bf16.msra.mxu1 %v7460_v34  ;;  %v7368_v25 = vor.u32 %v9715_v17, %v7367_v16  ;;  %v7148_v34 = vor.u32 %v9655_v26, %v7145_v27  ;;  %v7527_v36 = vld [vmem:[#allocation11 + $0x6d0] sm:$0xf]  ;;  %v9623_v17 = vld [vmem:[#allocation11 + $0x2d4] sm:$0xf] }
 0x193   :  { %v9755_v37 = vld [vmem:[#allocation11 + $0x6ec] sm:$0xf0] }
 0x194   :  { %2529 = vmatpush.bf16.msra.mxu2 %v6856_v31  ;;  %2507 = vmatpush.bf16.msra.mxu0 %v7236_v42  ;;  %v9707_v31 = vld [vmem:[#allocation11 + $0x56c] sm:$0xf0]  ;;  %v7528_v49 = vor.u32 %v9755_v37, %v7527_v36 }
 0x195   :  { %v7336_v38 = vor.u32 %v9707_v31, %v7335_v30  ;;  %v6663_v42 = vld [vmem:[#allocation11 + $0x10] sm:$0xf]  ;;  %v6985_v30 = vld [vmem:[#allocation11 + $0x2b0] sm:$0xf0] }
 0x196   :  { %2544 = vmatpush.bf16.msra.mxu3 %v7048_v35  ;;  %2522 = vmatpush.bf16.msra.mxu1 %v7428_v51  ;;  %v6696_v35 = vor.u32 %v9547_v29, %v6695_v28  ;;  %v9539_v43 = vld [vmem:[#allocation11 + $0x2c] sm:$0xf0]  ;;  %v7116_v51 = vor.u32 %v9647_v39, %v7113_v41  ;;  %v9615_v29 = vld [vmem:[#allocation11 + $0x294] sm:$0xf] }
 0x197   :  { %v7303_v44 = vld [vmem:[#allocation11 + $0x510] sm:$0xf]  ;;  %v6664_v52 = vor.u32 %v9539_v43, %v6663_v42  ;;  %v9719_v39 = vld [vmem:[#allocation11 + $0x5d4] sm:$0xf]  ;;  %v6988_v42 = vor.u32 %v9615_v29, %v6985_v30  ;;  %v7087_v29 = vld [vmem:[#allocation11 + $0x358] sm:$0xf] }
 0x198   :  { %2530 = vmatpush.bf16.msra.mxu2 %v6824_v47  ;;  %2508 = vmatpush.bf16.msra.mxu0 %v7204_v56  ;;  %v9699_v46 = vld [vmem:[#allocation11 + $0x52c] sm:$0xf0]  ;;  %v9591_v47 = vld [vmem:[#allocation11 + $0x1d4] sm:$0xf] }
 0x199   :  { %2523 = vmatmul.bf16.vlgmr.msra.gmra.mxu1 %v10645_v40  ;;  %v7304_v53 = vor.u32 %v9699_v46, %v7303_v44  ;;  %v6892_v56 = vor.u32 %v9591_v47, %v6889_v48  ;;  %v7271_v50 = vld [vmem:[#allocation11 + $0x4d0] sm:$0xf]  ;;  %v7401_v41 = vld [vmem:[#allocation11 + $0x5f0] sm:$0xf0] }
 0x19a   :  { %2545 = vmatpush.bf16.msra.mxu3 %v7016_v54  ;;  %2567 = vmatpush.bf16.msrb.mxu1 %v7656_v45  ;;  %v7495_v54 = vld [vmem:[#allocation11 + $0x690] sm:$0xf]  ;;  %v9607_v47 = vld [vmem:[#allocation11 + $0x254] sm:$0xf] }
 0x19b   :  { %v9747_v45 = vld [vmem:[#allocation11 + $0x6ac] sm:$0xf0]  ;;  %v6953_v48 = vld [vmem:[#allocation11 + $0x270] sm:$0xf0] }
 0x19c   :  { %2531 = vmatpush.bf16.msra.mxu2 %v6792_v60  ;;  %2509 = vmatpush.bf16.msra.mxu0 %v7172_v6  ;;  %v9691_v59 = vld [vmem:[#allocation11 + $0x4ec] sm:$0xf0]  ;;  %v9583_v60 = vld [vmem:[#allocation11 + $0x194] sm:$0xf]  ;;  %v7496_v62 = vor.u32 %v9747_v45, %v7495_v54 }
 0x19d   :  { %v7272_v1 = vor.u32 %v9691_v59, %v7271_v50  ;;  %v7463_v2 = vld [vmem:[#allocation11 + $0x650] sm:$0xf]  ;;  %v7049_v6 = vld [vmem:[#allocation11 + $0x330] sm:$0xf0] }
 0x19e   :  { %2546 = vmatpush.bf16.msra.mxu3 %v6984_v4  ;;  %2568 = vmatpush.bf16.msrb.mxu1 %v7624_v5  ;;  %v9739_v3 = vld [vmem:[#allocation11 + $0x66c] sm:$0xf0]  ;;  %v9631_v4 = vld [vmem:[#allocation11 + $0x314] sm:$0xf]  ;;  %v6860_v5 = vor.u32 %v9583_v60, %v6857_v61 }
 0x19f   :  { %2510 = vmatmul.bf16.vlgmr.msra.gmra.mxu0 %v10649_v0  ;;  %v7239_v7 = vld [vmem:[#allocation11 + $0x490] sm:$0xf]  ;;  %v7464_v12 = vor.u32 %v9739_v3, %v7463_v2  ;;  %v7052_v14 = vor.u32 %v9631_v4, %v7049_v6  ;;  %v6729_v54 = vld [vmem:[#allocation11 + $0xb0] sm:$0xf0]  ;;  %v9660_v2 = vld [vmem:[#allocation11 + $0x3f4] sm:$0xf0] }
 0x1a0   :  { %2532 = vmatpush.bf16.msra.mxu2 %v6760_v10  ;;  %2554 = vmatpush.bf16.msrb.mxu0 %v7400_v11  ;;  %v9683_v9 = vld [vmem:[#allocation11 + $0x4ac] sm:$0xf0]  ;;  %v9575_v10 = vld [vmem:[#allocation11 + $0x154] sm:$0xf] }
 0x1a1   :  { %v6825_v11 = vld [vmem:[#allocation11 + $0x170] sm:$0xf0]  ;;  %v7431_v13 = vld [vmem:[#allocation11 + $0x610] sm:$0xf]  ;;  %v7240_v15 = vor.u32 %v9683_v9, %v7239_v7 }
 0x1a2   :  { %2547 = vmatpush.bf16.msra.mxu3 %v6952_v18  ;;  %2569 = vmatpush.bf16.msrb.mxu1 %v7592_v20  ;;  %v9731_v16 = vld [vmem:[#allocation11 + $0x62c] sm:$0xf0]  ;;  %v7017_v18 = vld [vmem:[#allocation11 + $0x2f0] sm:$0xf0]  ;;  %v6828_v19 = vor.u32 %v9575_v10, %v6825_v11 }
 0x1a3   :  { %v9783_v20 = vld [vmem:[#allocation11 + $0x7d4] sm:$0xf]  ;;  %v7207_v22 = vld [vmem:[#allocation11 + $0x450] sm:$0xf]  ;;  %v7432_v26 = vor.u32 %v9731_v16, %v7431_v13  ;;  %v7020_v27 = vor.u32 %v9623_v17, %v7017_v18  ;;  %v9652_v16 = vld [vmem:[#allocation11 + $0x3b4] sm:$0xf0] }
 0x1a4   :  { %2533 = vmatpush.bf16.msra.mxu2 %v6728_v24  ;;  %2555 = vmatpush.bf16.msrb.mxu0 %v7368_v25  ;;  %v9675_v23 = vld [vmem:[#allocation11 + $0x46c] sm:$0xf0]  ;;  %v9567_v24 = vld [vmem:[#allocation11 + $0x114] sm:$0xf]  ;;  %v7660_v28 = vor.u32 %v9783_v20, %v7657_v21  ;;  %v6895_v21 = vld [vmem:[#allocation11 + $0x1d8] sm:$0xf] }
 0x1a5   :  { %v6793_v25 = vld [vmem:[#allocation11 + $0x130] sm:$0xf0]  ;;  %v7208_v31 = vor.u32 %v9675_v23, %v7207_v22  ;;  %v7175_v36 = vld [vmem:[#allocation11 + $0x410] sm:$0xf]  ;;  %v9596_v22 = vld [vmem:[#allocation11 + $0x1f4] sm:$0xf0] }
 0x1a6   :  { %2548 = vmatpush.bf16.msra.mxu3 %v6920_v32  ;;  %2570 = vmatpush.bf16.msrb.mxu1 %v7560_v33  ;;  %v6796_v32 = vor.u32 %v9567_v24, %v6793_v25  ;;  %v9775_v33 = vld [vmem:[#allocation11 + $0x794] sm:$0xf]  ;;  %v9667_v37 = vld [vmem:[#allocation11 + $0x42c] sm:$0xf0]  ;;  %v6896_v30 = vor.u32 %v9596_v22, %v6895_v21 }
 0x1a7   :  { %v7176_v44 = vor.u32 %v9667_v37, %v7175_v36  ;;  %v9711_v45 = vld [vmem:[#allocation11 + $0x594] sm:$0xf]  ;;  %v9588_v36 = vld [vmem:[#allocation11 + $0x1b4] sm:$0xf0] }
 0x1a8   :  { %2534 = vmatpush.bf16.msra.mxu2 %v6696_v35  ;;  %2556 = vmatpush.bf16.msrb.mxu0 %v7336_v38  ;;  %v9559_v35 = vld [vmem:[#allocation11 + $0xd4] sm:$0xf] }
 0x1a9   :  { %2549 = vmatmul.bf16.vlgmr.msra.gmra.mxu3 %v10637_v58  ;;  %v6761_v38 = vld [vmem:[#allocation11 + $0xf0] sm:$0xf0] }
 0x1aa   :  { %2593 = vmatpush.bf16.msrb.mxu3 %v7148_v34  ;;  %2571 = vmatpush.bf16.msrb.mxu1 %v7528_v49  ;;  %v7625_v34 = vld [vmem:[#allocation11 + $0x7b0] sm:$0xf0]  ;;  %v6764_v46 = vor.u32 %v9559_v35, %v6761_v38 }
 0x1ab   :  { %v7628_v43 = vor.u32 %v9775_v33, %v7625_v34  ;;  %v9767_v49 = vld [vmem:[#allocation11 + $0x754] sm:$0xf]  ;;  %v6863_v34 = vld [vmem:[#allocation11 + $0x198] sm:$0xf] }
 0x1ac   :  { %2535 = vmatpush.bf16.msra.mxu2 %v6664_v52  ;;  %2557 = vmatpush.bf16.msrb.mxu0 %v7304_v53  ;;  %v7593_v52 = vld [vmem:[#allocation11 + $0x770] sm:$0xf0] }
 0x1ad   :  { %v9551_v53 = vld [vmem:[#allocation11 + $0x94] sm:$0xf]  ;;  %v7596_v50 = vor.u32 %v9767_v49, %v7593_v52  ;;  %v9580_v49 = vld [vmem:[#allocation11 + $0x174] sm:$0xf0] }
 0x1ae   :  { %2594 = vmatpush.bf16.msrb.mxu3 %v7116_v51  ;;  %2572 = vmatpush.bf16.msrb.mxu1 %v7496_v62  ;;  %v7404_v51 = vor.u32 %v9719_v39, %v7401_v41  ;;  %v6732_v59 = vor.u32 %v9551_v53, %v6729_v54  ;;  %v6921_v60 = vld [vmem:[#allocation11 + $0x230] sm:$0xf0] }
 0x1af   :  { %2536 = vmatmul.bf16.vlgmr.msra.gmra.mxu2 %v10641_v8  ;;  %v9759_v61 = vld [vmem:[#allocation11 + $0x714] sm:$0xf]  ;;  %v6924_v7 = vor.u32 %v9599_v57, %v6921_v60 }
 0x1b0   :  { %2580 = vmatpush.bf16.msrb.mxu2 %v6892_v56  ;;  %2558 = vmatpush.bf16.msrb.mxu0 %v7272_v1  ;;  %v6956_v56 = vor.u32 %v9607_v47, %v6953_v48  ;;  %v7561_v62 = vld [vmem:[#allocation11 + $0x730] sm:$0xf0]  ;;  %v7151_v1 = vld [vmem:[#allocation11 + $0x3d8] sm:$0xf] }
 0x1b1   :  { %v9543_v3 = vld [vmem:[#allocation11 + $0x54] sm:$0xf]  ;;  %v7564_v9 = vor.u32 %v9759_v61, %v7561_v62  ;;  %v7152_v10 = vor.u32 %v9660_v2, %v7151_v1  ;;  %v6831_v48 = vld [vmem:[#allocation11 + $0x158] sm:$0xf] }
 0x1b2   :  { %2595 = vmatpush.bf16.msrb.mxu3 %v7084_v63  ;;  %2573 = vmatpush.bf16.msrb.mxu1 %v7464_v12  ;;  %v7372_v63 = vor.u32 %v9711_v45, %v7369_v55  ;;  %v6697_v4 = vld [vmem:[#allocation11 + $0x70] sm:$0xf0]  ;;  %v7023_v55 = vld [vmem:[#allocation11 + $0x2d8] sm:$0xf]  ;;  %v6832_v57 = vor.u32 %v9580_v49, %v6831_v48 }
 0x1b3   :  { %v7337_v6 = vld [vmem:[#allocation11 + $0x570] sm:$0xf0]  ;;  %v6700_v13 = vor.u32 %v9543_v3, %v6697_v4  ;;  %v6799_v62 = vld [vmem:[#allocation11 + $0x118] sm:$0xf] }
 0x1b4   :  { %2581 = vmatpush.bf16.msrb.mxu2 %v6860_v5  ;;  %2559 = vmatpush.bf16.msrb.mxu0 %v7240_v15  ;;  %v9703_v5 = vld [vmem:[#allocation11 + $0x554] sm:$0xf]  ;;  %v7119_v15 = vld [vmem:[#allocation11 + $0x398] sm:$0xf] }
 0x1b5   :  { %v9751_v11 = vld [vmem:[#allocation11 + $0x6d4] sm:$0xf]  ;;  %v7120_v24 = vor.u32 %v9652_v16, %v7119_v15  ;;  %v9564_v15 = vld [vmem:[#allocation11 + $0xf4] sm:$0xf0] }
 0x1b6   :  { %2596 = vmatpush.bf16.msrb.mxu3 %v7052_v14  ;;  %2574 = vmatpush.bf16.msrb.mxu1 %v7432_v26  ;;  %v7529_v12 = vld [vmem:[#allocation11 + $0x6f0] sm:$0xf0]  ;;  %v7340_v14 = vor.u32 %v9703_v5, %v7337_v6  ;;  %v6991_v5 = vld [vmem:[#allocation11 + $0x298] sm:$0xf] }
 0x1b7   :  { %v9535_v17 = vld [vmem:[#allocation11 + $0x14] sm:$0xf]  ;;  %v7532_v23 = vor.u32 %v9751_v11, %v7529_v12  ;;  %v9620_v6 = vld [vmem:[#allocation11 + $0x2b4] sm:$0xf0] }
 0x1b8   :  { %2582 = vmatpush.bf16.msrb.mxu2 %v6828_v19  ;;  %2560 = vmatpush.bf16.msrb.mxu0 %v7208_v31  ;;  %v6665_v18 = vld [vmem:[#allocation11 + $0x30] sm:$0xf0]  ;;  %v9644_v31 = vld [vmem:[#allocation11 + $0x374] sm:$0xf0] }
 0x1b9   :  { %2575 = vmatmul.bf16.vlgmr.msrb.gmra.mxu1 %v10645_v40  ;;  %v9695_v19 = vld [vmem:[#allocation11 + $0x514] sm:$0xf]  ;;  %v6668_v25 = vor.u32 %v9535_v17, %v6665_v18  ;;  %v7088_v35 = vor.u32 %v9644_v31, %v7087_v29  ;;  %v9780_v11 = vld [vmem:[#allocation11 + $0x7b4] sm:$0xf0]  ;;  %v6992_v18 = vor.u32 %v9620_v6, %v6991_v5 }
 0x1ba   :  { %2597 = vmatpush.bf16.msrb.mxu3 %v7020_v27  ;;  %2619 = vmatpush.bf16.msra.mxu1 %v7660_v28  ;;  %v7305_v20 = vld [vmem:[#allocation11 + $0x530] sm:$0xf0]  ;;  %v7407_v16 = vld [vmem:[#allocation11 + $0x5d8] sm:$0xf] }
 0x1bb   :  { %v7308_v26 = vor.u32 %v9695_v19, %v7305_v20  ;;  %v9743_v27 = vld [vmem:[#allocation11 + $0x694] sm:$0xf]  ;;  %v9724_v17 = vld [vmem:[#allocation11 + $0x5f4] sm:$0xf0]  ;;  %v10671_v20 = vld [vmem:[#allocation13] sm:$0xff] }
 0x1bc   :  { %2583 = vmatpush.bf16.msrb.mxu2 %v6796_v32  ;;  %2561 = vmatpush.bf16.msrb.mxu0 %v7176_v44  ;;  %v7497_v28 = vld [vmem:[#allocation11 + $0x6b0] sm:$0xf0]  ;;  %v9636_v44 = vld [vmem:[#allocation11 + $0x334] sm:$0xf0]  ;;  %v1024_v31 = vperm.slane %v10671_v20, 0 }
 0x1bd   :  { %v9687_v32 = vld [vmem:[#allocation11 + $0x4d4] sm:$0xf]  ;;  %v7500_v37 = vor.u32 %v9743_v27, %v7497_v28  ;;  %v7408_v27 = vor.u32 %v9724_v17, %v7407_v16  ;;  %v9772_v28 = vld [vmem:[#allocation11 + $0x774] sm:$0xf0] }
 0x1be   :  { %2598 = vmatpush.bf16.msrb.mxu3 %v6988_v42  ;;  %2620 = vmatpush.bf16.msra.mxu1 %v7628_v43  ;;  %v7273_v33 = vld [vmem:[#allocation11 + $0x4f0] sm:$0xf0]  ;;  %v7055_v42 = vld [vmem:[#allocation11 + $0x318] sm:$0xf]  ;;  %v6864_v43 = vor.u32 %v9588_v36, %v6863_v34 }
 0x1bf   :  { %2562 = vmatmul.bf16.vlgmr.msrb.gmra.mxu0 %v10649_v0  ;;  %v7276_v38 = vor.u32 %v9687_v32, %v7273_v33  ;;  %v9735_v39 = vld [vmem:[#allocation11 + $0x654] sm:$0xf]  ;;  %v7056_v53 = vor.u32 %v9636_v44, %v7055_v42  ;;  %v6735_v29 = vld [vmem:[#allocation11 + $0x98] sm:$0xf] }
 0x1c0   :  { %2584 = vmatpush.bf16.msrb.mxu2 %v6764_v46  ;;  %2606 = vmatpush.bf16.msra.mxu0 %v7404_v51  ;;  %v7465_v41 = vld [vmem:[#allocation11 + $0x670] sm:$0xf0]  ;;  %v7375_v32 = vld [vmem:[#allocation11 + $0x598] sm:$0xf] }
 0x1c1   :  { %v9679_v46 = vld [vmem:[#allocation11 + $0x494] sm:$0xf]  ;;  %v7468_v51 = vor.u32 %v9735_v39, %v7465_v41  ;;  %v9716_v33 = vld [vmem:[#allocation11 + $0x5b4] sm:$0xf0] }
 0x1c2   :  { %2599 = vmatpush.bf16.msrb.mxu3 %v6956_v56  ;;  %2621 = vmatpush.bf16.msra.mxu1 %v7596_v50  ;;  %v7241_v47 = vld [vmem:[#allocation11 + $0x4b0] sm:$0xf0]  ;;  %v9628_v56 = vld [vmem:[#allocation11 + $0x2f4] sm:$0xf0]  ;;  %v7376_v44 = vor.u32 %v9716_v33, %v7375_v32  ;;  %v9632_v33 = vld [vmem:[#allocation11 + $0x31c] sm:$0xf] }
 0x1c3   :  { %v9727_v52 = vld [vmem:[#allocation11 + $0x614] sm:$0xf]  ;;  %v7244_v54 = vor.u32 %v9679_v46, %v7241_v47  ;;  %v7663_v50 = vld [vmem:[#allocation11 + $0x7d8] sm:$0xf]  ;;  %v7024_v3 = vor.u32 %v9628_v56, %v7023_v55  ;;  %v9656_v46 = vld [vmem:[#allocation11 + $0x3dc] sm:$0xf] }
 0x1c4   :  { %2585 = vmatpush.bf16.msrb.mxu2 %v6732_v59  ;;  %2607 = vmatpush.bf16.msra.mxu0 %v7372_v63  ;;  %v7433_v45 = vld [vmem:[#allocation11 + $0x630] sm:$0xf0]  ;;  %v9788_v59 = vld [vmem:[#allocation11 + $0x7f4] sm:$0xf0]  ;;  %v7153_v47 = vld [vmem:[#allocation11 + $0x3f8] sm:$0xf0] }
 0x1c5   :  { %v9671_v60 = vld [vmem:[#allocation11 + $0x454] sm:$0xf]  ;;  %v9572_v63 = vld [vmem:[#allocation11 + $0x134] sm:$0xf0]  ;;  %v7436_v1 = vor.u32 %v9727_v52, %v7433_v45  ;;  %v7664_v4 = vor.u32 %v9788_v59, %v7663_v50  ;;  %v7156_v55 = vor.u32 %v9656_v46, %v7153_v47 }
 0x1c6   :  { %2600 = vmatpush.bf16.msrb.mxu3 %v6924_v7  ;;  %2622 = vmatpush.bf16.msra.mxu1 %v7564_v9  ;;  %v7209_v61 = vld [vmem:[#allocation11 + $0x470] sm:$0xf0]  ;;  %v6800_v9 = vor.u32 %v9572_v63, %v6799_v62  ;;  %v9604_v39 = vld [vmem:[#allocation11 + $0x234] sm:$0xf0]  ;;  %v7121_v62 = vld [vmem:[#allocation11 + $0x3b8] sm:$0xf0] }
 0x1c7   :  { %v7212_v7 = vor.u32 %v9671_v60, %v7209_v61  ;;  %v9663_v12 = vld [vmem:[#allocation11 + $0x414] sm:$0xf]  ;;  %v7567_v41 = vld [vmem:[#allocation11 + $0x718] sm:$0xf]  ;;  %v9648_v61 = vld [vmem:[#allocation11 + $0x39c] sm:$0xf] }
 0x1c8   :  { %2586 = vmatpush.bf16.msrb.mxu2 %v6700_v13  ;;  %2608 = vmatpush.bf16.msra.mxu0 %v7340_v14  ;;  %v7177_v13 = vld [vmem:[#allocation11 + $0x430] sm:$0xf0]  ;;  %v6767_v14 = vld [vmem:[#allocation11 + $0xd8] sm:$0xf] }
 0x1c9   :  { %2601 = vmatmul.bf16.vlgmr.msrb.gmra.mxu3 %v10637_v58  ;;  %v7180_v21 = vor.u32 %v9663_v12, %v7177_v13  ;;  %v6768_v22 = vor.u32 %v9564_v15, %v6767_v14  ;;  %v9764_v42 = vld [vmem:[#allocation11 + $0x734] sm:$0xf0]  ;;  %v7124_v13 = vor.u32 %v9648_v61, %v7121_v62 }
 0x1ca   :  { %2645 = vmatpush.bf16.msra.mxu3 %v7152_v10  ;;  %2623 = vmatpush.bf16.msra.mxu1 %v7532_v23  ;;  %v7631_v10 = vld [vmem:[#allocation11 + $0x798] sm:$0xf]  ;;  %v7568_v45 = vor.u32 %v9764_v42, %v7567_v41  ;;  %v9576_v41 = vld [vmem:[#allocation11 + $0x15c] sm:$0xf] }
 0x1cb   :  { %v7632_v19 = vor.u32 %v9780_v11, %v7631_v10  ;;  %v6959_v23 = vld [vmem:[#allocation11 + $0x258] sm:$0xf]  ;;  %v6897_v10 = vld [vmem:[#allocation11 + $0x1f8] sm:$0xf0] }
 0x1cc   :  { %2587 = vmatpush.bf16.msrb.mxu2 %v6668_v25  ;;  %2609 = vmatpush.bf16.msra.mxu0 %v7308_v26  ;;  %v10669_v2 = vpop.f32.mrf.mxu3  ;;  %v7599_v25 = vld [vmem:[#allocation11 + $0x758] sm:$0xf]  ;;  %v6833_v42 = vld [vmem:[#allocation11 + $0x178] sm:$0xf0] }
 0x1cd   :  { %v6703_v48 = vld [vmem:[#allocation11 + $0x58] sm:$0xf] }
 0x1ce   :  { %2646 = vmatpush.bf16.msra.mxu3 %v7120_v24  ;;  %2624 = vmatpush.bf16.msra.mxu1 %v7500_v37  ;;  %v9612_v24 = vld [vmem:[#allocation11 + $0x274] sm:$0xf0] }
 0x1cf   :  { %2588 = vmatmul.bf16.vlgmr.msrb.gmra.mxu2 %v10641_v8  ;;  %v6960_v36 = vor.u32 %v9612_v24, %v6959_v23  ;;  %v6927_v37 = vld [vmem:[#allocation11 + $0x218] sm:$0xf] }
 0x1d0   :  { %2632 = vmatpush.bf16.msra.mxu2 %v6896_v30  ;;  %2610 = vmatpush.bf16.msra.mxu0 %v7276_v38  ;;  %v9556_v30 = vld [vmem:[#allocation11 + $0xb4] sm:$0xf0] }
 0x1d1   :  { %v6736_v38 = vor.u32 %v9556_v30, %v6735_v29  ;;  %v7343_v52 = vld [vmem:[#allocation11 + $0x558] sm:$0xf] }
 0x1d2   :  { %2647 = vmatpush.bf16.msra.mxu3 %v7088_v35  ;;  %2625 = vmatpush.bf16.msra.mxu1 %v7468_v51  ;;  %v2329_v26 = vpop.f32.mrf.mxu2  ;;  %v7600_v35 = vor.u32 %v9772_v28, %v7599_v25  ;;  %v9548_v51 = vld [vmem:[#allocation11 + $0x74] sm:$0xf0]  ;;  %v9584_v25 = vld [vmem:[#allocation11 + $0x19c] sm:$0xf] }
 0x1d3   :  { %v2330_v49 = vadd.f32 %v2329_v26, %v1024_v31  ;;  %v7535_v56 = vld [vmem:[#allocation11 + $0x6d8] sm:$0xf]  ;;  %v6704_v59 = vor.u32 %v9548_v51, %v6703_v48  ;;  %v6865_v26 = vld [vmem:[#allocation11 + $0x1b8] sm:$0xf0] }
 0x1d4   :  { %2633 = vmatpush.bf16.msra.mxu2 %v6864_v43  ;;  %2611 = vmatpush.bf16.msra.mxu0 %v7244_v54  ;;  %v2344_v34 = vpop.f32.mrf.mxu3  ;;  %v6928_v54 = vor.u32 %v9604_v39, %v6927_v37  ;;  %v6671_v63 = vld [vmem:[#allocation11 + $0x18] sm:$0xf]  ;;  %v9624_v51 = vld [vmem:[#allocation11 + $0x2dc] sm:$0xf] }
 0x1d5   :  { %v9700_v5 = vld [vmem:[#allocation11 + $0x534] sm:$0xf0]  ;;  %v6868_v34 = vor.u32 %v9584_v25, %v6865_v26  ;;  %v9768_v25 = vld [vmem:[#allocation11 + $0x75c] sm:$0xf] }
 0x1d6   :  { %2648 = vmatpush.bf16.msra.mxu3 %v7056_v53  ;;  %2626 = vmatpush.bf16.msra.mxu1 %v7436_v1  ;;  %v2368_v43 = vpop.f32.mrf.mxu1  ;;  %v9708_v53 = vld [vmem:[#allocation11 + $0x574] sm:$0xf0]  ;;  %v2343_v1 = vadd.f32 %v10669_v2, %v2330_v49 }
 0x1d7   :  { %v7344_v60 = vor.u32 %v9708_v53, %v7343_v52  ;;  %v7503_v2 = vld [vmem:[#allocation11 + $0x698] sm:$0xf]  ;;  %v7025_v52 = vld [vmem:[#allocation11 + $0x2f8] sm:$0xf0]  ;;  %v6836_v53 = vor.u32 %v9576_v41, %v6833_v42 }
 0x1d8   :  { %2634 = vmatpush.bf16.msra.mxu2 %v6832_v57  ;;  %2612 = vmatpush.bf16.msra.mxu0 %v7212_v7  ;;  %v9756_v57 = vld [vmem:[#allocation11 + $0x6f4] sm:$0xf0]  ;;  %v7028_v61 = vor.u32 %v9624_v51, %v7025_v52  ;;  %v7569_v41 = vld [vmem:[#allocation11 + $0x738] sm:$0xf0] }
 0x1d9   :  { %2627 = vmatmul.bf16.vlgmr.msra.gmra.mxu1 %v10645_v40  ;;  %v7536_v12 = vor.u32 %v9756_v57, %v7535_v56  ;;  %v9748_v17 = vld [vmem:[#allocation11 + $0x6b4] sm:$0xf0]  ;;  %v9568_v57 = vld [vmem:[#allocation11 + $0x11c] sm:$0xf] }
 0x1da   :  { %2649 = vmatpush.bf16.msra.mxu3 %v7024_v3  ;;  %2671 = vmatpush.bf16.msrb.mxu1 %v7664_v4  ;;  %v2331_v50 = vpop.f32.mrf.mxu2  ;;  %v9540_v3 = vld [vmem:[#allocation11 + $0x34] sm:$0xf0]  ;;  %v6705_v51 = vld [vmem:[#allocation11 + $0x78] sm:$0xf0] }
 0x1db   :  { %v7311_v4 = vld [vmem:[#allocation11 + $0x518] sm:$0xf]  ;;  %v6672_v15 = vor.u32 %v9540_v3, %v6671_v63  ;;  %v6801_v50 = vld [vmem:[#allocation11 + $0x138] sm:$0xf0] }
 0x1dc   :  { %2635 = vmatpush.bf16.msra.mxu2 %v6800_v9  ;;  %2613 = vmatpush.bf16.msra.mxu0 %v7180_v21  ;;  %v2355_v6 = vpop.f32.mrf.mxu0  ;;  %v10677_v7 = vpop.f32.mrf.mxu3  ;;  %v9592_v9 = vld [vmem:[#allocation11 + $0x1dc] sm:$0xf]  ;;  %v7312_v16 = vor.u32 %v9700_v5, %v7311_v4  ;;  %v7279_v23 = vld [vmem:[#allocation11 + $0x4d8] sm:$0xf]  ;;  %v6804_v4 = vor.u32 %v9568_v57, %v6801_v50 }
 0x1dd   :  { %v2356_v11 = vadd.f32 %v2355_v6, %v2343_v1  ;;  %v6900_v21 = vor.u32 %v9592_v9, %v6897_v10  ;;  %v9692_v24 = vld [vmem:[#allocation11 + $0x4f4] sm:$0xf0]  ;;  %v9616_v63 = vld [vmem:[#allocation11 + $0x29c] sm:$0xf] }
 0x1de   :  { %2650 = vmatpush.bf16.msra.mxu3 %v6992_v18  ;;  %2672 = vmatpush.bf16.msrb.mxu1 %v7632_v19  ;;  %v2370_v14 = vpop.f32.mrf.mxu1  ;;  %v9640_v18 = vld [vmem:[#allocation11 + $0x35c] sm:$0xf]  ;;  %v7280_v30 = vor.u32 %v9692_v24, %v7279_v23  ;;  %v7471_v31 = vld [vmem:[#allocation11 + $0x658] sm:$0xf] }
 0x1df   :  { %2614 = vmatmul.bf16.vlgmr.msra.gmra.mxu0 %v10649_v0  ;;  %v10679_v19 = vadd.f32 %v2368_v43, %v2356_v11  ;;  %v9740_v32 = vld [vmem:[#allocation11 + $0x674] sm:$0xf0]  ;;  %v6993_v1 = vld [vmem:[#allocation11 + $0x2b8] sm:$0xf0] }
 0x1e0   :  { %2636 = vmatpush.bf16.msra.mxu2 %v6768_v22  ;;  %2658 = vmatpush.bf16.msrb.mxu0 %v7408_v27  ;;  %v7089_v22 = vld [vmem:[#allocation11 + $0x378] sm:$0xf0]  ;;  %v7504_v27 = vor.u32 %v9748_v17, %v7503_v2  ;;  %v7247_v37 = vld [vmem:[#allocation11 + $0x498] sm:$0xf]  ;;  %v7472_v43 = vor.u32 %v9740_v32, %v7471_v31  ;;  %v6996_v17 = vor.u32 %v9616_v63, %v6993_v1 }
 0x1e1   :  { %v7092_v29 = vor.u32 %v9640_v18, %v7089_v22  ;;  %v9732_v49 = vld [vmem:[#allocation11 + $0x634] sm:$0xf0]  ;;  %v9776_v5 = vld [vmem:[#allocation11 + $0x79c] sm:$0xf] }
 0x1e2   :  { %2651 = vmatpush.bf16.msra.mxu3 %v6960_v36  ;;  %2673 = vmatpush.bf16.msrb.mxu1 %v7600_v35  ;;  %v10682_v28 = vpop.f32.mrf.mxu2  ;;  %v7057_v36 = vld [vmem:[#allocation11 + $0x338] sm:$0xf0]  ;;  %v9684_v35 = vld [vmem:[#allocation11 + $0x4b4] sm:$0xf0] }
 0x1e3   :  { %v7060_v47 = vor.u32 %v9632_v33, %v7057_v36  ;;  %v7248_v48 = vor.u32 %v9684_v35, %v7247_v37  ;;  %v9676_v56 = vld [vmem:[#allocation11 + $0x474] sm:$0xf0]  ;;  %v7633_v6 = vld [vmem:[#allocation11 + $0x7b8] sm:$0xf0] }
 0x1e4   :  { %2637 = vmatpush.bf16.msra.mxu2 %v6736_v38  ;;  %2659 = vmatpush.bf16.msrb.mxu0 %v7376_v44  ;;  %v2357_v38 = vpop.f32.mrf.mxu0  ;;  %v2396_v39 = vpop.f32.mrf.mxu3  ;;  %v7439_v44 = vld [vmem:[#allocation11 + $0x618] sm:$0xf]  ;;  %v6769_v14 = vld [vmem:[#allocation11 + $0xf8] sm:$0xf0]  ;;  %v7636_v18 = vor.u32 %v9776_v5, %v7633_v6  ;;  %v7867_v5 = vld [vmem:[#allocation14 + $0x188] sm:$0xf] }
 0x1e5   :  { %v7183_v9 = vld [vmem:[#allocation11 + $0x418] sm:$0xf]  ;;  %v9608_v23 = vld [vmem:[#allocation11 + $0x25c] sm:$0xf]  ;;  %v9841_v6 = vld [vmem:[#allocation14 + $0x1a0] sm:$0xf0] }
 0x1e6   :  { %2652 = vmatpush.bf16.msra.mxu3 %v6928_v54  ;;  %2674 = vmatpush.bf16.msrb.mxu1 %v7568_v45  ;;  %v10685_v46 = vpop.f32.mrf.mxu1  ;;  %v9784_v54 = vld [vmem:[#allocation11 + $0x7dc] sm:$0xf] }
 0x1e7   :  { %v7665_v45 = vld [vmem:[#allocation11 + $0x7f8] sm:$0xf0] }
 0x1e8   :  { %2638 = vmatpush.bf16.msra.mxu2 %v6704_v59  ;;  %2660 = vmatpush.bf16.msrb.mxu0 %v7344_v60  ;;  %v7440_v59 = vor.u32 %v9732_v49, %v7439_v44  ;;  %v7668_v62 = vor.u32 %v9784_v54, %v7665_v45  ;;  %v6961_v24 = vld [vmem:[#allocation11 + $0x278] sm:$0xf0] }
 0x1e9   :  { %2653 = vmatmul.bf16.vlgmr.msra.gmra.mxu3 %v10637_v58  ;;  %v9712_v31 = vld [vmem:[#allocation11 + $0x59c] sm:$0xf]  ;;  %v6964_v33 = vor.u32 %v9608_v23, %v6961_v24 }
 0x1ea   :  { %2697 = vmatpush.bf16.msrb.mxu3 %v7156_v55  ;;  %2675 = vmatpush.bf16.msrb.mxu1 %v7536_v12  ;;  %v7215_v55 = vld [vmem:[#allocation11 + $0x458] sm:$0xf]  ;;  %v2383_v60 = vpop.f32.mrf.mxu2  ;;  %v7377_v32 = vld [vmem:[#allocation11 + $0x5b8] sm:$0xf0] }
 0x1eb   :  { %v7216_v3 = vor.u32 %v9676_v56, %v7215_v55  ;;  %v9668_v12 = vld [vmem:[#allocation11 + $0x434] sm:$0xf0]  ;;  %v6929_v38 = vld [vmem:[#allocation11 + $0x238] sm:$0xf0]  ;;  %v7380_v44 = vor.u32 %v9712_v31, %v7377_v32 }
 0x1ec   :  { %2639 = vmatpush.bf16.msra.mxu2 %v6672_v15  ;;  %2661 = vmatpush.bf16.msrb.mxu0 %v7312_v16  ;;  %v10687_v10 = vpop.f32.mrf.mxu0  ;;  %v10689_v11 = vpop.f32.mrf.mxu3  ;;  %v9720_v15 = vld [vmem:[#allocation11 + $0x5dc] sm:$0xf] }
 0x1ed   :  { %v7409_v16 = vld [vmem:[#allocation11 + $0x5f8] sm:$0xf0] }
 0x1ee   :  { %2698 = vmatpush.bf16.msrb.mxu3 %v7124_v13  ;;  %2676 = vmatpush.bf16.msrb.mxu1 %v7504_v27  ;;  %v9560_v13 = vld [vmem:[#allocation11 + $0xdc] sm:$0xf]  ;;  %v2422_v2 = vpop.f32.mrf.mxu1  ;;  %v7412_v26 = vor.u32 %v9720_v15, %v7409_v16 }
 0x1ef   :  { %2640 = vmatmul.bf16.vlgmr.msra.gmra.mxu2 %v10641_v8  ;;  %v6772_v22 = vor.u32 %v9560_v13, %v6769_v14  ;;  %v7601_v27 = vld [vmem:[#allocation11 + $0x778] sm:$0xf0] }
 0x1f0   :  { %2684 = vmatpush.bf16.msrb.mxu2 %v6900_v21  ;;  %2662 = vmatpush.bf16.msrb.mxu0 %v7280_v30  ;;  %v7184_v21 = vor.u32 %v9668_v12, %v7183_v9  ;;  %v6737_v30 = vld [vmem:[#allocation11 + $0xb8] sm:$0xf0]  ;;  %v7604_v37 = vor.u32 %v9768_v25, %v7601_v27  ;;  %v1025_v25 = vperm.slane %v10671_v20, 1  ;;  %v7839_v27 = vld [vmem:[#allocation14 + $0x150] sm:$0xf] }
 0x1f1   :  { %v9760_v39 = vld [vmem:[#allocation11 + $0x71c] sm:$0xf] }
 0x1f2   :  { %2699 = vmatpush.bf16.msrb.mxu3 %v7092_v29  ;;  %2677 = vmatpush.bf16.msrb.mxu1 %v7472_v43  ;;  %v9552_v29 = vld [vmem:[#allocation11 + $0x9c] sm:$0xf]  ;;  %v10692_v36 = vpop.f32.mrf.mxu2  ;;  %v7572_v55 = vor.u32 %v9760_v39, %v7569_v41  ;;  %v2382_v41 = vadd.f32 %v10682_v28, %v1025_v25  ;;  %v7923_v25 = vld [vmem:[#allocation14 + $0x1f8] sm:$0xf] }
 0x1f3   :  { %v6740_v35 = vor.u32 %v9552_v29, %v6737_v30  ;;  %v9544_v49 = vld [vmem:[#allocation11 + $0x5c] sm:$0xf]  ;;  %v9834_v29 = vld [vmem:[#allocation14 + $0x168] sm:$0xf0] }
 0x1f4   :  { %2685 = vmatpush.bf16.msrb.mxu2 %v6868_v34  ;;  %2663 = vmatpush.bf16.msrb.mxu0 %v7248_v48  ;;  %v9600_v34 = vld [vmem:[#allocation11 + $0x21c] sm:$0xf]  ;;  %v2409_v42 = vpop.f32.mrf.mxu0  ;;  %v2448_v43 = vpop.f32.mrf.mxu3  ;;  %v9897_v48 = vld [vmem:[#allocation14 + $0x360] sm:$0xf0] }
 0x1f5   :  { %v9704_v52 = vld [vmem:[#allocation11 + $0x55c] sm:$0xf]  ;;  %v6932_v45 = vor.u32 %v9600_v34, %v6929_v38  ;;  %v8007_v34 = vld [vmem:[#allocation14 + $0x2a0] sm:$0xf]  ;;  %v7811_v42 = vld [vmem:[#allocation14 + $0x118] sm:$0xf] }
 0x1f6   :  { %2700 = vmatpush.bf16.msrb.mxu3 %v7060_v47  ;;  %2678 = vmatpush.bf16.msrb.mxu1 %v7440_v59  ;;  %v8091_v47 = vld [vmem:[#allocation14 + $0x348] sm:$0xf]  ;;  %v10695_v54 = vpop.f32.mrf.mxu1  ;;  %v9752_v57 = vld [vmem:[#allocation11 + $0x6dc] sm:$0xf]  ;;  %v6708_v59 = vor.u32 %v9544_v49, %v6705_v51 }
 0x1f7   :  { %v8092_v56 = vor.u32 %v9897_v48, %v8091_v47  ;;  %v7537_v50 = vld [vmem:[#allocation11 + $0x6f8] sm:$0xf0] }
 0x1f8   :  { %2686 = vmatpush.bf16.msrb.mxu2 %v6836_v53  ;;  %2664 = vmatpush.bf16.msrb.mxu0 %v7216_v3  ;;  %v7345_v53 = vld [vmem:[#allocation11 + $0x578] sm:$0xf0]  ;;  %v7540_v12 = vor.u32 %v9752_v57, %v7537_v50  ;;  %v10009_v57 = vld [vmem:[#allocation14 + $0x6e0] sm:$0xf0]  ;;  %v2395_v50 = vadd.f32 %v10677_v7, %v2382_v41  ;;  %v10002_v7 = vld [vmem:[#allocation14 + $0x6a8] sm:$0xf0] }
 0x1f9   :  { %2679 = vmatmul.bf16.vlgmr.msrb.gmra.mxu1 %v10645_v40  ;;  %v7348_v60 = vor.u32 %v9704_v52, %v7345_v53  ;;  %v9536_v63 = vld [vmem:[#allocation11 + $0x1c] sm:$0xf]  ;;  %v7979_v52 = vld [vmem:[#allocation14 + $0x268] sm:$0xf]  ;;  %v9869_v53 = vld [vmem:[#allocation14 + $0x280] sm:$0xf0] }
 0x1fa   :  { %2701 = vmatpush.bf16.msrb.mxu3 %v7028_v61  ;;  %2723 = vmatpush.bf16.msra.mxu1 %v7668_v62  ;;  %v8063_v61 = vld [vmem:[#allocation14 + $0x310] sm:$0xf]  ;;  %v9890_v62 = vld [vmem:[#allocation14 + $0x328] sm:$0xf0]  ;;  %v6673_v1 = vld [vmem:[#allocation11 + $0x38] sm:$0xf0]  ;;  %v2435_v9 = vpop.f32.mrf.mxu2 }
 0x1fb   :  { %v9696_v3 = vld [vmem:[#allocation11 + $0x51c] sm:$0xf]  ;;  %v8064_v13 = vor.u32 %v9890_v62, %v8063_v61  ;;  %v6676_v14 = vor.u32 %v9536_v63, %v6673_v1  ;;  %v2408_v62 = vadd.f32 %v10687_v10, %v2395_v50  ;;  %v7980_v63 = vor.u32 %v9869_v53, %v7979_v52  ;;  %v9953_v10 = vld [vmem:[#allocation14 + $0x520] sm:$0xf0]  ;;  %v8259_v52 = vld [vmem:[#allocation14 + $0x498] sm:$0xf] }
 0x1fc   :  { %2687 = vmatpush.bf16.msrb.mxu2 %v6804_v4  ;;  %2665 = vmatpush.bf16.msrb.mxu0 %v7184_v21  ;;  %v7313_v4 = vld [vmem:[#allocation11 + $0x538] sm:$0xf0]  ;;  %v7868_v21 = vor.u32 %v9841_v6, %v7867_v5 }
 0x1fd   :  { %v7316_v15 = vor.u32 %v9696_v3, %v7313_v4  ;;  %v9744_v16 = vld [vmem:[#allocation11 + $0x69c] sm:$0xf]  ;;  %v7951_v3 = vld [vmem:[#allocation14 + $0x230] sm:$0xf]  ;;  %v9862_v4 = vld [vmem:[#allocation14 + $0x248] sm:$0xf0] }
 0x1fe   :  { %2702 = vmatpush.bf16.msrb.mxu3 %v6996_v17  ;;  %2724 = vmatpush.bf16.msra.mxu1 %v7636_v18  ;;  %v7505_v2 = vld [vmem:[#allocation11 + $0x6b8] sm:$0xf0]  ;;  %v8035_v17 = vld [vmem:[#allocation14 + $0x2d8] sm:$0xf]  ;;  %v10698_v18 = vpop.f32.mrf.mxu0 }
 0x1ff   :  { %2666 = vmatmul.bf16.vlgmr.msrb.gmra.mxu0 %v10649_v0  ;;  %v9688_v23 = vld [vmem:[#allocation11 + $0x4dc] sm:$0xf]  ;;  %v7508_v30 = vor.u32 %v9744_v16, %v7505_v2  ;;  %v9813_v16 = vld [vmem:[#allocation14 + $0xc0] sm:$0xf0]  ;;  %v8315_v2 = vld [vmem:[#allocation14 + $0x508] sm:$0xf] }
 0x200   :  { %2688 = vmatpush.bf16.msrb.mxu2 %v6772_v22  ;;  %2710 = vmatpush.bf16.msra.mxu0 %v7412_v26  ;;  %v9883_v22 = vld [vmem:[#allocation14 + $0x2f0] sm:$0xf0]  ;;  %v2474_v26 = vpop.f32.mrf.mxu1 }
 0x201   :  { %v7281_v24 = vld [vmem:[#allocation11 + $0x4f8] sm:$0xf0]  ;;  %v8036_v31 = vor.u32 %v9883_v22, %v8035_v17  ;;  %v2421_v17 = vadd.f32 %v10685_v46, %v2408_v62  ;;  %v9946_v46 = vld [vmem:[#allocation14 + $0x4e8] sm:$0xf0]  ;;  %v9981_v62 = vld [vmem:[#allocation14 + $0x600] sm:$0xf0] }
 0x202   :  { %2703 = vmatpush.bf16.msrb.mxu3 %v6964_v33  ;;  %2725 = vmatpush.bf16.msra.mxu1 %v7604_v37  ;;  %v7284_v32 = vor.u32 %v9688_v23, %v7281_v24  ;;  %v9736_v33 = vld [vmem:[#allocation11 + $0x65c] sm:$0xf]  ;;  %v7840_v37 = vor.u32 %v9834_v29, %v7839_v27  ;;  %v8483_v27 = vld [vmem:[#allocation14 + $0x658] sm:$0xf]  ;;  %v8316_v29 = vor.u32 %v9953_v10, %v8315_v2  ;;  %v10114_v2 = vld [vmem:[#allocation14 + $0xa28] sm:$0xf0] }
 0x203   :  { %v9680_v38 = vld [vmem:[#allocation11 + $0x49c] sm:$0xf] }
 0x204   :  { %2689 = vmatpush.bf16.msrb.mxu2 %v6740_v35  ;;  %2711 = vmatpush.bf16.msra.mxu0 %v7380_v44  ;;  %v9876_v35 = vld [vmem:[#allocation14 + $0x2b8] sm:$0xf0]  ;;  %v7249_v39 = vld [vmem:[#allocation11 + $0x4b8] sm:$0xf0] }
 0x205   :  { %v9827_v43 = vld [vmem:[#allocation14 + $0x130] sm:$0xf0]  ;;  %v8008_v48 = vor.u32 %v9876_v35, %v8007_v34  ;;  %v7252_v49 = vor.u32 %v9680_v38, %v7249_v39  ;;  %v2737_v34 = vmul.f32 0.2, %v2421_v17  ;;  %v1027_v35 = vperm.slane %v10671_v20, 3 }
 0x206   :  { %2704 = vmatpush.bf16.msrb.mxu3 %v6932_v45  ;;  %2726 = vmatpush.bf16.msra.mxu1 %v7572_v55  ;;  %v9728_v47 = vld [vmem:[#allocation11 + $0x61c] sm:$0xf]  ;;  %v2461_v45 = vpop.f32.mrf.mxu0  ;;  %v7812_v55 = vor.u32 %v9827_v43, %v7811_v42  ;;  %v7895_v39 = vld [vmem:[#allocation14 + $0x1c0] sm:$0xf]  ;;  %v9848_v43 = vld [vmem:[#allocation14 + $0x1d8] sm:$0xf0] }
 0x207   :  { %v7441_v51 = vld [vmem:[#allocation11 + $0x638] sm:$0xf0]  ;;  %v7896_v50 = vor.u32 %v9848_v43, %v7895_v39  ;;  %v8371_v39 = vld [vmem:[#allocation14 + $0x578] sm:$0xf] }
 0x208   :  { %2690 = vmatpush.bf16.msrb.mxu2 %v6708_v59  ;;  %2712 = vmatpush.bf16.msra.mxu0 %v7348_v60  ;;  %v9672_v28 = vld [vmem:[#allocation11 + $0x45c] sm:$0xf]  ;;  %v7783_v60 = vld [vmem:[#allocation14 + $0xe0] sm:$0xf]  ;;  %v7444_v61 = vor.u32 %v9728_v47, %v7441_v51  ;;  %v9988_v47 = vld [vmem:[#allocation14 + $0x638] sm:$0xf0] }
 0x209   :  { %2705 = vmatmul.bf16.vlgmr.msrb.gmra.mxu3 %v10637_v58  ;;  %v7473_v58 = vld [vmem:[#allocation11 + $0x678] sm:$0xf0]  ;;  %v8707_v43 = vld [vmem:[#allocation14 + $0x818] sm:$0xf] }
 0x20a   :  { %5605 = vmatpush.bf16.msra.mxu3 %v8092_v56  ;;  %2727 = vmatpush.bf16.msra.mxu1 %v7540_v12  ;;  %v7476_v44 = vor.u32 %v9736_v33, %v7473_v58  ;;  %v8539_v56 = vld [vmem:[#allocation14 + $0x6c8] sm:$0xf]  ;;  %v7217_v59 = vld [vmem:[#allocation11 + $0x478] sm:$0xf0]  ;;  %v8511_v12 = vld [vmem:[#allocation14 + $0x690] sm:$0xf] }
 0x20b   :  { %v8540_v1 = vor.u32 %v10009_v57, %v8539_v56  ;;  %v7220_v6 = vor.u32 %v9672_v28, %v7217_v59  ;;  %v8512_v22 = vor.u32 %v10002_v7, %v8511_v12  ;;  %v9855_v26 = vld [vmem:[#allocation14 + $0x210] sm:$0xf0]  ;;  %v8287_v58 = vld [vmem:[#allocation14 + $0x4d0] sm:$0xf]  ;;  %v10121_v56 = vld [vmem:[#allocation14 + $0xa60] sm:$0xf0]  ;;  %v2745_v59 = vmax.f32 %v2421_v17, %v2737_v34 }
 0x20c   :  { %2691 = vmatpush.bf16.msrb.mxu2 %v6676_v14  ;;  %2713 = vmatpush.bf16.msra.mxu0 %v7316_v15  ;;  %v10705_v5 = vpop.f32.mrf.mxu3  ;;  %v7185_v14 = vld [vmem:[#allocation11 + $0x438] sm:$0xf0]  ;;  %v7755_v15 = vld [vmem:[#allocation14 + $0xa8] sm:$0xf]  ;;  %v7924_v38 = vor.u32 %v9855_v26, %v7923_v25  ;;  %v2736_v57 = vmul.f32 0.2, %v10679_v19 }
 0x20d   :  { %v7756_v24 = vor.u32 %v9813_v16, %v7755_v15  ;;  %v9799_v51 = vld [vmem:[#allocation14 + $0x50] sm:$0xf0]  ;;  %v9932_v7 = vld [vmem:[#allocation14 + $0x478] sm:$0xf0]  ;;  %v8959_v16 = vld [vmem:[#allocation14 + $0xa10] sm:$0xf]  ;;  %v10716_v10 = vpack.c.bf16 %v2745_v59, %v2745_v59 }
 0x20e   :  { %5606 = vmatpush.bf16.msra.mxu3 %v8064_v13  ;;  %2728 = vmatpush.bf16.msra.mxu1 %v7508_v30  ;;  %v9664_v13 = vld [vmem:[#allocation11 + $0x41c] sm:$0xf]  ;;  %v8399_v25 = vld [vmem:[#allocation14 + $0x5b0] sm:$0xf]  ;;  %v9974_v26 = vld [vmem:[#allocation14 + $0x5c8] sm:$0xf0] }
 0x20f   :  { %2692 = vmatmul.bf16.vlgmr.msrb.gmra.mxu2 %v10641_v8  ;;  %v9820_v8 = vld [vmem:[#allocation14 + $0xf8] sm:$0xf0]  ;;  %v7188_v23 = vor.u32 %v9664_v13, %v7185_v14  ;;  %v9995_v30 = vld [vmem:[#allocation14 + $0x670] sm:$0xf0]  ;;  %v10065_v13 = vld [vmem:[#allocation14 + $0x8a0] sm:$0xf0]  ;;  %v2744_v14 = vmax.f32 %v10679_v19, %v2736_v57 }
 0x210   :  { %5592 = vmatpush.bf16.msra.mxu2 %v7868_v21  ;;  %2714 = vmatpush.bf16.msra.mxu0 %v7284_v32  ;;  %v7784_v9 = vor.u32 %v9820_v8, %v7783_v60  ;;  %v7952_v21 = vor.u32 %v9862_v4, %v7951_v3  ;;  %v9806_v32 = vld [vmem:[#allocation14 + $0x88] sm:$0xf0]  ;;  %v8484_v41 = vor.u32 %v9995_v30, %v8483_v27  ;;  %v9939_v45 = vld [vmem:[#allocation14 + $0x4b0] sm:$0xf0]  ;;  %v9792_v3 = vld [vmem:[#allocation14 + $0x18] sm:$0xf0] }
 0x211   :  { %v8231_v4 = vld [vmem:[#allocation14 + $0x460] sm:$0xf]  ;;  %v8203_v27 = vld [vmem:[#allocation14 + $0x428] sm:$0xf]  ;;  %v8735_v30 = vld [vmem:[#allocation14 + $0x850] sm:$0xf] }
 0x212   :  { %5607 = vmatpush.bf16.msra.mxu3 %v8036_v31  ;;  %2729 = vmatpush.bf16.msra.mxu1 %v7476_v44  ;;  %v7727_v31 = vld [vmem:[#allocation14 + $0x70] sm:$0xf]  ;;  %v2485_v33 = vpop.f32.mrf.mxu2  ;;  %v8455_v44 = vld [vmem:[#allocation14 + $0x620] sm:$0xf]  ;;  %v9960_v57 = vld [vmem:[#allocation14 + $0x558] sm:$0xf0] }
 0x213   :  { %v7728_v42 = vor.u32 %v9806_v32, %v7727_v31  ;;  %v2486_v28 = vadd.f32 %v2485_v33, %v1027_v35  ;;  %v8456_v60 = vor.u32 %v9988_v47, %v8455_v44  ;;  %v10058_v31 = vld [vmem:[#allocation14 + $0x868] sm:$0xf0]  ;;  %v8960_v32 = vor.u32 %v10114_v2, %v8959_v16  ;;  %v8931_v33 = vld [vmem:[#allocation14 + $0x9d8] sm:$0xf]  ;;  %v10051_v44 = vld [vmem:[#allocation14 + $0x830] sm:$0xf0] }
 0x214   :  { %5593 = vmatpush.bf16.msra.mxu2 %v7840_v37  ;;  %2715 = vmatpush.bf16.msra.mxu0 %v7252_v49  ;;  %v1026_v37 = vperm.slane %v10671_v20, 2  ;;  %v7699_v49 = vld [vmem:[#allocation14 + $0x38] sm:$0xf]  ;;  %v8679_v59 = vld [vmem:[#allocation14 + $0x7e0] sm:$0xf] }
 0x215   :  { %v7700_v8 = vor.u32 %v9799_v51, %v7699_v49  ;;  %v2499_v15 = vadd.f32 %v10705_v5, %v2486_v28  ;;  %v8147_v28 = vld [vmem:[#allocation14 + $0x3b8] sm:$0xf]  ;;  %v9211_v16 = vld [vmem:[#allocation14 + $0xc08] sm:$0xf]  ;;  %v10177_v2 = vld [vmem:[#allocation14 + $0xc20] sm:$0xf0] }
 0x216   :  { %5608 = vmatpush.bf16.msra.mxu3 %v8008_v48  ;;  %2730 = vmatpush.bf16.msra.mxu1 %v7444_v61  ;;  %v8288_v48 = vor.u32 %v9946_v46, %v8287_v58  ;;  %v2524_v53 = vpop.f32.mrf.mxu1  ;;  %v8427_v61 = vld [vmem:[#allocation14 + $0x5e8] sm:$0xf]  ;;  %v10107_v58 = vld [vmem:[#allocation14 + $0x9f0] sm:$0xf0]  ;;  %v10720_v46 = vpack.c.bf16 %v2744_v14, %v2744_v14  ;;  %v8847_v14 = vld [vmem:[#allocation14 + $0x930] sm:$0xf] }
 0x217   :  { %v8428_v17 = vor.u32 %v9981_v62, %v8427_v61  ;;  %v8932_v47 = vor.u32 %v10107_v58, %v8931_v33  ;;  %v8875_v61 = vld [vmem:[#allocation14 + $0x968] sm:$0xf]  ;;  %v10093_v62 = vld [vmem:[#allocation14 + $0x980] sm:$0xf0] }
 0x218   :  { %5594 = vmatpush.bf16.msra.mxu2 %v7812_v55  ;;  %2716 = vmatpush.bf16.msra.mxu0 %v7220_v6  ;;  %v8987_v55 = vld [vmem:[#allocation14 + $0xa48] sm:$0xf] }
 0x219   :  { %2731 = vmatmul.bf16.vlgmr.msra.gmra.mxu1 %v10645_v40  ;;  %v2500_v40 = vpop.f32.mrf.mxu3  ;;  %v8988_v6 = vor.u32 %v10121_v56, %v8987_v55  ;;  %v8708_v56 = vor.u32 %v10051_v44, %v8707_v43  ;;  %v9894_v43 = vld [vmem:[#allocation14 + $0x34c] sm:$0xf]  ;;  %v8093_v44 = vld [vmem:[#allocation14 + $0x364] sm:$0xf0] }
 0x21a   :  { %5609 = vmatpush.bf16.msra.mxu3 %v7980_v63  ;;  %5631 = vmatpush.bf16.msrb.mxu1 %v8540_v1  ;;  %v8260_v63 = vor.u32 %v9939_v45, %v8259_v52  ;;  %v7671_v1 = vld [vmem:[#allocation14] sm:$0xf]  ;;  %v2487_v12 = vpop.f32.mrf.mxu2  ;;  %v8175_v40 = vld [vmem:[#allocation14 + $0x3f0] sm:$0xf] }
 0x21b   :  { %v8343_v52 = vld [vmem:[#allocation14 + $0x540] sm:$0xf]  ;;  %v9904_v12 = vld [vmem:[#allocation14 + $0x398] sm:$0xf0] }
 0x21c   :  { %5595 = vmatpush.bf16.msra.mxu2 %v7784_v9  ;;  %2717 = vmatpush.bf16.msra.mxu0 %v7188_v23  ;;  %v2434_v9 = vadd.f32 %v10692_v36, %v1026_v37  ;;  %v8232_v23 = vor.u32 %v9932_v7, %v8231_v4  ;;  %v8400_v37 = vor.u32 %v9974_v26, %v8399_v25  ;;  %v8651_v7 = vld [vmem:[#allocation14 + $0x7a8] sm:$0xf]  ;;  %v8819_v26 = vld [vmem:[#allocation14 + $0x8f8] sm:$0xf] }
 0x21e   :  { %5610 = vmatpush.bf16.msra.mxu3 %v7952_v21  ;;  %5632 = vmatpush.bf16.msrb.mxu1 %v8512_v22  ;;  %v2511_v21 = vpop.f32.mrf.mxu0  ;;  %v7672_v22 = vor.u32 %v9792_v3, %v7671_v1  ;;  %v2447_v19 = vadd.f32 %v10689_v11, %v2434_v9  ;;  %v2526_v5 = vpop.f32.mrf.mxu1  ;;  %v8119_v9 = vld [vmem:[#allocation14 + $0x380] sm:$0xf] }
 0x21f   :  { %2718 = vmatmul.bf16.vlgmr.msra.gmra.mxu0 %v10649_v0  ;;  %v8763_v0 = vld [vmem:[#allocation14 + $0x888] sm:$0xf]  ;;  %v2512_v36 = vadd.f32 %v2511_v21, %v2499_v15  ;;  %v10086_v15 = vld [vmem:[#allocation14 + $0x948] sm:$0xf0]  ;;  %v8120_v21 = vor.u32 %v9904_v12, %v8119_v9  ;;  %v10079_v5 = vld [vmem:[#allocation14 + $0x910] sm:$0xf0] }
 0x220   :  { %5596 = vmatpush.bf16.msra.mxu2 %v7756_v24  ;;  %5618 = vmatpush.bf16.msrb.mxu0 %v8316_v29  ;;  %v8764_v24 = vor.u32 %v10065_v13, %v8763_v0  ;;  %v9925_v29 = vld [vmem:[#allocation14 + $0x440] sm:$0xf0]  ;;  %v2460_v34 = vadd.f32 %v10698_v18, %v2447_v19  ;;  %v10100_v18 = vld [vmem:[#allocation14 + $0x9b8] sm:$0xf0]  ;;  %v8876_v13 = vor.u32 %v10093_v62, %v8875_v61  ;;  %v9831_v62 = vld [vmem:[#allocation14 + $0x154] sm:$0xf] }
 0x221   :  { %v2525_v35 = vadd.f32 %v2524_v53, %v2512_v36  ;;  %v8204_v11 = vor.u32 %v9925_v29, %v8203_v27  ;;  %v10037_v0 = vld [vmem:[#allocation14 + $0x7c0] sm:$0xf0]  ;;  %v8848_v25 = vor.u32 %v10086_v15, %v8847_v14  ;;  %v9212_v27 = vor.u32 %v10177_v2, %v9211_v16  ;;  %v9183_v29 = vld [vmem:[#allocation14 + $0xbd0] sm:$0xf]  ;;  %v9824_v14 = vld [vmem:[#allocation14 + $0x11c] sm:$0xf] }
 0x222   :  { %5611 = vmatpush.bf16.msra.mxu3 %v7924_v38  ;;  %5633 = vmatpush.bf16.msrb.mxu1 %v8484_v41  ;;  %v8736_v38 = vor.u32 %v10058_v31, %v8735_v30  ;;  %v9967_v41 = vld [vmem:[#allocation14 + $0x590] sm:$0xf0]  ;;  %v2473_v53 = vadd.f32 %v10695_v54, %v2460_v34  ;;  %v10170_v30 = vld [vmem:[#allocation14 + $0xbe8] sm:$0xf0]  ;;  %v1028_v31 = vperm.slane %v10671_v20, 4 }
 0x223   :  { %v8372_v49 = vor.u32 %v9967_v41, %v8371_v39  ;;  %v2739_v45 = vmul.f32 0.2, %v2525_v35  ;;  %v8595_v34 = vld [vmem:[#allocation14 + $0x738] sm:$0xf]  ;;  %v10072_v39 = vld [vmem:[#allocation14 + $0x8d8] sm:$0xf0] }
 0x224   :  { %5597 = vmatpush.bf16.msra.mxu2 %v7728_v42  ;;  %5619 = vmatpush.bf16.msrb.mxu0 %v8288_v48  ;;  %v9918_v42 = vld [vmem:[#allocation14 + $0x408] sm:$0xf0]  ;;  %v8903_v48 = vld [vmem:[#allocation14 + $0x9a0] sm:$0xf]  ;;  %v2738_v1 = vmul.f32 0.2, %v2473_v53 }
 0x225   :  { %v8176_v55 = vor.u32 %v9918_v42, %v8175_v40  ;;  %v2747_v3 = vmax.f32 %v2525_v35, %v2739_v45  ;;  %v8820_v35 = vor.u32 %v10079_v5, %v8819_v26  ;;  %v9155_v41 = vld [vmem:[#allocation14 + $0xb98] sm:$0xf]  ;;  %v10163_v40 = vld [vmem:[#allocation14 + $0xbb0] sm:$0xf0]  ;;  %v7869_v45 = vld [vmem:[#allocation14 + $0x1a4] sm:$0xf0] }
 0x226   :  { %5612 = vmatpush.bf16.msra.mxu3 %v7896_v50  ;;  %5634 = vmatpush.bf16.msrb.mxu1 %v8456_v60  ;;  %v2513_v51 = vpop.f32.mrf.mxu0  ;;  %v9911_v50 = vld [vmem:[#allocation14 + $0x3d0] sm:$0xf0]  ;;  %v10044_v60 = vld [vmem:[#allocation14 + $0x7f8] sm:$0xf0]  ;;  %v2746_v36 = vmax.f32 %v2473_v53, %v2738_v1  ;;  %v10149_v9 = vld [vmem:[#allocation14 + $0xb40] sm:$0xf0] }
 0x227   :  { %v8148_v4 = vor.u32 %v9911_v50, %v8147_v28  ;;  %v9887_v28 = vld [vmem:[#allocation14 + $0x314] sm:$0xf]  ;;  %v8065_v50 = vld [vmem:[#allocation14 + $0x32c] sm:$0xf0]  ;;  %v7813_v15 = vld [vmem:[#allocation14 + $0x134] sm:$0xf0] }
 0x228   :  { %5598 = vmatpush.bf16.msra.mxu2 %v7700_v8  ;;  %5620 = vmatpush.bf16.msrb.mxu0 %v8260_v63  ;;  %v8904_v8 = vor.u32 %v10100_v18, %v8903_v48  ;;  %v8344_v63 = vor.u32 %v9960_v57, %v8343_v52  ;;  %v10731_v58 = vpack.c.bf16 %v2746_v36, %v2746_v36  ;;  %v8567_v48 = vld [vmem:[#allocation14 + $0x700] sm:$0xf]  ;;  %v10016_v18 = vld [vmem:[#allocation14 + $0x718] sm:$0xf0]  ;;  %v10142_v36 = vld [vmem:[#allocation14 + $0xb08] sm:$0xf0] }
 0x229   :  { %5613 = vmatmul.bf16.vlgmr.msra.gmra.mxu3 %v10716_v10  ;;  %v9156_v52 = vor.u32 %v10163_v40, %v9155_v41  ;;  %v10156_v57 = vld [vmem:[#allocation14 + $0xb78] sm:$0xf0]  ;;  %v7785_v5 = vld [vmem:[#allocation14 + $0xfc] sm:$0xf0]  ;;  %v7757_v40 = vld [vmem:[#allocation14 + $0xc4] sm:$0xf0] }
 0x22a   :  { %5657 = vmatpush.bf16.msrb.mxu3 %v8988_v6  ;;  %5635 = vmatpush.bf16.msrb.mxu1 %v8428_v17  ;;  %v8680_v6 = vor.u32 %v10044_v60, %v8679_v59  ;;  %v10727_v17 = vpack.c.bf16 %v2747_v3, %v2747_v3  ;;  %v8568_v60 = vor.u32 %v10016_v18, %v8567_v48  ;;  %v7841_v3 = vld [vmem:[#allocation14 + $0x16c] sm:$0xf0]  ;;  %v10128_v48 = vld [vmem:[#allocation14 + $0xa98] sm:$0xf0] }
 0x22b   :  { %v9407_v18 = vld [vmem:[#allocation14 + $0xd90] sm:$0xf] }
 0x22c   :  { %5599 = vmatpush.bf16.msra.mxu2 %v7672_v22  ;;  %5621 = vmatpush.bf16.msrb.mxu0 %v8232_v23  ;;  %v10725_v54 = vpop.f32.mrf.mxu3  ;;  %v8652_v22 = vor.u32 %v10037_v0, %v8651_v7  ;;  %v8623_v23 = vld [vmem:[#allocation14 + $0x770] sm:$0xf]  ;;  %v9880_v7 = vld [vmem:[#allocation14 + $0x2dc] sm:$0xf]  ;;  %v8037_v0 = vld [vmem:[#allocation14 + $0x2f4] sm:$0xf0] }
 0x22e   :  { %5658 = vmatpush.bf16.msrb.mxu3 %v8960_v32  ;;  %5636 = vmatpush.bf16.msrb.mxu1 %v8400_v37  ;;  %v10023_v37 = vld [vmem:[#allocation14 + $0x750] sm:$0xf0] }
 0x22f   :  { %5600 = vmatmul.bf16.vlgmr.msra.gmra.mxu2 %v10720_v46 }
 0x230   :  { %5644 = vmatpush.bf16.msrb.mxu2 %v8764_v24  ;;  %5622 = vmatpush.bf16.msrb.mxu0 %v8204_v11  ;;  %v10030_v24 = vld [vmem:[#allocation14 + $0x788] sm:$0xf0]  ;;  %v8791_v11 = vld [vmem:[#allocation14 + $0x8c0] sm:$0xf] }
 0x231   :  { %v8624_v33 = vor.u32 %v10030_v24, %v8623_v23  ;;  %v8792_v51 = vor.u32 %v10072_v39, %v8791_v11  ;;  %v9873_v23 = vld [vmem:[#allocation14 + $0x2a4] sm:$0xf]  ;;  %v8009_v24 = vld [vmem:[#allocation14 + $0x2bc] sm:$0xf0]  ;;  %v7981_v11 = vld [vmem:[#allocation14 + $0x284] sm:$0xf0] }
 0x232   :  { %5659 = vmatpush.bf16.msrb.mxu3 %v8932_v47  ;;  %5637 = vmatpush.bf16.msrb.mxu1 %v8372_v49  ;;  %v2537_v19 = vpop.f32.mrf.mxu2  ;;  %v8596_v47 = vor.u32 %v10023_v37, %v8595_v34  ;;  %v9838_v49 = vld [vmem:[#allocation14 + $0x18c] sm:$0xf]  ;;  %v9435_v34 = vld [vmem:[#allocation14 + $0xdc8] sm:$0xf]  ;;  %v10233_v37 = vld [vmem:[#allocation14 + $0xde0] sm:$0xf0] }
 0x233   :  { %v2538_v20 = vadd.f32 %v2537_v19, %v1028_v31  ;;  %v7872_v61 = vor.u32 %v9838_v49, %v7869_v45  ;;  %v9817_v19 = vld [vmem:[#allocation14 + $0xe4] sm:$0xf]  ;;  %v9810_v39 = vld [vmem:[#allocation14 + $0xac] sm:$0xf] }
 0x234   :  { %5645 = vmatpush.bf16.msrb.mxu2 %v8736_v38  ;;  %5623 = vmatpush.bf16.msrb.mxu0 %v8176_v55  ;;  %v2552_v32 = vpop.f32.mrf.mxu3  ;;  %v9184_v38 = vor.u32 %v10170_v30, %v9183_v29  ;;  %v8096_v55 = vor.u32 %v9894_v43, %v8093_v44  ;;  %v9043_v30 = vld [vmem:[#allocation14 + $0xab8] sm:$0xf]  ;;  %v7788_v41 = vor.u32 %v9817_v19, %v7785_v5  ;;  %v9015_v44 = vld [vmem:[#allocation14 + $0xa80] sm:$0xf]  ;;  %v10226_v49 = vld [vmem:[#allocation14 + $0xda8] sm:$0xf0] }
 0x235   :  { %v2551_v59 = vadd.f32 %v10725_v54, %v2538_v20  ;;  %v7844_v54 = vor.u32 %v9831_v62, %v7841_v3  ;;  %v8012_v32 = vor.u32 %v9873_v23, %v8009_v24  ;;  %v9408_v45 = vor.u32 %v10226_v49, %v9407_v18  ;;  %v7925_v62 = vld [vmem:[#allocation14 + $0x214] sm:$0xf0]  ;;  %v10062_v5 = vld [vmem:[#allocation14 + $0x88c] sm:$0xf]  ;;  %v8737_v18 = vld [vmem:[#allocation14 + $0x86c] sm:$0xf0] }
 0x236   :  { %5660 = vmatpush.bf16.msrb.mxu3 %v8904_v8  ;;  %5638 = vmatpush.bf16.msrb.mxu1 %v8344_v63  ;;  %v2576_v42 = vpop.f32.mrf.mxu1  ;;  %v9922_v49 = vld [vmem:[#allocation14 + $0x42c] sm:$0xf] }
 0x238   :  { %5646 = vmatpush.bf16.msrb.mxu2 %v8708_v56  ;;  %5624 = vmatpush.bf16.msrb.mxu0 %v8148_v4  ;;  %v9127_v56 = vld [vmem:[#allocation14 + $0xb60] sm:$0xf]  ;;  %v8068_v4 = vor.u32 %v9887_v28, %v8065_v50  ;;  %v9016_v28 = vor.u32 %v10128_v48, %v9015_v44  ;;  %v9295_v44 = vld [vmem:[#allocation14 + $0xcb0] sm:$0xf] }
 0x239   :  { %5639 = vmatmul.bf16.vlgmr.msrb.gmra.mxu1 %v10727_v17  ;;  %v9128_v63 = vor.u32 %v10156_v57, %v9127_v56  ;;  %v9803_v56 = vld [vmem:[#allocation14 + $0x74] sm:$0xf]  ;;  %v7729_v57 = vld [vmem:[#allocation14 + $0x8c] sm:$0xf0] }
 0x23a   :  { %5661 = vmatpush.bf16.msrb.mxu3 %v8876_v13  ;;  %v2539_v53 = vpop.f32.mrf.mxu2 }
 0x23b   :  { %v8317_v53 = vld [vmem:[#allocation14 + $0x524] sm:$0xf0] }
 0x23c   :  { %5647 = vmatpush.bf16.msrb.mxu2 %v8680_v6  ;;  %5625 = vmatpush.bf16.msrb.mxu0 %v8120_v21  ;;  %v2563_v8 = vpop.f32.mrf.mxu0  ;;  %v9099_v6 = vld [vmem:[#allocation14 + $0xb28] sm:$0xf]  ;;  %v8040_v21 = vor.u32 %v9880_v7, %v8037_v0  ;;  %v9796_v7 = vld [vmem:[#allocation14 + $0x3c] sm:$0xf]  ;;  %v7701_v0 = vld [vmem:[#allocation14 + $0x54] sm:$0xf0] }
 0x23d   :  { %v2564_v1 = vadd.f32 %v2563_v8, %v2551_v59  ;;  %v9100_v16 = vor.u32 %v10149_v9, %v9099_v6  ;;  %v9852_v59 = vld [vmem:[#allocation14 + $0x1fc] sm:$0xf]  ;;  %v9379_v8 = vld [vmem:[#allocation14 + $0xd58] sm:$0xf] }
 0x23e   :  { %5662 = vmatpush.bf16.msrb.mxu3 %v8848_v25  ;;  %v2578_v12 = vpop.f32.mrf.mxu1  ;;  %v10740_v6 = vld [vmem:[#allocation13] sm:$0xff] }
 0x23f   :  { %5626 = vmatmul.bf16.vlgmr.msrb.gmra.mxu0 %v10731_v58  ;;  %v2577_v13 = vadd.f32 %v2576_v42, %v2564_v1  ;;  %v9859_v42 = vld [vmem:[#allocation14 + $0x234] sm:$0xf]  ;;  %v8289_v1 = vld [vmem:[#allocation14 + $0x4ec] sm:$0xf0]  ;;  %v1029_v9 = vperm.slane %v10740_v6, 5  ;;  %v7732_v12 = vor.u32 %v9803_v56, %v7729_v57 }
 0x240   :  { %5648 = vmatpush.bf16.msrb.mxu2 %v8652_v22  ;;  %5670 = vmatpush.bf16.msra.mxu0 %v9212_v27  ;;  %v9071_v22 = vld [vmem:[#allocation14 + $0xaf0] sm:$0xf]  ;;  %v7816_v27 = vor.u32 %v9824_v14, %v7813_v15  ;;  %v9845_v14 = vld [vmem:[#allocation14 + $0x1c4] sm:$0xf] }
 0x241   :  { %v2740_v2 = vmul.f32 0.2, %v2577_v13  ;;  %v9072_v29 = vor.u32 %v10142_v36, %v9071_v22  ;;  %v9936_v22 = vld [vmem:[#allocation14 + $0x49c] sm:$0xf]  ;;  %v8261_v36 = vld [vmem:[#allocation14 + $0x4b4] sm:$0xf0] }
 0x242   :  { %5663 = vmatpush.bf16.msrb.mxu3 %v8820_v35  ;;  %v9866_v35 = vld [vmem:[#allocation14 + $0x26c] sm:$0xf] }
 0x243   :  { %v2748_v25 = vmax.f32 %v2577_v13, %v2740_v2  ;;  %v10212_v2 = vld [vmem:[#allocation14 + $0xd38] sm:$0xf0] }
 0x244   :  { %5649 = vmatpush.bf16.msrb.mxu2 %v8624_v33  ;;  %5671 = vmatpush.bf16.msra.mxu0 %v9184_v38  ;;  %v2565_v26 = vpop.f32.mrf.mxu0  ;;  %v10135_v33 = vld [vmem:[#allocation14 + $0xad0] sm:$0xf0]  ;;  %v9436_v38 = vor.u32 %v10233_v37, %v9435_v34  ;;  %v8765_v34 = vld [vmem:[#allocation14 + $0x8a4] sm:$0xf0]  ;;  %v9929_v37 = vld [vmem:[#allocation14 + $0x464] sm:$0xf] }
 0x245   :  { %v10735_v31 = vpack.c.bf16 %v2748_v25, %v2748_v25  ;;  %v9044_v43 = vor.u32 %v10135_v33, %v9043_v30  ;;  %v7704_v25 = vor.u32 %v9796_v7, %v7701_v0  ;;  %v9789_v26 = vld [vmem:[#allocation14 + $0x4] sm:$0xf]  ;;  %v8264_v30 = vor.u32 %v9936_v22, %v8261_v36  ;;  %v10184_v7 = vld [vmem:[#allocation14 + $0xc58] sm:$0xf0]  ;;  %v8149_v22 = vld [vmem:[#allocation14 + $0x3d4] sm:$0xf0] }
 0x246   :  { %5664 = vmatpush.bf16.msrb.mxu3 %v8792_v51  ;;  %5683 = vmatpush.bf16.msra.mxu1 %v9436_v38  ;;  %v7953_v51 = vld [vmem:[#allocation14 + $0x24c] sm:$0xf0]  ;;  %v10205_v33 = vld [vmem:[#allocation14 + $0xd00] sm:$0xf0] }
 0x247   :  { %v7956_v50 = vor.u32 %v9859_v42, %v7953_v51  ;;  %v10055_v42 = vld [vmem:[#allocation14 + $0x854] sm:$0xf]  ;;  %v8205_v51 = vld [vmem:[#allocation14 + $0x444] sm:$0xf0] }
 0x248   :  { %5650 = vmatpush.bf16.msrb.mxu2 %v8596_v47  ;;  %5672 = vmatpush.bf16.msra.mxu0 %v9156_v52  ;;  %v7984_v47 = vor.u32 %v9866_v35, %v7981_v11  ;;  %v9950_v52 = vld [vmem:[#allocation14 + $0x50c] sm:$0xf]  ;;  %v8233_v35 = vld [vmem:[#allocation14 + $0x47c] sm:$0xf0]  ;;  %v8740_v56 = vor.u32 %v10055_v42, %v8737_v18  ;;  %v8208_v57 = vor.u32 %v9922_v49, %v8205_v51  ;;  %v8625_v42 = vld [vmem:[#allocation14 + $0x78c] sm:$0xf0] }
 0x249   :  { %v8905_v18 = vld [vmem:[#allocation14 + $0x9bc] sm:$0xf0] }
 0x24a   :  { %5709 = vmatpush.bf16.msra.mxu3 %v8096_v55  ;;  %v7760_v55 = vor.u32 %v9810_v39, %v7757_v40  ;;  %5684 = vmatpush.bf16.msra.mxu1 %v9408_v45  ;;  %v8768_v40 = vor.u32 %v10062_v5, %v8765_v34 }
 0x24c   :  { %5651 = vmatpush.bf16.msrb.mxu2 %v8568_v60  ;;  %5673 = vmatpush.bf16.msra.mxu0 %v9128_v63  ;;  %v10738_v20 = vpop.f32.mrf.mxu3  ;;  %v8320_v60 = vor.u32 %v9950_v52, %v8317_v53  ;;  %v9943_v63 = vld [vmem:[#allocation14 + $0x4d4] sm:$0xf] }
 0x24d   :  { %v8292_v15 = vor.u32 %v9943_v63, %v8289_v1  ;;  %v9915_v63 = vld [vmem:[#allocation14 + $0x3f4] sm:$0xf]  ;;  %v8177_v1 = vld [vmem:[#allocation14 + $0x40c] sm:$0xf0] }
 0x24e   :  { %5710 = vmatpush.bf16.msra.mxu3 %v8068_v4 }
 0x24f   :  { %5652 = vmatmul.bf16.vlgmr.msrb.gmra.mxu2 %v10735_v31 }
 0x250   :  { %5696 = vmatpush.bf16.msra.mxu2 %v7872_v61  ;;  %5674 = vmatpush.bf16.msra.mxu0 %v9100_v16  ;;  %v10219_v61 = vld [vmem:[#allocation14 + $0xd70] sm:$0xf0]  ;;  %v9351_v16 = vld [vmem:[#allocation14 + $0xd20] sm:$0xf] }
 0x251   :  { %v9380_v3 = vor.u32 %v10219_v61, %v9379_v8  ;;  %v9352_v23 = vor.u32 %v10212_v2, %v9351_v16  ;;  %v8989_v8 = vld [vmem:[#allocation14 + $0xa64] sm:$0xf0]  ;;  %v8180_v16 = vor.u32 %v9915_v63, %v8177_v1 }
 0x252   :  { %5711 = vmatpush.bf16.msra.mxu3 %v8040_v21  ;;  %v2589_v4 = vpop.f32.mrf.mxu2  ;;  %v7897_v21 = vld [vmem:[#allocation14 + $0x1dc] sm:$0xf0] }
 0x253   :  { %5685 = vmatpush.bf16.msra.mxu1 %v9380_v3  ;;  %v2590_v19 = vadd.f32 %v2589_v4, %v1029_v9  ;;  %v10041_v9 = vld [vmem:[#allocation14 + $0x7e4] sm:$0xf] }
 0x254   :  { %5697 = vmatpush.bf16.msra.mxu2 %v7844_v54  ;;  %5675 = vmatpush.bf16.msra.mxu0 %v9072_v29  ;;  %v2604_v13 = vpop.f32.mrf.mxu3  ;;  %v7928_v54 = vor.u32 %v9852_v59, %v7925_v62  ;;  %v7900_v29 = vor.u32 %v9845_v14, %v7897_v21  ;;  %v8709_v59 = vld [vmem:[#allocation14 + $0x834] sm:$0xf0]  ;;  %v10111_v14 = vld [vmem:[#allocation14 + $0xa14] sm:$0xf]  ;;  %v9908_v21 = vld [vmem:[#allocation14 + $0x3bc] sm:$0xf] }
 0x256   :  { %5712 = vmatpush.bf16.msra.mxu3 %v8012_v32  ;;  %v2628_v24 = vpop.f32.mrf.mxu1  ;;  %v9323_v32 = vld [vmem:[#allocation14 + $0xce8] sm:$0xf] }
 0x257   :  { %5686 = vmatpush.bf16.msra.mxu1 %v9352_v23  ;;  %v9324_v11 = vor.u32 %v10205_v33, %v9323_v32  ;;  %v10006_v23 = vld [vmem:[#allocation14 + $0x6cc] sm:$0xf]  ;;  %v9999_v32 = vld [vmem:[#allocation14 + $0x694] sm:$0xf]  ;;  %v8513_v33 = vld [vmem:[#allocation14 + $0x6ac] sm:$0xf0] }
 0x258   :  { %5698 = vmatpush.bf16.msra.mxu2 %v7816_v27  ;;  %5676 = vmatpush.bf16.msra.mxu0 %v9044_v43  ;;  %v7673_v27 = vld [vmem:[#allocation14 + $0x1c] sm:$0xf0]  ;;  %v8236_v43 = vor.u32 %v9929_v37, %v8233_v35  ;;  %v8933_v37 = vld [vmem:[#allocation14 + $0x9f4] sm:$0xf0]  ;;  %v9901_v35 = vld [vmem:[#allocation14 + $0x384] sm:$0xf] }
 0x259   :  { %v7676_v39 = vor.u32 %v9789_v26, %v7673_v27  ;;  %v10034_v26 = vld [vmem:[#allocation14 + $0x7ac] sm:$0xf]  ;;  %v8653_v27 = vld [vmem:[#allocation14 + $0x7c4] sm:$0xf0] }
 0x25a   :  { %5713 = vmatpush.bf16.msra.mxu3 %v7984_v47  ;;  %v2591_v38 = vpop.f32.mrf.mxu2  ;;  %v10198_v47 = vld [vmem:[#allocation14 + $0xcc8] sm:$0xf0] }
 0x25b   :  { %5687 = vmatpush.bf16.msra.mxu1 %v9324_v11  ;;  %v9296_v52 = vor.u32 %v10198_v47, %v9295_v44  ;;  %v8121_v11 = vld [vmem:[#allocation14 + $0x39c] sm:$0xf0]  ;;  %v8516_v38 = vor.u32 %v9999_v32, %v8513_v33  ;;  %v9992_v44 = vld [vmem:[#allocation14 + $0x65c] sm:$0xf]  ;;  %v8485_v47 = vld [vmem:[#allocation14 + $0x674] sm:$0xf0] }
 0x25c   :  { %5699 = vmatpush.bf16.msra.mxu2 %v7788_v41  ;;  %5677 = vmatpush.bf16.msra.mxu0 %v9016_v28  ;;  %v2603_v41 = vadd.f32 %v10738_v20, %v2590_v19  ;;  %v2615_v48 = vpop.f32.mrf.mxu0  ;;  %v10048_v20 = vld [vmem:[#allocation14 + $0x81c] sm:$0xf]  ;;  %v9267_v28 = vld [vmem:[#allocation14 + $0xc78] sm:$0xf]  ;;  %v8488_v49 = vor.u32 %v9992_v44, %v8485_v47  ;;  %v10174_v47 = vld [vmem:[#allocation14 + $0xc0c] sm:$0xf] }
 0x25d   :  { %v8712_v4 = vor.u32 %v10048_v20, %v8709_v59  ;;  %v8457_v20 = vld [vmem:[#allocation14 + $0x63c] sm:$0xf0]  ;;  %v8877_v59 = vld [vmem:[#allocation14 + $0x984] sm:$0xf0] }
 0x25e   :  { %5714 = vmatpush.bf16.msra.mxu3 %v7956_v50  ;;  %v2616_v53 = vadd.f32 %v2615_v48, %v2603_v41  ;;  %v2630_v45 = vpop.f32.mrf.mxu1  ;;  %v10191_v50 = vld [vmem:[#allocation14 + $0xc90] sm:$0xf0]  ;;  %v10097_v48 = vld [vmem:[#allocation14 + $0x9a4] sm:$0xf] }
 0x25f   :  { %5688 = vmatpush.bf16.msra.mxu1 %v9296_v52  ;;  %v9268_v61 = vor.u32 %v10191_v50, %v9267_v28  ;;  %v10027_v41 = vld [vmem:[#allocation14 + $0x774] sm:$0xf]  ;;  %v8908_v45 = vor.u32 %v10097_v48, %v8905_v18  ;;  %v10090_v50 = vld [vmem:[#allocation14 + $0x96c] sm:$0xf]  ;;  %v9213_v48 = vld [vmem:[#allocation14 + $0xc24] sm:$0xf0] }
 0x260   :  { %5700 = vmatpush.bf16.msra.mxu2 %v7760_v55  ;;  %5722 = vmatpush.bf16.msrb.mxu0 %v8320_v60  ;;  %v2629_v55 = vadd.f32 %v2628_v24, %v2616_v53  ;;  %v10118_v60 = vld [vmem:[#allocation14 + $0xa4c] sm:$0xf]  ;;  %v8541_v24 = vld [vmem:[#allocation14 + $0x6e4] sm:$0xf0]  ;;  %v8628_v52 = vor.u32 %v10027_v41, %v8625_v42  ;;  %v10020_v53 = vld [vmem:[#allocation14 + $0x73c] sm:$0xf]  ;;  %v8880_v1 = vor.u32 %v10090_v50, %v8877_v59 }
 0x261   :  { %v8992_v13 = vor.u32 %v10118_v60, %v8989_v8  ;;  %v8544_v19 = vor.u32 %v10006_v23, %v8541_v24  ;;  %v8401_v23 = vld [vmem:[#allocation14 + $0x5cc] sm:$0xf0]  ;;  %v7819_v41 = vld [vmem:[#allocation14 + $0x120] sm:$0xf]  ;;  %v9898_v42 = vld [vmem:[#allocation14 + $0x368] sm:$0xf0] }
 0x262   :  { %5715 = vmatpush.bf16.msra.mxu3 %v7928_v54  ;;  %v2741_v62 = vmul.f32 0.2, %v2629_v55  ;;  %v8681_v54 = vld [vmem:[#allocation14 + $0x7fc] sm:$0xf0]  ;;  %v9891_v50 = vld [vmem:[#allocation14 + $0x330] sm:$0xf0] }
 0x263   :  { %5689 = vmatpush.bf16.msra.mxu1 %v9268_v61  ;;  %v10013_v61 = vld [vmem:[#allocation14 + $0x704] sm:$0xf] }
 0x264   :  { %5701 = vmatpush.bf16.msra.mxu2 %v7732_v12  ;;  %5723 = vmatpush.bf16.msrb.mxu0 %v8292_v15  ;;  %v2749_v3 = vmax.f32 %v2629_v55, %v2741_v62  ;;  %v9239_v12 = vld [vmem:[#allocation14 + $0xc40] sm:$0xf]  ;;  %v2617_v0 = vpop.f32.mrf.mxu0  ;;  %v8961_v15 = vld [vmem:[#allocation14 + $0xa2c] sm:$0xf0]  ;;  %v8597_v55 = vld [vmem:[#allocation14 + $0x754] sm:$0xf0] }
 0x265   :  { %v9240_v36 = vor.u32 %v10184_v7, %v9239_v12  ;;  %v8964_v5 = vor.u32 %v10111_v14, %v8961_v15  ;;  %v8600_v8 = vor.u32 %v10020_v53, %v8597_v55  ;;  %v8569_v62 = vld [vmem:[#allocation14 + $0x71c] sm:$0xf0]  ;;  %v8849_v7 = vld [vmem:[#allocation14 + $0x94c] sm:$0xf0]  ;;  %v7791_v55 = vld [vmem:[#allocation14 + $0xe8] sm:$0xf] }
 0x266   :  { %5716 = vmatpush.bf16.msra.mxu3 %v7900_v29  ;;  %v10745_v2 = vpack.c.bf16 %v2749_v3, %v2749_v3  ;;  %v10104_v29 = vld [vmem:[#allocation14 + $0x9dc] sm:$0xf]  ;;  %v10083_v3 = vld [vmem:[#allocation14 + $0x934] sm:$0xf]  ;;  %v7875_v0 = vld [vmem:[#allocation14 + $0x190] sm:$0xf]  ;;  %v8572_v15 = vor.u32 %v10013_v61, %v8569_v62 }
 0x267   :  { %5690 = vmatpush.bf16.msra.mxu1 %v9240_v36  ;;  %v9971_v36 = vld [vmem:[#allocation14 + $0x5b4] sm:$0xf]  ;;  %v9185_v61 = vld [vmem:[#allocation14 + $0xbec] sm:$0xf0] }
 0x268   :  { %5702 = vmatpush.bf16.msra.mxu2 %v7704_v25  ;;  %5724 = vmatpush.bf16.msrb.mxu0 %v8264_v30  ;;  %v8684_v25 = vor.u32 %v10041_v9, %v8681_v54  ;;  %v8152_v30 = vor.u32 %v9908_v21, %v8149_v22  ;;  %v8429_v9 = vld [vmem:[#allocation14 + $0x604] sm:$0xf0]  ;;  %v10076_v22 = vld [vmem:[#allocation14 + $0x8fc] sm:$0xf] }
 0x269   :  { %5665 = vmatmul.bf16.vlgmr.msrb.gmra.mxu3 %v10745_v2 }
 0x26a   :  { %5761 = vmatpush.bf16.msrb.mxu3 %v8992_v13  ;;  %v9842_v13 = vld [vmem:[#allocation14 + $0x1a8] sm:$0xf0] }
 0x26b   :  { %5735 = vmatpush.bf16.msrb.mxu1 %v8544_v19  ;;  %v7876_v21 = vor.u32 %v9842_v13, %v7875_v0  ;;  %v10160_v0 = vld [vmem:[#allocation14 + $0xb9c] sm:$0xf]  ;;  %v9157_v13 = vld [vmem:[#allocation14 + $0xbb4] sm:$0xf0] }
 0x26c   :  { %5703 = vmatpush.bf16.msra.mxu2 %v7676_v39  ;;  %5725 = vmatpush.bf16.msrb.mxu0 %v8236_v43  ;;  %v10748_v34 = vpop.f32.mrf.mxu3  ;;  %v8656_v39 = vor.u32 %v10034_v26, %v8653_v27  ;;  %v8124_v43 = vor.u32 %v9901_v35, %v8121_v11  ;;  %v7847_v26 = vld [vmem:[#allocation14 + $0x158] sm:$0xf]  ;;  %v9835_v27 = vld [vmem:[#allocation14 + $0x170] sm:$0xf0]  ;;  %v9964_v35 = vld [vmem:[#allocation14 + $0x57c] sm:$0xf] }
 0x26d   :  { %v7848_v33 = vor.u32 %v9835_v27, %v7847_v26  ;;  %v8373_v11 = vld [vmem:[#allocation14 + $0x594] sm:$0xf0] }
 0x26e   :  { %5762 = vmatpush.bf16.msrb.mxu3 %v8964_v5  ;;  %v8404_v5 = vor.u32 %v9971_v36, %v8401_v23  ;;  %v9877_v36 = vld [vmem:[#allocation14 + $0x2c0] sm:$0xf0] }
 0x26f   :  { %5704 = vmatmul.bf16.vlgmr.msra.gmra.mxu2 %v10720_v46  ;;  %5736 = vmatpush.bf16.msrb.mxu1 %v8516_v38  ;;  %v10153_v23 = vld [vmem:[#allocation14 + $0xb64] sm:$0xf] }
 0x270   :  { %5748 = vmatpush.bf16.msrb.mxu2 %v8768_v40  ;;  %5726 = vmatpush.bf16.msrb.mxu0 %v8208_v57  ;;  %v8936_v40 = vor.u32 %v10104_v29, %v8933_v37  ;;  %v1030_v57 = vperm.slane %v10740_v6, 6  ;;  %v10069_v37 = vld [vmem:[#allocation14 + $0x8c4] sm:$0xf] }
 0x272   :  { %v2641_v51 = vpop.f32.mrf.mxu2  ;;  %5763 = vmatpush.bf16.msrb.mxu3 %v8936_v40  ;;  %v8099_v40 = vld [vmem:[#allocation14 + $0x350] sm:$0xf] }
 0x273   :  { %5737 = vmatpush.bf16.msrb.mxu1 %v8488_v49  ;;  %v2642_v12 = vadd.f32 %v2641_v51, %v1030_v57  ;;  %v9957_v51 = vld [vmem:[#allocation14 + $0x544] sm:$0xf]  ;;  %v9216_v57 = vor.u32 %v10174_v47, %v9213_v48  ;;  %v8771_v47 = vld [vmem:[#allocation14 + $0x890] sm:$0xf]  ;;  %v10066_v48 = vld [vmem:[#allocation14 + $0x8a8] sm:$0xf0] }
 0x274   :  { %5749 = vmatpush.bf16.msrb.mxu2 %v8740_v56  ;;  %5727 = vmatpush.bf16.msrb.mxu0 %v8180_v16  ;;  %v9985_v56 = vld [vmem:[#allocation14 + $0x624] sm:$0xf]  ;;  %v2656_v28 = vpop.f32.mrf.mxu3  ;;  %v8852_v16 = vor.u32 %v10083_v3, %v8849_v7  ;;  %v9814_v3 = vld [vmem:[#allocation14 + $0xc8] sm:$0xf0] }
 0x275   :  { %v8460_v60 = vor.u32 %v9985_v56, %v8457_v20  ;;  %v2655_v24 = vadd.f32 %v10748_v34, %v2642_v12  ;;  %v9828_v34 = vld [vmem:[#allocation14 + $0x138] sm:$0xf0]  ;;  %v9821_v56 = vld [vmem:[#allocation14 + $0x100] sm:$0xf0]  ;;  %v8071_v28 = vld [vmem:[#allocation14 + $0x318] sm:$0xf] }
 0x276   :  { %v2680_v63 = vpop.f32.mrf.mxu1  ;;  %5764 = vmatpush.bf16.msrb.mxu3 %v8908_v45  ;;  %v7820_v49 = vor.u32 %v9828_v34, %v7819_v41  ;;  %v8100_v45 = vor.u32 %v9898_v42, %v8099_v40  ;;  %v7792_v62 = vor.u32 %v9821_v56, %v7791_v55  ;;  %v9884_v12 = vld [vmem:[#allocation14 + $0x2f8] sm:$0xf0]  ;;  %v7679_v41 = vld [vmem:[#allocation14 + $0x8] sm:$0xf]  ;;  %v9793_v34 = vld [vmem:[#allocation14 + $0x20] sm:$0xf0] }
 0x277   :  { %5738 = vmatpush.bf16.msrb.mxu1 %v8460_v60  ;;  %v7959_v40 = vld [vmem:[#allocation14 + $0x238] sm:$0xf]  ;;  %v7931_v55 = vld [vmem:[#allocation14 + $0x200] sm:$0xf] }
 0x278   :  { %5750 = vmatpush.bf16.msrb.mxu2 %v8712_v4  ;;  %5728 = vmatpush.bf16.msrb.mxu0 %v8152_v30  ;;  %v9978_v4 = vld [vmem:[#allocation14 + $0x5ec] sm:$0xf] }
 0x279   :  { %v8432_v54 = vor.u32 %v9978_v4, %v8429_v9  ;;  %5717 = vmatmul.bf16.vlgmr.msra.gmra.mxu3 %v10716_v10  ;;  %v8043_v9 = vld [vmem:[#allocation14 + $0x2e0] sm:$0xf] }
 0x27a   :  { %v2643_v14 = vpop.f32.mrf.mxu2  ;;  %5765 = vmatpush.bf16.msrb.mxu3 %v8880_v1  ;;  %v7763_v1 = vld [vmem:[#allocation14 + $0xb0] sm:$0xf] }
 0x27b   :  { %5739 = vmatpush.bf16.msrb.mxu1 %v8432_v54  ;;  %v7764_v54 = vor.u32 %v9814_v3, %v7763_v1  ;;  %v8044_v14 = vor.u32 %v9884_v12, %v8043_v9  ;;  %v10125_v3 = vld [vmem:[#allocation14 + $0xa84] sm:$0xf] }
 0x27c   :  { %5751 = vmatpush.bf16.msrb.mxu2 %v8684_v25  ;;  %5729 = vmatpush.bf16.msrb.mxu0 %v8124_v43  ;;  %v8821_v25 = vld [vmem:[#allocation14 + $0x914] sm:$0xf0]  ;;  %v2667_v19 = vpop.f32.mrf.mxu0  ;;  %v8376_v43 = vor.u32 %v9964_v35, %v8373_v11  ;;  %v10146_v35 = vld [vmem:[#allocation14 + $0xb2c] sm:$0xf]  ;;  %v9101_v11 = vld [vmem:[#allocation14 + $0xb44] sm:$0xf0] }
 0x27d   :  { %v2668_v29 = vadd.f32 %v2667_v19, %v2655_v24  ;;  %v8824_v32 = vor.u32 %v10076_v22, %v8821_v25  ;;  %v8015_v22 = vld [vmem:[#allocation14 + $0x2a8] sm:$0xf]  ;;  %v9129_v24 = vld [vmem:[#allocation14 + $0xb7c] sm:$0xf0] }
 0x27e   :  { %v2682_v30 = vpop.f32.mrf.mxu1  ;;  %5766 = vmatpush.bf16.msrb.mxu3 %v8852_v16  ;;  %v9807_v16 = vld [vmem:[#allocation14 + $0x90] sm:$0xf0]  ;;  %v8016_v27 = vor.u32 %v9877_v36, %v8015_v22  ;;  %v7707_v19 = vld [vmem:[#allocation14 + $0x40] sm:$0xf]  ;;  %v9954_v22 = vld [vmem:[#allocation14 + $0x528] sm:$0xf0] }
 0x27f   :  { %v2681_v38 = vadd.f32 %v2680_v63, %v2668_v29  ;;  %5740 = vmatpush.bf16.msrb.mxu1 %v8404_v5  ;;  %v8072_v63 = vor.u32 %v9891_v50, %v8071_v28  ;;  %v9800_v5 = vld [vmem:[#allocation14 + $0x58] sm:$0xf0]  ;;  %v9132_v29 = vor.u32 %v10153_v23, %v9129_v24  ;;  %v7987_v30 = vld [vmem:[#allocation14 + $0x270] sm:$0xf]  ;;  %v10059_v28 = vld [vmem:[#allocation14 + $0x870] sm:$0xf0] }
 0x280   :  { %5752 = vmatpush.bf16.msrb.mxu2 %v8656_v39  ;;  %v8793_v39 = vld [vmem:[#allocation14 + $0x8dc] sm:$0xf0] }
 0x281   :  { %v2742_v44 = vmul.f32 0.2, %v2681_v38  ;;  %v8796_v18 = vor.u32 %v10069_v37, %v8793_v39 }
 0x282   :  { %5767 = vmatpush.bf16.msrb.mxu3 %v8824_v32  ;;  %v9870_v32 = vld [vmem:[#allocation14 + $0x288] sm:$0xf0] }
 0x283   :  { %v2750_v53 = vmax.f32 %v2681_v38, %v2742_v44  ;;  %5741 = vmatpush.bf16.msrb.mxu1 %v8376_v43  ;;  %v7708_v38 = vor.u32 %v9800_v5, %v7707_v19  ;;  %v7988_v39 = vor.u32 %v9870_v32, %v7987_v30  ;;  %v9104_v43 = vor.u32 %v10146_v35, %v9101_v11  ;;  %v9863_v44 = vld [vmem:[#allocation14 + $0x250] sm:$0xf0]  ;;  %v8687_v5 = vld [vmem:[#allocation14 + $0x7e8] sm:$0xf] }
 0x284   :  { %5753 = vmatpush.bf16.msrb.mxu2 %v8628_v52  ;;  %v8345_v52 = vld [vmem:[#allocation14 + $0x55c] sm:$0xf0]  ;;  %v2669_v20 = vpop.f32.mrf.mxu0 }
 0x285   :  { %v8348_v59 = vor.u32 %v9957_v51, %v8345_v52  ;;  %v10754_v60 = vpack.c.bf16 %v2750_v53, %v2750_v53  ;;  %v9073_v51 = vld [vmem:[#allocation14 + $0xb0c] sm:$0xf0]  ;;  %v7960_v53 = vor.u32 %v9863_v44, %v7959_v40  ;;  %v9856_v20 = vld [vmem:[#allocation14 + $0x218] sm:$0xf0]  ;;  %v10223_v40 = vld [vmem:[#allocation14 + $0xd94] sm:$0xf] }
 0x286   :  { %5768 = vmatpush.bf16.msrb.mxu3 %v8796_v18  ;;  %v8659_v44 = vld [vmem:[#allocation14 + $0x7b0] sm:$0xf] }
 0x287   :  { %5678 = vmatmul.bf16.vlgmr.msra.gmra.mxu0 %v10754_v60  ;;  %5742 = vmatpush.bf16.msrb.mxu1 %v8348_v59  ;;  %v10132_v59 = vld [vmem:[#allocation14 + $0xabc] sm:$0xf] }
 0x288   :  { %5754 = vmatpush.bf16.msrb.mxu2 %v8600_v8  ;;  %v10167_v8 = vld [vmem:[#allocation14 + $0xbd4] sm:$0xf]  ;;  %5774 = vmatpush.bf16.msra.mxu0 %v9216_v57  ;;  %v8743_v57 = vld [vmem:[#allocation14 + $0x858] sm:$0xf] }
 0x289   :  { %v9188_v4 = vor.u32 %v10167_v8, %v9185_v61  ;;  %5769 = vmatmul.bf16.vlgmr.msrb.gmra.mxu3 %v10745_v2  ;;  %v9045_v8 = vld [vmem:[#allocation14 + $0xad4] sm:$0xf0]  ;;  %v8744_v1 = vor.u32 %v10059_v28, %v8743_v57 }
 0x28a   :  { %5813 = vmatpush.bf16.msra.mxu3 %v8100_v45  ;;  %v8772_v45 = vor.u32 %v10066_v48, %v8771_v47  ;;  %v9048_v12 = vor.u32 %v10132_v59, %v9045_v8  ;;  %v10038_v47 = vld [vmem:[#allocation14 + $0x7c8] sm:$0xf0]  ;;  %v8631_v28 = vld [vmem:[#allocation14 + $0x778] sm:$0xf] }
 0x28c   :  { %5755 = vmatpush.bf16.msrb.mxu2 %v8572_v15  ;;  %v2706_v7 = vpop.f32.mrf.mxu3  ;;  %v7735_v15 = vld [vmem:[#allocation14 + $0x78] sm:$0xf]  ;;  %5775 = vmatpush.bf16.msra.mxu0 %v9188_v4  ;;  %v7903_v4 = vld [vmem:[#allocation14 + $0x1c8] sm:$0xf] }
 0x28d   :  { %v7736_v25 = vor.u32 %v9807_v16, %v7735_v15  ;;  %v8995_v15 = vld [vmem:[#allocation14 + $0xa50] sm:$0xf]  ;;  %v10122_v16 = vld [vmem:[#allocation14 + $0xa68] sm:$0xf0] }
 0x28e   :  { %5814 = vmatpush.bf16.msra.mxu3 %v8072_v63  ;;  %v7932_v63 = vor.u32 %v9856_v20, %v7931_v55  ;;  %v8996_v19 = vor.u32 %v10122_v16, %v8995_v15  ;;  %v8660_v55 = vor.u32 %v10038_v47, %v8659_v44  ;;  %v9381_v20 = vld [vmem:[#allocation14 + $0xd74] sm:$0xf0]  ;;  %v8883_v16 = vld [vmem:[#allocation14 + $0x970] sm:$0xf] }
 0x28f   :  { %5756 = vmatmul.bf16.vlgmr.msrb.gmra.mxu2 %v10735_v31  ;;  %v9297_v44 = vld [vmem:[#allocation14 + $0xccc] sm:$0xf0] }
 0x290   :  { %5800 = vmatpush.bf16.msra.mxu2 %v7876_v21  ;;  %v9160_v21 = vor.u32 %v10160_v0, %v9157_v13  ;;  %v9849_v0 = vld [vmem:[#allocation14 + $0x1e0] sm:$0xf0]  ;;  %v8715_v13 = vld [vmem:[#allocation14 + $0x820] sm:$0xf] }
 0x291   :  { %v7904_v23 = vor.u32 %v9849_v0, %v7903_v4 }
 0x292   :  { %v2693_v26 = vpop.f32.mrf.mxu2  ;;  %5815 = vmatpush.bf16.msra.mxu3 %v8044_v14  ;;  %5776 = vmatpush.bf16.msra.mxu0 %v9160_v21  ;;  %v8323_v21 = vld [vmem:[#allocation14 + $0x510] sm:$0xf] }
 0x293   :  { %v8324_v32 = vor.u32 %v9954_v22, %v8323_v21  ;;  %v10094_v21 = vld [vmem:[#allocation14 + $0x988] sm:$0xf0] }
 0x294   :  { %5801 = vmatpush.bf16.msra.mxu2 %v7848_v33  ;;  %v1031_v33 = vperm.slane %v10740_v6, 7  ;;  %v2708_v37 = vpop.f32.mrf.mxu3  ;;  %v7680_v6 = vor.u32 %v9793_v34, %v7679_v41 }
 0x295   :  { %v10115_v37 = vld [vmem:[#allocation14 + $0xa30] sm:$0xf0] }
 0x296   :  { %5816 = vmatpush.bf16.msra.mxu3 %v8016_v27  ;;  %v2732_v42 = vpop.f32.mrf.mxu1  ;;  %5777 = vmatpush.bf16.msra.mxu0 %v9132_v29  ;;  %v2694_v18 = vadd.f32 %v2693_v26, %v1031_v33  ;;  %v9437_v26 = vld [vmem:[#allocation14 + $0xde4] sm:$0xf0]  ;;  %v10045_v29 = vld [vmem:[#allocation14 + $0x800] sm:$0xf0]  ;;  %v8967_v33 = vld [vmem:[#allocation14 + $0xa18] sm:$0xf] }
 0x297   :  { %5730 = vmatmul.bf16.vlgmr.msrb.gmra.mxu0 %v10731_v58  ;;  %v8688_v34 = vor.u32 %v10045_v29, %v8687_v5  ;;  %v8884_v5 = vor.u32 %v10094_v21, %v8883_v16  ;;  %v8575_v29 = vld [vmem:[#allocation14 + $0x708] sm:$0xf]  ;;  %v9219_v16 = vld [vmem:[#allocation14 + $0xc10] sm:$0xf]  ;;  %v10178_v21 = vld [vmem:[#allocation14 + $0xc28] sm:$0xf0] }
 0x298   :  { %5802 = vmatpush.bf16.msra.mxu2 %v7820_v49  ;;  %v10139_v49 = vld [vmem:[#allocation14 + $0xaf4] sm:$0xf]  ;;  %v2707_v50 = vadd.f32 %v2706_v7, %v2694_v18  ;;  %v9017_v7 = vld [vmem:[#allocation14 + $0xa9c] sm:$0xf0] }
 0x299   :  { %v9076_v56 = vor.u32 %v10139_v49, %v9073_v51  ;;  %v9020_v27 = vor.u32 %v10125_v3, %v9017_v7  ;;  %v8939_v18 = vld [vmem:[#allocation14 + $0x9e0] sm:$0xf]  ;;  %v10108_v49 = vld [vmem:[#allocation14 + $0x9f8] sm:$0xf0]  ;;  %v9933_v3 = vld [vmem:[#allocation14 + $0x480] sm:$0xf0] }
 0x29a   :  { %v2695_v52 = vpop.f32.mrf.mxu2  ;;  %5817 = vmatpush.bf16.msra.mxu3 %v7988_v39  ;;  %5778 = vmatpush.bf16.msra.mxu0 %v9104_v43  ;;  %v9947_v39 = vld [vmem:[#allocation14 + $0x4f0] sm:$0xf0]  ;;  %v8968_v43 = vor.u32 %v10115_v37, %v8967_v33  ;;  %v8940_v57 = vor.u32 %v10108_v49, %v8939_v18  ;;  %v8827_v49 = vld [vmem:[#allocation14 + $0x900] sm:$0xf] }
 0x29b   :  { %v8267_v52 = vld [vmem:[#allocation14 + $0x4a0] sm:$0xf]  ;;  %v10087_v37 = vld [vmem:[#allocation14 + $0x950] sm:$0xf0] }
 0x29c   :  { %5803 = vmatpush.bf16.msra.mxu2 %v7792_v62  ;;  %v2719_v61 = vpop.f32.mrf.mxu0 }
 0x29d   :  { %v2720_v62 = vadd.f32 %v2719_v61, %v2707_v50  ;;  %v10031_v50 = vld [vmem:[#allocation14 + $0x790] sm:$0xf0]  ;;  %v8911_v61 = vld [vmem:[#allocation14 + $0x9a8] sm:$0xf] }
 0x29e   :  { %5818 = vmatpush.bf16.msra.mxu3 %v7960_v53  ;;  %v2734_v9 = vpop.f32.mrf.mxu1  ;;  %5779 = vmatpush.bf16.msra.mxu0 %v9076_v56  ;;  %v9940_v53 = vld [vmem:[#allocation14 + $0x4b8] sm:$0xf0]  ;;  %v8632_v4 = vor.u32 %v10031_v50, %v8631_v28  ;;  %v9269_v28 = vld [vmem:[#allocation14 + $0xc94] sm:$0xf0] }
 0x29f   :  { %v2733_v14 = vadd.f32 %v2732_v42, %v2720_v62  ;;  %v9409_v42 = vld [vmem:[#allocation14 + $0xdac] sm:$0xf0]  ;;  %v10216_v56 = vld [vmem:[#allocation14 + $0xd5c] sm:$0xf]  ;;  %v8268_v8 = vor.u32 %v9940_v53, %v8267_v52  ;;  %v10101_v62 = vld [vmem:[#allocation14 + $0x9c0] sm:$0xf0] }
 0x2a0   :  { %5804 = vmatpush.bf16.msra.mxu2 %v7764_v54  ;;  %v10052_v54 = vld [vmem:[#allocation14 + $0x838] sm:$0xf0]  ;;  %v9412_v51 = vor.u32 %v10223_v40, %v9409_v42  ;;  %v10209_v9 = vld [vmem:[#allocation14 + $0xd24] sm:$0xf]  ;;  %v9919_v40 = vld [vmem:[#allocation14 + $0x410] sm:$0xf0] }
 0x2a1   :  { %v2743_v36 = vmul.f32 0.2, %v2733_v14  ;;  %v8716_v24 = vor.u32 %v10052_v54, %v8715_v13  ;;  %v8912_v13 = vor.u32 %v10101_v62, %v8911_v61  ;;  %v8603_v54 = vld [vmem:[#allocation14 + $0x740] sm:$0xf]  ;;  %v9832_v52 = vld [vmem:[#allocation14 + $0x15c] sm:$0xf] }
 0x2a2   :  { %5819 = vmatpush.bf16.msra.mxu3 %v7932_v63  ;;  %5780 = vmatpush.bf16.msra.mxu0 %v9048_v12  ;;  %v9384_v63 = vor.u32 %v10216_v56, %v9381_v20  ;;  %v9353_v12 = vld [vmem:[#allocation14 + $0xd3c] sm:$0xf0]  ;;  %v7849_v53 = vld [vmem:[#allocation14 + $0x174] sm:$0xf0]  ;;  %v9912_v56 = vld [vmem:[#allocation14 + $0x3d8] sm:$0xf0] }
 0x2a3   :  { %v2751_v30 = vmax.f32 %v2733_v14, %v2743_v36  ;;  %v10024_v14 = vld [vmem:[#allocation14 + $0x758] sm:$0xf0]  ;;  %v9356_v22 = vor.u32 %v10209_v9, %v9353_v12  ;;  %v8211_v36 = vld [vmem:[#allocation14 + $0x430] sm:$0xf]  ;;  %v8127_v61 = vld [vmem:[#allocation14 + $0x388] sm:$0xf] }
 0x2a4   :  { %5805 = vmatpush.bf16.msra.mxu2 %v7736_v25  ;;  %v10230_v25 = vld [vmem:[#allocation14 + $0xdcc] sm:$0xf]  ;;  %v2721_v35 = vpop.f32.mrf.mxu0  ;;  %v8799_v62 = vld [vmem:[#allocation14 + $0x8c8] sm:$0xf]  ;;  %v7821_v9 = vld [vmem:[#allocation14 + $0x13c] sm:$0xf0] }
 0x2a5   :  { %v9440_v11 = vor.u32 %v10230_v25, %v9437_v26  ;;  %v10761_v41 = vpack.c.bf16 %v2751_v30, %v2751_v30  ;;  %v8604_v25 = vor.u32 %v10024_v14, %v8603_v54  ;;  %v10202_v26 = vld [vmem:[#allocation14 + $0xcec] sm:$0xf]  ;;  %v10017_v30 = vld [vmem:[#allocation14 + $0x720] sm:$0xf0]  ;;  %v9839_v35 = vld [vmem:[#allocation14 + $0x194] sm:$0xf] }
 0x2a6   :  { %5820 = vmatpush.bf16.msra.mxu3 %v7904_v23  ;;  %5781 = vmatpush.bf16.msra.mxu0 %v9020_v27  ;;  %v9926_v23 = vld [vmem:[#allocation14 + $0x448] sm:$0xf0]  ;;  %v9325_v27 = vld [vmem:[#allocation14 + $0xd04] sm:$0xf0]  ;;  %v8576_v42 = vor.u32 %v10017_v30, %v8575_v29  ;;  %v9895_v54 = vld [vmem:[#allocation14 + $0x354] sm:$0xf]  ;;  %v9220_v29 = vor.u32 %v10178_v21, %v9219_v16 }
 0x2a7   :  { %5691 = vmatmul.bf16.vlgmr.msra.gmra.mxu1 %v10761_v41  ;;  %v8212_v33 = vor.u32 %v9926_v23, %v8211_v36  ;;  %v8101_v14 = vld [vmem:[#allocation14 + $0x36c] sm:$0xf0]  ;;  %v9888_v30 = vld [vmem:[#allocation14 + $0x31c] sm:$0xf]  ;;  %v9982_v21 = vld [vmem:[#allocation14 + $0x608] sm:$0xf0] }
 0x2a8   :  { %5806 = vmatpush.bf16.msra.mxu2 %v7708_v38  ;;  %v8295_v38 = vld [vmem:[#allocation14 + $0x4d8] sm:$0xf]  ;;  %5787 = vmatpush.bf16.msra.mxu1 %v9440_v11  ;;  %v7877_v11 = vld [vmem:[#allocation14 + $0x1ac] sm:$0xf0] }
 0x2a9   :  { %v8296_v48 = vor.u32 %v9947_v39, %v8295_v38  ;;  %5821 = vmatmul.bf16.vlgmr.msra.gmra.mxu3 %v10716_v10  ;;  %5782 = vmatmul.bf16.vlgmr.msra.gmra.mxu0 %v10754_v60  ;;  %v9328_v39 = vor.u32 %v10202_v26, %v9325_v27  ;;  %v7880_v18 = vor.u32 %v9839_v35, %v7877_v11  ;;  %v8547_v23 = vld [vmem:[#allocation14 + $0x6d0] sm:$0xf]  ;;  %v9818_v27 = vld [vmem:[#allocation14 + $0xec] sm:$0xf]  ;;  %v9191_v35 = vld [vmem:[#allocation14 + $0xbd8] sm:$0xf] }
 0x2aa   :  { %5865 = vmatpush.bf16.msrb.mxu3 %v8996_v19  ;;  %5826 = vmatpush.bf16.msrb.mxu0 %v8324_v32  ;;  %v8855_v32 = vld [vmem:[#allocation14 + $0x938] sm:$0xf]  ;;  %v8104_v26 = vor.u32 %v9895_v54, %v8101_v14  ;;  %v10171_v11 = vld [vmem:[#allocation14 + $0xbf0] sm:$0xf0]  ;;  %v9107_v54 = vld [vmem:[#allocation14 + $0xb30] sm:$0xf] }
 0x2ab   :  { %v10150_v14 = vld [vmem:[#allocation14 + $0xb48] sm:$0xf0]  ;;  %v8435_v16 = vld [vmem:[#allocation14 + $0x5f0] sm:$0xf] }
 0x2ac   :  { %5807 = vmatpush.bf16.msra.mxu2 %v7680_v6  ;;  %v3272_v6 = vld [vmem:[#allocation16] sm:$0xff]  ;;  %5788 = vmatpush.bf16.msra.mxu1 %v9412_v51 }
 0x2ad   :  { %v3274_v59 = vperm.slane %v3272_v6, 0  ;;  %v10080_v6 = vld [vmem:[#allocation14 + $0x918] sm:$0xf0] }
 0x2ae   :  { %5866 = vmatpush.bf16.msrb.mxu3 %v8968_v43  ;;  %5827 = vmatpush.bf16.msrb.mxu0 %v8296_v48  ;;  %v10195_v43 = vld [vmem:[#allocation14 + $0xcb4] sm:$0xf]  ;;  %v8856_v48 = vor.u32 %v10087_v37, %v8855_v32  ;;  %v8073_v32 = vld [vmem:[#allocation14 + $0x334] sm:$0xf0] }
 0x2af   :  { %5808 = vmatmul.bf16.vlgmr.msra.gmra.mxu2 %v10720_v46 }
 0x2b0   :  { %5852 = vmatpush.bf16.msrb.mxu2 %v8772_v45  ;;  %v5614_v45 = vpop.f32.mrf.mxu3  ;;  %5789 = vmatpush.bf16.msra.mxu1 %v9384_v63 }
 0x2b2   :  { %v5601_v0 = vpop.f32.mrf.mxu2  ;;  %5867 = vmatpush.bf16.msrb.mxu3 %v8940_v57  ;;  %5828 = vmatpush.bf16.msrb.mxu0 %v8268_v8  ;;  %v10188_v57 = vld [vmem:[#allocation14 + $0xc7c] sm:$0xf]  ;;  %v7852_v8 = vor.u32 %v9832_v52, %v7849_v53  ;;  %v8491_v52 = vld [vmem:[#allocation14 + $0x660] sm:$0xf] }
 0x2b3   :  { %v5602_v7 = vadd.f32 %v5601_v0, %v3274_v59  ;;  %v8828_v59 = vor.u32 %v10080_v6, %v8827_v49  ;;  %v9272_v0 = vor.u32 %v10188_v57, %v9269_v28  ;;  %v9163_v49 = vld [vmem:[#allocation14 + $0xba0] sm:$0xf]  ;;  %v9996_v53 = vld [vmem:[#allocation14 + $0x678] sm:$0xf0]  ;;  %v9874_v57 = vld [vmem:[#allocation14 + $0x2ac] sm:$0xf] }
 0x2b4   :  { %5853 = vmatpush.bf16.msrb.mxu2 %v8744_v1  ;;  %v8239_v1 = vld [vmem:[#allocation14 + $0x468] sm:$0xf]  ;;  %5790 = vmatpush.bf16.msra.mxu1 %v9356_v22 }
 0x2b5   :  { %v8240_v15 = vor.u32 %v9933_v3, %v8239_v1  ;;  %v5615_v19 = vadd.f32 %v5614_v45, %v5602_v7  ;;  %v9300_v45 = vor.u32 %v10195_v43, %v9297_v44  ;;  %v10181_v1 = vld [vmem:[#allocation14 + $0xc44] sm:$0xf]  ;;  %v7765_v43 = vld [vmem:[#allocation14 + $0xcc] sm:$0xf0]  ;;  %v9192_v44 = vor.u32 %v10171_v11, %v9191_v35  ;;  %v8017_v28 = vld [vmem:[#allocation14 + $0x2c4] sm:$0xf0] }
 0x2b6   :  { %5868 = vmatpush.bf16.msrb.mxu3 %v8912_v13  ;;  %v5640_v38 = vpop.f32.mrf.mxu1  ;;  %v10073_v3 = vld [vmem:[#allocation14 + $0x8e0] sm:$0xf0]  ;;  %v8407_v35 = vld [vmem:[#allocation14 + $0x5b8] sm:$0xf]  ;;  %v9975_v11 = vld [vmem:[#allocation14 + $0x5d0] sm:$0xf0] }
 0x2b7   :  { %5829 = vmatpush.bf16.msrb.mxu0 %v8240_v15  ;;  %5743 = vmatmul.bf16.vlgmr.msrb.gmra.mxu1 %v10727_v17  ;;  %v9905_v13 = vld [vmem:[#allocation14 + $0x3a0] sm:$0xf0]  ;;  %v9241_v15 = vld [vmem:[#allocation14 + $0xc5c] sm:$0xf0]  ;;  %v8800_v22 = vor.u32 %v10073_v3, %v8799_v62  ;;  %v8463_v62 = vld [vmem:[#allocation14 + $0x628] sm:$0xf] }
 0x2b8   :  { %5854 = vmatpush.bf16.msrb.mxu2 %v8716_v24  ;;  %v5616_v24 = vpop.f32.mrf.mxu3  ;;  %5791 = vmatpush.bf16.msra.mxu1 %v9328_v39  ;;  %v8519_v39 = vld [vmem:[#allocation14 + $0x698] sm:$0xf]  ;;  %v9797_v3 = vld [vmem:[#allocation14 + $0x44] sm:$0xf] }
 0x2b9   :  { %v10010_v24 = vld [vmem:[#allocation14 + $0x6e8] sm:$0xf0] }
 0x2ba   :  { %v5603_v47 = vpop.f32.mrf.mxu2  ;;  %5869 = vmatpush.bf16.msrb.mxu3 %v8884_v5  ;;  %v9244_v5 = vor.u32 %v10181_v1, %v9241_v15  ;;  %v8548_v37 = vor.u32 %v10010_v24, %v8547_v23  ;;  %v8020_v1 = vor.u32 %v9874_v57, %v8017_v28  ;;  %v7681_v23 = vld [vmem:[#allocation14 + $0x24] sm:$0xf0]  ;;  %v9860_v24 = vld [vmem:[#allocation14 + $0x23c] sm:$0xf]  ;;  %v10049_v57 = vld [vmem:[#allocation14 + $0x824] sm:$0xf] }
 0x2bb   :  { %5830 = vmatpush.bf16.msrb.mxu0 %v8212_v33  ;;  %v9881_v47 = vld [vmem:[#allocation14 + $0x2e4] sm:$0xf]  ;;  %v8717_v28 = vld [vmem:[#allocation14 + $0x83c] sm:$0xf0] }
 0x2bc   :  { %5855 = vmatpush.bf16.msrb.mxu2 %v8688_v34  ;;  %v8183_v34 = vld [vmem:[#allocation14 + $0x3f8] sm:$0xf]  ;;  %v5627_v20 = vpop.f32.mrf.mxu0  ;;  %5792 = vmatpush.bf16.msra.mxu1 %v9300_v45 }
 0x2bd   :  { %v8184_v51 = vor.u32 %v9919_v40, %v8183_v34  ;;  %v5628_v50 = vadd.f32 %v5627_v20, %v5615_v19  ;;  %v7793_v19 = vld [vmem:[#allocation14 + $0x104] sm:$0xf0]  ;;  %v10003_v34 = vld [vmem:[#allocation14 + $0x6b0] sm:$0xf0]  ;;  %v8076_v40 = vor.u32 %v9888_v30, %v8073_v32  ;;  %v8436_v30 = vor.u32 %v9982_v21, %v8435_v16  ;;  %v9079_v32 = vld [vmem:[#allocation14 + $0xaf8] sm:$0xf] }
 0x2be   :  { %5870 = vmatpush.bf16.msrb.mxu3 %v8856_v48  ;;  %v5642_v12 = vpop.f32.mrf.mxu1  ;;  %v8045_v48 = vld [vmem:[#allocation14 + $0x2fc] sm:$0xf0]  ;;  %v10112_v21 = vld [vmem:[#allocation14 + $0xa1c] sm:$0xf] }
 0x2bf   :  { %5831 = vmatpush.bf16.msrb.mxu0 %v8184_v51  ;;  %v10768_v7 = vadd.f32 %v5640_v38, %v5628_v50  ;;  %v7796_v38 = vor.u32 %v9818_v27, %v7793_v19  ;;  %v10164_v51 = vld [vmem:[#allocation14 + $0xbb8] sm:$0xf0]  ;;  %v8048_v45 = vor.u32 %v9881_v47, %v8045_v48  ;;  %v8492_v50 = vor.u32 %v9996_v53, %v8491_v52  ;;  %v9867_v12 = vld [vmem:[#allocation14 + $0x274] sm:$0xf]  ;;  %v7961_v27 = vld [vmem:[#allocation14 + $0x254] sm:$0xf0] }
 0x2c0   :  { %5856 = vmatpush.bf16.msrb.mxu2 %v8660_v55  ;;  %v8155_v55 = vld [vmem:[#allocation14 + $0x3c0] sm:$0xf]  ;;  %5793 = vmatpush.bf16.msra.mxu1 %v9272_v0  ;;  %v9164_v20 = vor.u32 %v10164_v51, %v9163_v49  ;;  %v7989_v0 = vld [vmem:[#allocation14 + $0x28c] sm:$0xf0]  ;;  %v10063_v19 = vld [vmem:[#allocation14 + $0x894] sm:$0xf]  ;;  %v8408_v47 = vor.u32 %v9975_v11, %v8407_v35 }
 0x2c1   :  { %v8156_v63 = vor.u32 %v9912_v56, %v8155_v55  ;;  %v9804_v55 = vld [vmem:[#allocation14 + $0x7c] sm:$0xf]  ;;  %v7737_v56 = vld [vmem:[#allocation14 + $0x94] sm:$0xf0]  ;;  %v9023_v52 = vld [vmem:[#allocation14 + $0xa88] sm:$0xf] }
 0x2c2   :  { %5871 = vmatpush.bf16.msrb.mxu3 %v8828_v59  ;;  %v9135_v59 = vld [vmem:[#allocation14 + $0xb68] sm:$0xf]  ;;  %v10136_v48 = vld [vmem:[#allocation14 + $0xad8] sm:$0xf0]  ;;  %v9846_v53 = vld [vmem:[#allocation14 + $0x1cc] sm:$0xf] }
 0x2c3   :  { %5832 = vmatpush.bf16.msrb.mxu0 %v8156_v63  ;;  %v9989_v63 = vld [vmem:[#allocation14 + $0x640] sm:$0xf0]  ;;  %v9968_v49 = vld [vmem:[#allocation14 + $0x598] sm:$0xf0] }
 0x2c4   :  { %5857 = vmatpush.bf16.msrb.mxu2 %v8632_v4  ;;  %v9825_v4 = vld [vmem:[#allocation14 + $0x124] sm:$0xf]  ;;  %v5629_v33 = vpop.f32.mrf.mxu0  ;;  %5794 = vmatpush.bf16.msra.mxu1 %v9244_v5  ;;  %v8773_v5 = vld [vmem:[#allocation14 + $0x8ac] sm:$0xf0] }
 0x2c5   :  { %v7824_v36 = vor.u32 %v9825_v4, %v7821_v9  ;;  %v7709_v4 = vld [vmem:[#allocation14 + $0x5c] sm:$0xf0]  ;;  %v10143_v33 = vld [vmem:[#allocation14 + $0xb10] sm:$0xf0]  ;;  %v9937_v11 = vld [vmem:[#allocation14 + $0x4a4] sm:$0xf] }
 0x2c6   :  { %5872 = vmatpush.bf16.msrb.mxu3 %v8800_v22  ;;  %v7712_v15 = vor.u32 %v9797_v3, %v7709_v4  ;;  %v7992_v22 = vor.u32 %v9867_v12, %v7989_v0  ;;  %v8720_v4 = vor.u32 %v10049_v57, %v8717_v28  ;;  %v10234_v12 = vld [vmem:[#allocation14 + $0xde8] sm:$0xf0]  ;;  %v10091_v28 = vld [vmem:[#allocation14 + $0x974] sm:$0xf] }
 0x2c7   :  { %5795 = vmatmul.bf16.vlgmr.msra.gmra.mxu1 %v10761_v41 }
 0x2c8   :  { %5858 = vmatpush.bf16.msrb.mxu2 %v8604_v25  ;;  %v8128_v25 = vor.u32 %v9905_v13, %v8127_v61  ;;  %5839 = vmatpush.bf16.msrb.mxu1 %v8548_v37  ;;  %v7740_v61 = vor.u32 %v9804_v55, %v7737_v56  ;;  %v8464_v13 = vor.u32 %v9989_v63, %v8463_v62  ;;  %v8351_v56 = vld [vmem:[#allocation14 + $0x548] sm:$0xf]  ;;  %v9961_v62 = vld [vmem:[#allocation14 + $0x560] sm:$0xf0]  ;;  %v9951_v63 = vld [vmem:[#allocation14 + $0x514] sm:$0xf] }
 0x2c9   :  { %5873 = vmatmul.bf16.vlgmr.msrb.gmra.mxu3 %v10745_v2 }
 0x2ca   :  { %5833 = vmatpush.bf16.msrb.mxu0 %v8128_v25  ;;  %5917 = vmatpush.bf16.msra.mxu3 %v8104_v26  ;;  %v9108_v26 = vor.u32 %v10150_v14, %v9107_v54  ;;  %v10042_v54 = vld [vmem:[#allocation14 + $0x7ec] sm:$0xf]  ;;  %v8689_v14 = vld [vmem:[#allocation14 + $0x804] sm:$0xf0] }
 0x2cc   :  { %5859 = vmatpush.bf16.msrb.mxu2 %v8576_v42  ;;  %v9811_v42 = vld [vmem:[#allocation14 + $0xb4] sm:$0xf] }
 0x2cd   :  { %5834 = vmatmul.bf16.vlgmr.msrb.gmra.mxu0 %v10731_v58  ;;  %v7768_v6 = vor.u32 %v9811_v42, %v7765_v43  ;;  %v7933_v42 = vld [vmem:[#allocation14 + $0x21c] sm:$0xf0]  ;;  %v10056_v43 = vld [vmem:[#allocation14 + $0x85c] sm:$0xf] }
 0x2ce   :  { %5878 = vmatpush.bf16.msra.mxu0 %v9220_v29  ;;  %5918 = vmatpush.bf16.msra.mxu3 %v8076_v40  ;;  %v9080_v40 = vor.u32 %v10143_v33, %v9079_v32  ;;  %v10105_v33 = vld [vmem:[#allocation14 + $0x9e4] sm:$0xf] }
 0x2cf   :  { %5860 = vmatmul.bf16.vlgmr.msrb.gmra.mxu2 %v10735_v31 }
 0x2d0   :  { %5904 = vmatpush.bf16.msra.mxu2 %v7880_v18  ;;  %v8520_v18 = vor.u32 %v10003_v34, %v8519_v39  ;;  %v8776_v39 = vor.u32 %v10063_v19, %v8773_v5  ;;  %v9853_v34 = vld [vmem:[#allocation14 + $0x204] sm:$0xf]  ;;  %v10035_v5 = vld [vmem:[#allocation14 + $0x7b4] sm:$0xf] }
 0x2d1   :  { %v7936_v51 = vor.u32 %v9853_v34, %v7933_v42  ;;  %v9387_v34 = vld [vmem:[#allocation14 + $0xd60] sm:$0xf] }
 0x2d2   :  { %5879 = vmatpush.bf16.msra.mxu0 %v9192_v44  ;;  %5840 = vmatpush.bf16.msrb.mxu1 %v8520_v18  ;;  %v5653_v25 = vpop.f32.mrf.mxu2  ;;  %v8745_v44 = vld [vmem:[#allocation14 + $0x874] sm:$0xf0]  ;;  %v8379_v18 = vld [vmem:[#allocation14 + $0x580] sm:$0xf] }
 0x2d3   :  { %5919 = vmatpush.bf16.msra.mxu3 %v8048_v45  ;;  %v10774_v29 = vadd.f32 %v5653_v25, %v10768_v7  ;;  %v9051_v7 = vld [vmem:[#allocation14 + $0xac0] sm:$0xf]  ;;  %v8692_v25 = vor.u32 %v10042_v54, %v8689_v14  ;;  %v7883_v54 = vld [vmem:[#allocation14 + $0x198] sm:$0xf]  ;;  %v9843_v14 = vld [vmem:[#allocation14 + $0x1b0] sm:$0xf0] }
 0x2d4   :  { %5905 = vmatpush.bf16.msra.mxu2 %v7852_v8  ;;  %v10157_v8 = vld [vmem:[#allocation14 + $0xb80] sm:$0xf0]  ;;  %v9052_v55 = vor.u32 %v10136_v48, %v9051_v7  ;;  %v10098_v7 = vld [vmem:[#allocation14 + $0x9ac] sm:$0xf]  ;;  %v8913_v48 = vld [vmem:[#allocation14 + $0x9c4] sm:$0xf0] }
 0x2d5   :  { %v9136_v9 = vor.u32 %v10157_v8, %v9135_v59  ;;  %v10129_v59 = vld [vmem:[#allocation14 + $0xaa0] sm:$0xf0]  ;;  %v10119_v8 = vld [vmem:[#allocation14 + $0xa54] sm:$0xf] }
 0x2d6   :  { %5880 = vmatpush.bf16.msra.mxu0 %v9164_v20  ;;  %5841 = vmatpush.bf16.msrb.mxu1 %v8492_v50  ;;  %v7905_v20 = vld [vmem:[#allocation14 + $0x1e4] sm:$0xf0]  ;;  %v8380_v50 = vor.u32 %v9968_v49, %v8379_v18  ;;  %v9024_v0 = vor.u32 %v10129_v59, %v9023_v52  ;;  %v9930_v49 = vld [vmem:[#allocation14 + $0x46c] sm:$0xf] }
 0x2d7   :  { %5920 = vmatpush.bf16.msra.mxu3 %v8020_v1  ;;  %v8325_v1 = vld [vmem:[#allocation14 + $0x52c] sm:$0xf0]  ;;  %v7908_v3 = vor.u32 %v9846_v53, %v7905_v20  ;;  %v9359_v52 = vld [vmem:[#allocation14 + $0xd28] sm:$0xf]  ;;  %v10213_v53 = vld [vmem:[#allocation14 + $0xd40] sm:$0xf0] }
 0x2d8   :  { %5906 = vmatpush.bf16.msra.mxu2 %v7824_v36  ;;  %v9790_v36 = vld [vmem:[#allocation14 + $0xc] sm:$0xf]  ;;  %v8328_v16 = vor.u32 %v9951_v63, %v8325_v1  ;;  %v8605_v20 = vld [vmem:[#allocation14 + $0x75c] sm:$0xf0]  ;;  %v9360_v59 = vor.u32 %v10213_v53, %v9359_v52  ;;  %v9331_v63 = vld [vmem:[#allocation14 + $0xcf0] sm:$0xf] }
 0x2d9   :  { %v7684_v37 = vor.u32 %v9790_v36, %v7681_v23  ;;  %v9944_v23 = vld [vmem:[#allocation14 + $0x4dc] sm:$0xf]  ;;  %v10206_v1 = vld [vmem:[#allocation14 + $0xd08] sm:$0xf0]  ;;  %v8107_v52 = vld [vmem:[#allocation14 + $0x358] sm:$0xf] }
 0x2da   :  { %5881 = vmatpush.bf16.msra.mxu0 %v9136_v9  ;;  %5842 = vmatpush.bf16.msrb.mxu1 %v8464_v13  ;;  %v5655_v45 = vpop.f32.mrf.mxu2  ;;  %v9443_v9 = vld [vmem:[#allocation14 + $0xdd0] sm:$0xf]  ;;  %v9899_v53 = vld [vmem:[#allocation14 + $0x370] sm:$0xf0] }
 0x2db   :  { %5921 = vmatpush.bf16.msra.mxu3 %v7992_v22  ;;  %v8969_v22 = vld [vmem:[#allocation14 + $0xa34] sm:$0xf0]  ;;  %v9444_v36 = vor.u32 %v10234_v12, %v9443_v9  ;;  %v8577_v9 = vld [vmem:[#allocation14 + $0x724] sm:$0xf0]  ;;  %v10084_v12 = vld [vmem:[#allocation14 + $0x93c] sm:$0xf] }
 0x2dc   :  { %5907 = vmatpush.bf16.msra.mxu2 %v7796_v38  ;;  %v7964_v38 = vor.u32 %v9860_v24, %v7961_v27  ;;  %v8297_v24 = vld [vmem:[#allocation14 + $0x4f4] sm:$0xf0]  ;;  %v10227_v27 = vld [vmem:[#allocation14 + $0xdb0] sm:$0xf0]  ;;  %v8972_v19 = vor.u32 %v10112_v21, %v8969_v22  ;;  %v9916_v21 = vld [vmem:[#allocation14 + $0x3fc] sm:$0xf] }
 0x2dd   :  { %v8300_v32 = vor.u32 %v9944_v23, %v8297_v24  ;;  %v8185_v22 = vld [vmem:[#allocation14 + $0x414] sm:$0xf0]  ;;  %v10199_v24 = vld [vmem:[#allocation14 + $0xcd0] sm:$0xf0] }
 0x2de   :  { %5882 = vmatpush.bf16.msra.mxu0 %v9108_v26  ;;  %5843 = vmatpush.bf16.msrb.mxu1 %v8436_v30  ;;  %v9415_v26 = vld [vmem:[#allocation14 + $0xd98] sm:$0xf]  ;;  %v8661_v30 = vld [vmem:[#allocation14 + $0x7cc] sm:$0xf0] }
 0x2df   :  { %5922 = vmatpush.bf16.msra.mxu3 %v7964_v38  ;;  %v9416_v35 = vor.u32 %v10227_v27, %v9415_v26  ;;  %v8269_v38 = vld [vmem:[#allocation14 + $0x4bc] sm:$0xf0]  ;;  %v9303_v23 = vld [vmem:[#allocation14 + $0xcb8] sm:$0xf]  ;;  %v7884_v27 = vor.u32 %v9843_v14, %v7883_v54  ;;  %v10000_v14 = vld [vmem:[#allocation14 + $0x69c] sm:$0xf] }
 0x2e0   :  { %5908 = vmatpush.bf16.msra.mxu2 %v7768_v6  ;;  %v8748_v6 = vor.u32 %v10056_v43, %v8745_v44  ;;  %v10028_v43 = vld [vmem:[#allocation14 + $0x77c] sm:$0xf]  ;;  %v8633_v44 = vld [vmem:[#allocation14 + $0x794] sm:$0xf0] }
 0x2e2   :  { %5883 = vmatpush.bf16.msra.mxu0 %v9080_v40  ;;  %5844 = vmatpush.bf16.msrb.mxu1 %v8408_v47  ;;  %v10220_v40 = vld [vmem:[#allocation14 + $0xd78] sm:$0xf0]  ;;  %v8272_v47 = vor.u32 %v9937_v11, %v8269_v38  ;;  %v8157_v11 = vld [vmem:[#allocation14 + $0x3dc] sm:$0xf0] }
 0x2e3   :  { %5923 = vmatpush.bf16.msra.mxu3 %v7936_v51  ;;  %v9388_v18 = vor.u32 %v10220_v40, %v9387_v34  ;;  %v8241_v51 = vld [vmem:[#allocation14 + $0x484] sm:$0xf0]  ;;  %v9275_v38 = vld [vmem:[#allocation14 + $0xc80] sm:$0xf] }
 0x2e4   :  { %5909 = vmatpush.bf16.msra.mxu2 %v7740_v61  ;;  %v8997_v61 = vld [vmem:[#allocation14 + $0xa6c] sm:$0xf0]  ;;  %v8244_v57 = vor.u32 %v9930_v49, %v8241_v51 }
 0x2e5   :  { %v9000_v13 = vor.u32 %v10119_v8, %v8997_v61  ;;  %v9923_v8 = vld [vmem:[#allocation14 + $0x434] sm:$0xf]  ;;  %v8213_v61 = vld [vmem:[#allocation14 + $0x44c] sm:$0xf0] }
 0x2e6   :  { %5884 = vmatpush.bf16.msra.mxu0 %v9052_v55  ;;  %5845 = vmatpush.bf16.msrb.mxu1 %v8380_v50  ;;  %v8916_v55 = vor.u32 %v10098_v7, %v8913_v48  ;;  %v8885_v50 = vld [vmem:[#allocation14 + $0x98c] sm:$0xf0]  ;;  %v8801_v7 = vld [vmem:[#allocation14 + $0x8e4] sm:$0xf0] }
 0x2e7   :  { %5924 = vmatpush.bf16.msra.mxu3 %v7908_v3  ;;  %v8888_v3 = vor.u32 %v10091_v28, %v8885_v50  ;;  %v7827_v48 = vld [vmem:[#allocation14 + $0x128] sm:$0xf]  ;;  %v10007_v50 = vld [vmem:[#allocation14 + $0x6d4] sm:$0xf] }
 0x2e8   :  { %5910 = vmatpush.bf16.msra.mxu2 %v7712_v15  ;;  %v8352_v15 = vor.u32 %v9961_v62, %v8351_v56  ;;  %v10021_v56 = vld [vmem:[#allocation14 + $0x744] sm:$0xf] }
 0x2e9   :  { %v8608_v62 = vor.u32 %v10021_v56, %v8605_v20  ;;  %v10175_v56 = vld [vmem:[#allocation14 + $0xc14] sm:$0xf]  ;;  %v9221_v20 = vld [vmem:[#allocation14 + $0xc2c] sm:$0xf0] }
 0x2ea   :  { %5885 = vmatpush.bf16.msra.mxu0 %v9024_v0  ;;  %5846 = vmatpush.bf16.msrb.mxu1 %v8352_v15  ;;  %v8216_v0 = vor.u32 %v9923_v8, %v8213_v61  ;;  %v8108_v61 = vor.u32 %v9899_v53, %v8107_v52 }
 0x2eb   :  { %5969 = vmatpush.bf16.msrb.mxu3 %v9000_v13  ;;  %v8857_v13 = vld [vmem:[#allocation14 + $0x954] sm:$0xf0] }
 0x2ec   :  { %5911 = vmatpush.bf16.msra.mxu2 %v7684_v37  ;;  %v8941_v37 = vld [vmem:[#allocation14 + $0x9fc] sm:$0xf0]  ;;  %5925 = vmatmul.bf16.vlgmr.msra.gmra.mxu3 %v10716_v10  ;;  %v10782_v15 = vpop.f32.mrf.mxu3  ;;  %v8860_v26 = vor.u32 %v10084_v12, %v8857_v13  ;;  %v9193_v13 = vld [vmem:[#allocation14 + $0xbf4] sm:$0xf0] }
 0x2ed   :  { %5886 = vmatmul.bf16.vlgmr.msra.gmra.mxu0 %v10754_v60  ;;  %5847 = vmatmul.bf16.vlgmr.msrb.gmra.mxu1 %v10727_v17  ;;  %v8944_v42 = vor.u32 %v10105_v33, %v8941_v37  ;;  %v9836_v33 = vld [vmem:[#allocation14 + $0x178] sm:$0xf0]  ;;  %v9304_v37 = vor.u32 %v10199_v24, %v9303_v23 }
 0x2ee   :  { %5930 = vmatpush.bf16.msrb.mxu0 %v8328_v16  ;;  %5891 = vmatpush.bf16.msra.mxu1 %v9444_v36  ;;  %v9332_v16 = vor.u32 %v10206_v1, %v9331_v63  ;;  %v9822_v63 = vld [vmem:[#allocation14 + $0x108] sm:$0xf0] }
 0x2ef   :  { %5912 = vmatmul.bf16.vlgmr.msra.gmra.mxu2 %v10720_v46  ;;  %5970 = vmatpush.bf16.msrb.mxu3 %v8972_v19  ;;  %v10077_v19 = vld [vmem:[#allocation14 + $0x904] sm:$0xf] }
 0x2f0   :  { %5956 = vmatpush.bf16.msrb.mxu2 %v8776_v39  ;;  %v8664_v39 = vor.u32 %v10035_v5, %v8661_v30  ;;  %v8188_v5 = vor.u32 %v9916_v21, %v8185_v22  ;;  %v8829_v30 = vld [vmem:[#allocation14 + $0x91c] sm:$0xf0]  ;;  %v7771_v22 = vld [vmem:[#allocation14 + $0xb8] sm:$0xf] }
 0x2f1   :  { %v8832_v34 = vor.u32 %v10077_v19, %v8829_v30  ;;  %v10161_v19 = vld [vmem:[#allocation14 + $0xba4] sm:$0xf] }
 0x2f2   :  { %5931 = vmatpush.bf16.msrb.mxu0 %v8300_v32  ;;  %5892 = vmatpush.bf16.msra.mxu1 %v9416_v35  ;;  %v10780_v45 = vpop.f32.mrf.mxu2  ;;  %v7855_v32 = vld [vmem:[#allocation14 + $0x160] sm:$0xf]  ;;  %v9909_v35 = vld [vmem:[#allocation14 + $0x3c4] sm:$0xf] }
 0x2f3   :  { %5971 = vmatpush.bf16.msrb.mxu3 %v8944_v42  ;;  %v7856_v40 = vor.u32 %v9836_v33, %v7855_v32  ;;  %v9902_v42 = vld [vmem:[#allocation14 + $0x38c] sm:$0xf]  ;;  %v9993_v32 = vld [vmem:[#allocation14 + $0x664] sm:$0xf]  ;;  %v8493_v33 = vld [vmem:[#allocation14 + $0x67c] sm:$0xf0] }
 0x2f4   :  { %5957 = vmatpush.bf16.msrb.mxu2 %v8748_v6  ;;  %v8636_v6 = vor.u32 %v10028_v43, %v8633_v44  ;;  %v10070_v43 = vld [vmem:[#allocation14 + $0x8cc] sm:$0xf]  ;;  %v8160_v44 = vor.u32 %v9909_v35, %v8157_v11  ;;  %v5668_v49 = vpop.f32.mrf.mxu3  ;;  %v7743_v35 = vld [vmem:[#allocation14 + $0x80] sm:$0xf]  ;;  %v9808_v11 = vld [vmem:[#allocation14 + $0x98] sm:$0xf0] }
 0x2f5   :  { %v7715_v49 = vld [vmem:[#allocation14 + $0x48] sm:$0xf] }
 0x2f6   :  { %5932 = vmatpush.bf16.msrb.mxu0 %v8272_v47  ;;  %5893 = vmatpush.bf16.msra.mxu1 %v9388_v18  ;;  %v9247_v47 = vld [vmem:[#allocation14 + $0xc48] sm:$0xf]  ;;  %v9829_v18 = vld [vmem:[#allocation14 + $0x140] sm:$0xf0] }
 0x2f7   :  { %5972 = vmatpush.bf16.msrb.mxu3 %v8916_v55  ;;  %v10185_v55 = vld [vmem:[#allocation14 + $0xc60] sm:$0xf0]  ;;  %v7828_v28 = vor.u32 %v9829_v18, %v7827_v48 }
 0x2f8   :  { %5958 = vmatpush.bf16.msrb.mxu2 %v8720_v4  ;;  %v10014_v4 = vld [vmem:[#allocation14 + $0x70c] sm:$0xf]  ;;  %v9248_v1 = vor.u32 %v10185_v55, %v9247_v47  ;;  %v7995_v55 = vld [vmem:[#allocation14 + $0x278] sm:$0xf] }
 0x2f9   :  { %v8580_v36 = vor.u32 %v10014_v4, %v8577_v9  ;;  %v8079_v4 = vld [vmem:[#allocation14 + $0x320] sm:$0xf]  ;;  %v9892_v9 = vld [vmem:[#allocation14 + $0x338] sm:$0xf0]  ;;  %v9986_v47 = vld [vmem:[#allocation14 + $0x62c] sm:$0xf] }
 0x2fa   :  { %5933 = vmatpush.bf16.msrb.mxu0 %v8244_v57  ;;  %5894 = vmatpush.bf16.msra.mxu1 %v9360_v59  ;;  %v8804_v57 = vor.u32 %v10070_v43, %v8801_v7  ;;  %v8549_v59 = vld [vmem:[#allocation14 + $0x6ec] sm:$0xf0]  ;;  %v8080_v21 = vor.u32 %v9892_v9, %v8079_v4  ;;  %v9137_v43 = vld [vmem:[#allocation14 + $0xb84] sm:$0xf0]  ;;  %v9864_v4 = vld [vmem:[#allocation14 + $0x258] sm:$0xf0] }
 0x2fb   :  { %5973 = vmatpush.bf16.msrb.mxu3 %v8888_v3  ;;  %v9224_v3 = vor.u32 %v10175_v56, %v9221_v20  ;;  %v8552_v12 = vor.u32 %v10007_v50, %v8549_v59  ;;  %v8465_v7 = vld [vmem:[#allocation14 + $0x644] sm:$0xf0]  ;;  %v9871_v56 = vld [vmem:[#allocation14 + $0x290] sm:$0xf0]  ;;  %v8779_v9 = vld [vmem:[#allocation14 + $0x898] sm:$0xf] }
 0x2fc   :  { %5959 = vmatpush.bf16.msrb.mxu2 %v8692_v25  ;;  %v5707_v25 = vpop.f32.mrf.mxu2  ;;  %v10785_v23 = vpop.f32.mrf.mxu3  ;;  %v8468_v20 = vor.u32 %v9986_v47, %v8465_v7  ;;  %v9979_v59 = vld [vmem:[#allocation14 + $0x5f4] sm:$0xf]  ;;  %v9850_v47 = vld [vmem:[#allocation14 + $0x1e8] sm:$0xf0]  ;;  %v8723_v7 = vld [vmem:[#allocation14 + $0x828] sm:$0xf] }
 0x2fd   :  { %v8051_v25 = vld [vmem:[#allocation14 + $0x2e8] sm:$0xf] }
 0x2fe   :  { %5934 = vmatpush.bf16.msrb.mxu0 %v8216_v0  ;;  %5895 = vmatpush.bf16.msra.mxu1 %v9332_v16  ;;  %v10168_v0 = vld [vmem:[#allocation14 + $0xbdc] sm:$0xf]  ;;  %v8521_v16 = vld [vmem:[#allocation14 + $0x6b4] sm:$0xf0] }
 0x2ff   :  { %5974 = vmatpush.bf16.msrb.mxu3 %v8860_v26  ;;  %v9196_v24 = vor.u32 %v10168_v0, %v9193_v13  ;;  %v9885_v26 = vld [vmem:[#allocation14 + $0x300] sm:$0xf0]  ;;  %v10140_v13 = vld [vmem:[#allocation14 + $0xafc] sm:$0xf] }
 0x300   :  { %5960 = vmatpush.bf16.msrb.mxu2 %v8664_v39  ;;  %v10192_v39 = vld [vmem:[#allocation14 + $0xc98] sm:$0xf0] }
 0x301   :  { %v9276_v51 = vor.u32 %v10192_v39, %v9275_v38  ;;  %v8023_v39 = vld [vmem:[#allocation14 + $0x2b0] sm:$0xf] }
 0x302   :  { %5935 = vmatpush.bf16.msrb.mxu0 %v8188_v5  ;;  %5896 = vmatpush.bf16.msra.mxu1 %v9304_v37  ;;  %v9165_v5 = vld [vmem:[#allocation14 + $0xbbc] sm:$0xf0]  ;;  %v8052_v37 = vor.u32 %v9885_v26, %v8051_v25  ;;  %v7939_v25 = vld [vmem:[#allocation14 + $0x208] sm:$0xf] }
 0x303   :  { %5975 = vmatpush.bf16.msrb.mxu3 %v8832_v34  ;;  %v9168_v38 = vor.u32 %v10161_v19, %v9165_v5  ;;  %v9878_v34 = vld [vmem:[#allocation14 + $0x2c8] sm:$0xf0]  ;;  %v9857_v5 = vld [vmem:[#allocation14 + $0x220] sm:$0xf0] }
 0x304   :  { %5961 = vmatpush.bf16.msrb.mxu2 %v8636_v6  ;;  %v8129_v6 = vld [vmem:[#allocation14 + $0x3a4] sm:$0xf0]  ;;  %v8024_v18 = vor.u32 %v9878_v34, %v8023_v39  ;;  %v5720_v52 = vpop.f32.mrf.mxu3  ;;  %v7940_v39 = vor.u32 %v9857_v5, %v7939_v25  ;;  %v10039_v25 = vld [vmem:[#allocation14 + $0x7d0] sm:$0xf0]  ;;  %v10109_v5 = vld [vmem:[#allocation14 + $0xa00] sm:$0xf0] }
 0x305   :  { %v8132_v8 = vor.u32 %v9902_v42, %v8129_v6  ;;  %v10154_v42 = vld [vmem:[#allocation14 + $0xb6c] sm:$0xf]  ;;  %v10792_v6 = vpop.f32.mrf.mxu0  ;;  %v9003_v52 = vld [vmem:[#allocation14 + $0xa58] sm:$0xf] }
 0x306   :  { %5936 = vmatpush.bf16.msrb.mxu0 %v8160_v44  ;;  %5897 = vmatpush.bf16.msra.mxu1 %v9276_v51  ;;  %v7744_v44 = vor.u32 %v9808_v11, %v7743_v35  ;;  %v9801_v51 = vld [vmem:[#allocation14 + $0x60] sm:$0xf0]  ;;  %v9140_v53 = vor.u32 %v10154_v42, %v9137_v43  ;;  %v9053_v35 = vld [vmem:[#allocation14 + $0xadc] sm:$0xf0]  ;;  %v7911_v42 = vld [vmem:[#allocation14 + $0x1d0] sm:$0xf] }
 0x307   :  { %5976 = vmatpush.bf16.msrb.mxu3 %v8804_v57  ;;  %v10147_v57 = vld [vmem:[#allocation14 + $0xb34] sm:$0xf]  ;;  %v7716_v50 = vor.u32 %v9801_v51, %v7715_v49  ;;  %v9965_v11 = vld [vmem:[#allocation14 + $0x584] sm:$0xf]  ;;  %v9025_v51 = vld [vmem:[#allocation14 + $0xaa4] sm:$0xf0] }
 0x308   :  { %5962 = vmatpush.bf16.msrb.mxu2 %v8608_v62  ;;  %v7799_v62 = vld [vmem:[#allocation14 + $0xf0] sm:$0xf] }
 0x309   :  { %v7800_v54 = vor.u32 %v9822_v63, %v7799_v62  ;;  %v7687_v62 = vld [vmem:[#allocation14 + $0x10] sm:$0xf]  ;;  %v9794_v63 = vld [vmem:[#allocation14 + $0x28] sm:$0xf0] }
 0x30a   :  { %5937 = vmatpush.bf16.msrb.mxu0 %v8132_v8  ;;  %5898 = vmatpush.bf16.msra.mxu1 %v9248_v1  ;;  %v8437_v8 = vld [vmem:[#allocation14 + $0x60c] sm:$0xf0]  ;;  %v7967_v1 = vld [vmem:[#allocation14 + $0x240] sm:$0xf] }
 0x30b   :  { %6021 = vmatpush.bf16.msra.mxu3 %v8108_v61  ;;  %v7996_v61 = vor.u32 %v9871_v56, %v7995_v55  ;;  %v8440_v0 = vor.u32 %v9979_v59, %v8437_v8  ;;  %v8353_v55 = vld [vmem:[#allocation14 + $0x564] sm:$0xf0]  ;;  %v8331_v56 = vld [vmem:[#allocation14 + $0x518] sm:$0xf]  ;;  %v9445_v59 = vld [vmem:[#allocation14 + $0xdec] sm:$0xf0] }
 0x30c   :  { %5963 = vmatpush.bf16.msrb.mxu2 %v8580_v36  ;;  %v9815_v36 = vld [vmem:[#allocation14 + $0xd0] sm:$0xf0]  ;;  %5977 = vmatmul.bf16.vlgmr.msrb.gmra.mxu3 %v10745_v2 }
 0x30d   :  { %5938 = vmatmul.bf16.vlgmr.msrb.gmra.mxu0 %v10731_v58  ;;  %v7772_v30 = vor.u32 %v9815_v36, %v7771_v22  ;;  %5899 = vmatmul.bf16.vlgmr.msra.gmra.mxu1 %v10761_v41  ;;  %v7968_v36 = vor.u32 %v9864_v4, %v7967_v1  ;;  %v5681_v26 = vpop.f32.mrf.mxu0  ;;  %v8695_v1 = vld [vmem:[#allocation14 + $0x7f0] sm:$0xf] }
 0x30e   :  { %5982 = vmatpush.bf16.msra.mxu0 %v9224_v3  ;;  %5943 = vmatpush.bf16.msrb.mxu1 %v8552_v12  ;;  %v10067_v12 = vld [vmem:[#allocation14 + $0x8b0] sm:$0xf0] }
 0x30f   :  { %5964 = vmatmul.bf16.vlgmr.msrb.gmra.mxu2 %v10735_v31  ;;  %6022 = vmatpush.bf16.msra.mxu3 %v8080_v21  ;;  %v8409_v21 = vld [vmem:[#allocation14 + $0x5d4] sm:$0xf0] }
 0x310   :  { %6008 = vmatpush.bf16.msra.mxu2 %v7884_v27  ;;  %v8524_v27 = vor.u32 %v10000_v14, %v8521_v16  ;;  %v7688_v14 = vor.u32 %v9794_v63, %v7687_v62  ;;  %v9972_v16 = vld [vmem:[#allocation14 + $0x5bc] sm:$0xf] }
 0x312   :  { %5983 = vmatpush.bf16.msra.mxu0 %v9196_v24  ;;  %5944 = vmatpush.bf16.msrb.mxu1 %v8524_v27  ;;  %v10790_v48 = vpop.f32.mrf.mxu2  ;;  %v8780_v24 = vor.u32 %v10067_v12, %v8779_v9  ;;  %v10794_v27 = vpop.f32.mrf.mxu3  ;;  %v8975_v12 = vld [vmem:[#allocation14 + $0xa20] sm:$0xf] }
 0x313   :  { %6023 = vmatpush.bf16.msra.mxu3 %v8052_v37  ;;  %v10133_v37 = vld [vmem:[#allocation14 + $0xac4] sm:$0xf] }
 0x314   :  { %6009 = vmatpush.bf16.msra.mxu2 %v7856_v40  ;;  %v8496_v40 = vor.u32 %v9993_v32, %v8493_v33  ;;  %v10060_v32 = vld [vmem:[#allocation14 + $0x878] sm:$0xf0]  ;;  %v8412_v33 = vor.u32 %v9972_v16, %v8409_v21  ;;  %v9056_v43 = vor.u32 %v10133_v37, %v9053_v35  ;;  %v10217_v35 = vld [vmem:[#allocation14 + $0xd64] sm:$0xf] }
 0x315   :  { %v10797_v8 = vpop.f32.mrf.mxu0  ;;  %v10224_v21 = vld [vmem:[#allocation14 + $0xd9c] sm:$0xf] }
 0x316   :  { %5984 = vmatpush.bf16.msra.mxu0 %v9168_v38  ;;  %5945 = vmatpush.bf16.msrb.mxu1 %v8496_v40  ;;  %v8381_v38 = vld [vmem:[#allocation14 + $0x59c] sm:$0xf0]  ;;  %v10126_v40 = vld [vmem:[#allocation14 + $0xa8c] sm:$0xf] }
 0x317   :  { %6024 = vmatpush.bf16.msra.mxu3 %v8024_v18  ;;  %v10053_v18 = vld [vmem:[#allocation14 + $0x840] sm:$0xf0]  ;;  %v8384_v49 = vor.u32 %v9965_v11, %v8381_v38  ;;  %v9028_v62 = vor.u32 %v10126_v40, %v9025_v51  ;;  %v9389_v11 = vld [vmem:[#allocation14 + $0xd7c] sm:$0xf0]  ;;  %v10032_v40 = vld [vmem:[#allocation14 + $0x798] sm:$0xf0] }
 0x318   :  { %6010 = vmatpush.bf16.msra.mxu2 %v7828_v28  ;;  %v9109_v28 = vld [vmem:[#allocation14 + $0xb4c] sm:$0xf0] }
 0x319   :  { %v9112_v3 = vor.u32 %v10147_v57, %v9109_v28  ;;  %v7912_v57 = vor.u32 %v9850_v47, %v7911_v42  ;;  %v8724_v28 = vor.u32 %v10053_v18, %v8723_v7  ;;  %v9392_v47 = vor.u32 %v10217_v35, %v9389_v11  ;;  %v8247_v7 = vld [vmem:[#allocation14 + $0x470] sm:$0xf]  ;;  %v9934_v18 = vld [vmem:[#allocation14 + $0x488] sm:$0xf0] }
 0x31a   :  { %5985 = vmatpush.bf16.msra.mxu0 %v9140_v53  ;;  %5946 = vmatpush.bf16.msrb.mxu1 %v8468_v20  ;;  %v5759_v22 = vpop.f32.mrf.mxu2  ;;  %v10123_v53 = vld [vmem:[#allocation14 + $0xa70] sm:$0xf0] }
 0x31b   :  { %6025 = vmatpush.bf16.msra.mxu3 %v7996_v61  ;;  %v9955_v20 = vld [vmem:[#allocation14 + $0x530] sm:$0xf0]  ;;  %v5772_v61 = vpop.f32.mrf.mxu3  ;;  %v9004_v63 = vor.u32 %v10123_v53, %v9003_v52  ;;  %v9417_v22 = vld [vmem:[#allocation14 + $0xdb4] sm:$0xf0]  ;;  %v10210_v52 = vld [vmem:[#allocation14 + $0xd2c] sm:$0xf] }
 0x31c   :  { %6011 = vmatpush.bf16.msra.mxu2 %v7800_v54  ;;  %v9081_v54 = vld [vmem:[#allocation14 + $0xb14] sm:$0xf0]  ;;  %v8332_v9 = vor.u32 %v9955_v20, %v8331_v56  ;;  %v9361_v53 = vld [vmem:[#allocation14 + $0xd44] sm:$0xf0]  ;;  %v10095_v61 = vld [vmem:[#allocation14 + $0x990] sm:$0xf0] }
 0x31d   :  { %v9084_v19 = vor.u32 %v10140_v13, %v9081_v54  ;;  %v8303_v54 = vld [vmem:[#allocation14 + $0x4e0] sm:$0xf]  ;;  %v5733_v38 = vpop.f32.mrf.mxu0  ;;  %v8611_v20 = vld [vmem:[#allocation14 + $0x748] sm:$0xf] }
 0x31e   :  { %5986 = vmatpush.bf16.msra.mxu0 %v9112_v3  ;;  %5947 = vmatpush.bf16.msrb.mxu1 %v8440_v0  ;;  %v10046_v3 = vld [vmem:[#allocation14 + $0x808] sm:$0xf0]  ;;  %v10116_v0 = vld [vmem:[#allocation14 + $0xa38] sm:$0xf0]  ;;  %v8835_v38 = vld [vmem:[#allocation14 + $0x908] sm:$0xf] }
 0x31f   :  { %6026 = vmatpush.bf16.msra.mxu3 %v7968_v36  ;;  %v8696_v16 = vor.u32 %v10046_v3, %v8695_v1  ;;  %v8976_v36 = vor.u32 %v10116_v0, %v8975_v12  ;;  %v8219_v1 = vld [vmem:[#allocation14 + $0x438] sm:$0xf]  ;;  %v10203_v12 = vld [vmem:[#allocation14 + $0xcf4] sm:$0xf]  ;;  %v9333_v0 = vld [vmem:[#allocation14 + $0xd0c] sm:$0xf0] }
 0x320   :  { %6012 = vmatpush.bf16.msra.mxu2 %v7772_v30  ;;  %v8751_v30 = vld [vmem:[#allocation14 + $0x860] sm:$0xf] }
 0x321   :  { %v8752_v34 = vor.u32 %v10060_v32, %v8751_v30  ;;  %v9420_v30 = vor.u32 %v10224_v21, %v9417_v22  ;;  %v8275_v32 = vld [vmem:[#allocation14 + $0x4a8] sm:$0xf]  ;;  %v10088_v22 = vld [vmem:[#allocation14 + $0x958] sm:$0xf0] }
 0x322   :  { %5987 = vmatpush.bf16.msra.mxu0 %v9084_v19  ;;  %5948 = vmatpush.bf16.msrb.mxu1 %v8412_v33  ;;  %v8947_v19 = vld [vmem:[#allocation14 + $0x9e8] sm:$0xf]  ;;  %v9941_v33 = vld [vmem:[#allocation14 + $0x4c0] sm:$0xf0] }
 0x323   :  { %6027 = vmatpush.bf16.msra.mxu3 %v7940_v39  ;;  %v8948_v39 = vor.u32 %v10109_v5, %v8947_v19  ;;  %v8276_v42 = vor.u32 %v9941_v33, %v8275_v32  ;;  %v9920_v19 = vld [vmem:[#allocation14 + $0x418] sm:$0xf0]  ;;  %v9305_v32 = vld [vmem:[#allocation14 + $0xcd4] sm:$0xf0] }
 0x324   :  { %6013 = vmatpush.bf16.msra.mxu2 %v7744_v44  ;;  %v9958_v44 = vld [vmem:[#allocation14 + $0x54c] sm:$0xf] }
 0x325   :  { %v8356_v4 = vor.u32 %v9958_v44, %v8353_v55  ;;  %v10102_v44 = vld [vmem:[#allocation14 + $0x9c8] sm:$0xf0] }
 0x326   :  { %5988 = vmatpush.bf16.msra.mxu0 %v9056_v43  ;;  %5949 = vmatpush.bf16.msrb.mxu1 %v8384_v49  ;;  %v8919_v43 = vld [vmem:[#allocation14 + $0x9b0] sm:$0xf]  ;;  %v5667_v49 = vadd.f32 %v10782_v15, %v10774_v29  ;;  %v9927_v29 = vld [vmem:[#allocation14 + $0x450] sm:$0xf0]  ;;  %v10805_v15 = vld [vmem:[#allocation16] sm:$0xff] }
 0x327   :  { %6028 = vmatpush.bf16.msra.mxu3 %v7912_v57  ;;  %v8920_v56 = vor.u32 %v10102_v44, %v8919_v43  ;;  %v10025_v57 = vld [vmem:[#allocation14 + $0x760] sm:$0xf0]  ;;  %v3276_v3 = vperm.slane %v10805_v15, 2  ;;  %v8220_v21 = vor.u32 %v9927_v29, %v8219_v1  ;;  %v7857_v43 = vld [vmem:[#allocation14 + $0x17c] sm:$0xf0] }
 0x328   :  { %6014 = vmatpush.bf16.msra.mxu2 %v7716_v50  ;;  %v10231_v50 = vld [vmem:[#allocation14 + $0xdd4] sm:$0xf]  ;;  %v7829_v1 = vld [vmem:[#allocation14 + $0x144] sm:$0xf0] }
 0x329   :  { %v9448_v13 = vor.u32 %v10231_v50, %v9445_v59  ;;  %v8248_v50 = vor.u32 %v9934_v18, %v8247_v7  ;;  %v8891_v59 = vld [vmem:[#allocation14 + $0x978] sm:$0xf]  ;;  %v8163_v18 = vld [vmem:[#allocation14 + $0x3c8] sm:$0xf] }
 0x32a   :  { %5989 = vmatpush.bf16.msra.mxu0 %v9028_v62  ;;  %5950 = vmatpush.bf16.msrb.mxu1 %v8356_v4  ;;  %v5692_v62 = vpop.f32.mrf.mxu1 }
 0x32b   :  { %6073 = vmatpush.bf16.msrb.mxu3 %v9004_v63  ;;  %v9364_v63 = vor.u32 %v10210_v52, %v9361_v53  ;;  %v3275_v52 = vperm.slane %v10805_v15, 1  ;;  %v10189_v53 = vld [vmem:[#allocation14 + $0xc84] sm:$0xf] }
 0x32c   :  { %6015 = vmatpush.bf16.msra.mxu2 %v7688_v14  ;;  %v9948_v14 = vld [vmem:[#allocation14 + $0x4f8] sm:$0xf0]  ;;  %6029 = vmatmul.bf16.vlgmr.msra.gmra.mxu3 %v10716_v10 }
 0x32d   :  { %v8304_v26 = vor.u32 %v9948_v14, %v8303_v54  ;;  %5990 = vmatmul.bf16.vlgmr.msra.gmra.mxu0 %v10754_v60  ;;  %5951 = vmatmul.bf16.vlgmr.msrb.gmra.mxu1 %v10727_v17  ;;  %v8583_v54 = vld [vmem:[#allocation14 + $0x710] sm:$0xf]  ;;  %v10018_v14 = vld [vmem:[#allocation14 + $0x728] sm:$0xf0] }
 0x32e   :  { %6034 = vmatpush.bf16.msrb.mxu0 %v8332_v9  ;;  %5995 = vmatpush.bf16.msra.mxu1 %v9448_v13  ;;  %v8612_v9 = vor.u32 %v10025_v57, %v8611_v20  ;;  %v10808_v13 = vpop.f32.mrf.mxu0  ;;  %v8584_v5 = vor.u32 %v10018_v14, %v8583_v54  ;;  %v10179_v54 = vld [vmem:[#allocation14 + $0xc30] sm:$0xf0] }
 0x32f   :  { %6016 = vmatmul.bf16.vlgmr.msra.gmra.mxu2 %v10720_v46  ;;  %6074 = vmatpush.bf16.msrb.mxu3 %v8976_v36  ;;  %v9840_v36 = vld [vmem:[#allocation14 + $0x19c] sm:$0xf] }
 0x330   :  { %6060 = vmatpush.bf16.msrb.mxu2 %v8780_v24  ;;  %v8667_v24 = vld [vmem:[#allocation14 + $0x7b8] sm:$0xf] }
 0x331   :  { %v8668_v37 = vor.u32 %v10039_v25, %v8667_v24  ;;  %v7885_v24 = vld [vmem:[#allocation14 + $0x1b4] sm:$0xf0]  ;;  %v9336_v25 = vor.u32 %v10203_v12, %v9333_v0  ;;  %v5706_v12 = vadd.f32 %v10780_v45, %v3275_v52  ;;  %v9249_v0 = vld [vmem:[#allocation14 + $0xc64] sm:$0xf0] }
 0x332   :  { %6035 = vmatpush.bf16.msrb.mxu0 %v8304_v26  ;;  %5996 = vmatpush.bf16.msra.mxu1 %v9420_v30  ;;  %v5809_v55 = vpop.f32.mrf.mxu2  ;;  %v8191_v26 = vld [vmem:[#allocation14 + $0x400] sm:$0xf]  ;;  %v10196_v30 = vld [vmem:[#allocation14 + $0xcbc] sm:$0xf]  ;;  %v7888_v11 = vor.u32 %v9840_v36, %v7885_v24  ;;  %v5694_v44 = vpop.f32.mrf.mxu1  ;;  %v9171_v52 = vld [vmem:[#allocation14 + $0xba8] sm:$0xf] }
 0x333   :  { %6075 = vmatpush.bf16.msrb.mxu3 %v8948_v39  ;;  %v5810_v33 = vadd.f32 %v5809_v55, %v3276_v3  ;;  %v5822_v39 = vpop.f32.mrf.mxu3  ;;  %v9308_v7 = vor.u32 %v10196_v30, %v9305_v32  ;;  %v9277_v55 = vld [vmem:[#allocation14 + $0xc9c] sm:$0xf0]  ;;  %v9906_v3 = vld [vmem:[#allocation14 + $0x3a8] sm:$0xf0]  ;;  %v5719_v36 = vadd.f32 %v10785_v23, %v5706_v12  ;;  %v9812_v44 = vld [vmem:[#allocation14 + $0xbc] sm:$0xf] }
 0x334   :  { %6061 = vmatpush.bf16.msrb.mxu2 %v8752_v34  ;;  %v8639_v34 = vld [vmem:[#allocation14 + $0x780] sm:$0xf]  ;;  %v9280_v29 = vor.u32 %v10189_v53, %v9277_v55  ;;  %v10165_v53 = vld [vmem:[#allocation14 + $0xbc0] sm:$0xf0]  ;;  %v8471_v12 = vld [vmem:[#allocation14 + $0x630] sm:$0xf] }
 0x335   :  { %v8640_v51 = vor.u32 %v10032_v40, %v8639_v34  ;;  %v8192_v34 = vor.u32 %v9920_v19, %v8191_v26  ;;  %v10081_v40 = vld [vmem:[#allocation14 + $0x920] sm:$0xf0]  ;;  %v9819_v19 = vld [vmem:[#allocation14 + $0xf4] sm:$0xf] }
 0x336   :  { %6036 = vmatpush.bf16.msrb.mxu0 %v8276_v42  ;;  %5997 = vmatpush.bf16.msra.mxu1 %v9392_v47  ;;  %v9833_v42 = vld [vmem:[#allocation14 + $0x164] sm:$0xf]  ;;  %v10810_v47 = vadd.f32 %v5822_v39, %v5810_v33  ;;  %v8836_v20 = vor.u32 %v10081_v40, %v8835_v38  ;;  %v9199_v38 = vld [vmem:[#allocation14 + $0xbe0] sm:$0xf]  ;;  %v10172_v39 = vld [vmem:[#allocation14 + $0xbf8] sm:$0xf0] }
 0x337   :  { %6076 = vmatpush.bf16.msrb.mxu3 %v8920_v56  ;;  %v5785_v56 = vpop.f32.mrf.mxu0  ;;  %v7860_v57 = vor.u32 %v9833_v42, %v7857_v43  ;;  %v9889_v33 = vld [vmem:[#allocation14 + $0x324] sm:$0xf]  ;;  %v10004_v40 = vld [vmem:[#allocation14 + $0x6b8] sm:$0xf0] }
 0x338   :  { %6062 = vmatpush.bf16.msrb.mxu2 %v8724_v28  ;;  %v5680_v28 = vadd.f32 %v10792_v6, %v5667_v49  ;;  %v8892_v6 = vor.u32 %v10095_v61, %v8891_v59  ;;  %v9913_v49 = vld [vmem:[#allocation14 + $0x3e0] sm:$0xf0]  ;;  %v10182_v61 = vld [vmem:[#allocation14 + $0xc4c] sm:$0xf]  ;;  %v8499_v56 = vld [vmem:[#allocation14 + $0x668] sm:$0xf] }
 0x339   :  { %v8164_v59 = vor.u32 %v9913_v49, %v8163_v18  ;;  %v9252_v45 = vor.u32 %v10182_v61, %v9249_v0  ;;  %v9200_v18 = vor.u32 %v10172_v39, %v9199_v38  ;;  %v9882_v49 = vld [vmem:[#allocation14 + $0x2ec] sm:$0xf]  ;;  %v7969_v39 = vld [vmem:[#allocation14 + $0x25c] sm:$0xf0] }
 0x33a   :  { %v5693_v4 = vadd.f32 %v5692_v62, %v5680_v28  ;;  %6037 = vmatpush.bf16.msrb.mxu0 %v8248_v50  ;;  %5998 = vmatpush.bf16.msra.mxu1 %v9364_v63  ;;  %v8135_v28 = vld [vmem:[#allocation14 + $0x390] sm:$0xf]  ;;  %v10074_v62 = vld [vmem:[#allocation14 + $0x8e8] sm:$0xf0]  ;;  %v5744_v30 = vpop.f32.mrf.mxu1 }
 0x33b   :  { %6077 = vmatpush.bf16.msrb.mxu3 %v8892_v6  ;;  %v8807_v50 = vld [vmem:[#allocation14 + $0x8d0] sm:$0xf]  ;;  %v9826_v63 = vld [vmem:[#allocation14 + $0x12c] sm:$0xf]  ;;  %v9227_v6 = vld [vmem:[#allocation14 + $0xc18] sm:$0xf]  ;;  %v5824_v24 = vpop.f32.mrf.mxu3 }
 0x33c   :  { %6063 = vmatpush.bf16.msrb.mxu2 %v8696_v16  ;;  %v8863_v16 = vld [vmem:[#allocation14 + $0x940] sm:$0xf]  ;;  %10255 = vtanh.f32 %v5693_v4  ;;  %v9896_v4 = vld [vmem:[#allocation14 + $0x35c] sm:$0xf]  ;;  %v8808_v14 = vor.u32 %v10074_v62, %v8807_v50  ;;  %v9228_v32 = vor.u32 %v10179_v54, %v9227_v6  ;;  %v9805_v50 = vld [vmem:[#allocation14 + $0x84] sm:$0xf]  ;;  %v9172_v62 = vor.u32 %v10165_v53, %v9171_v52 }
 0x33d   :  { %v8864_v35 = vor.u32 %v10088_v22, %v8863_v16  ;;  %v7832_v16 = vor.u32 %v9826_v63, %v7829_v1  ;;  %v10011_v22 = vld [vmem:[#allocation14 + $0x6f0] sm:$0xf0]  ;;  %v8025_v1 = vld [vmem:[#allocation14 + $0x2cc] sm:$0xf0]  ;;  %v9990_v0 = vld [vmem:[#allocation14 + $0x648] sm:$0xf0] }
 0x33e   :  { %6038 = vmatpush.bf16.msrb.mxu0 %v8220_v21  ;;  %5999 = vmatpush.bf16.msra.mxu1 %v9336_v25  ;;  %v8555_v21 = vld [vmem:[#allocation14 + $0x6d8] sm:$0xf]  ;;  %v8136_v25 = vor.u32 %v9906_v3, %v8135_v28  ;;  %v9875_v63 = vld [vmem:[#allocation14 + $0x2b4] sm:$0xf]  ;;  %v9143_v3 = vld [vmem:[#allocation14 + $0xb70] sm:$0xf]  ;;  %v8472_v24 = vor.u32 %v9990_v0, %v8471_v12 }
 0x33f   :  { %6078 = vmatpush.bf16.msrb.mxu3 %v8864_v35  ;;  %v5732_v35 = vadd.f32 %v10797_v8, %v5719_v36  ;;  %v8028_v54 = vor.u32 %v9875_v63, %v8025_v1  ;;  %v7997_v36 = vld [vmem:[#allocation14 + $0x294] sm:$0xf0]  ;;  %v9854_v52 = vld [vmem:[#allocation14 + $0x20c] sm:$0xf]  ;;  %v8359_v0 = vld [vmem:[#allocation14 + $0x550] sm:$0xf] }
 0x340   :  { %6064 = vmatpush.bf16.msrb.mxu2 %v8668_v37  ;;  %v5811_v37 = vpop.f32.mrf.mxu2 }
 0x341   :  { %v8081_v37 = vld [vmem:[#allocation14 + $0x33c] sm:$0xf0]  ;;  %v5745_v42 = vadd.f32 %v5744_v30, %v5732_v35  ;;  %v9983_v30 = vld [vmem:[#allocation14 + $0x610] sm:$0xf0]  ;;  %v9861_v35 = vld [vmem:[#allocation14 + $0x244] sm:$0xf] }
 0x342   :  { %6039 = vmatpush.bf16.msrb.mxu0 %v8192_v34  ;;  %6000 = vmatpush.bf16.msra.mxu1 %v9308_v7  ;;  %v8527_v34 = vld [vmem:[#allocation14 + $0x6a0] sm:$0xf]  ;;  %v8084_v43 = vor.u32 %v9889_v33, %v8081_v37  ;;  %v7773_v7 = vld [vmem:[#allocation14 + $0xd4] sm:$0xf0]  ;;  %v5746_v61 = vpop.f32.mrf.mxu1  ;;  %v9791_v33 = vld [vmem:[#allocation14 + $0x14] sm:$0xf] }
 0x343   :  { %6079 = vmatpush.bf16.msrb.mxu3 %v8836_v20  ;;  %v8528_v8 = vor.u32 %v10004_v40, %v8527_v34  ;;  %v7776_v55 = vor.u32 %v9812_v44, %v7773_v7  ;;  %v9997_v20 = vld [vmem:[#allocation14 + $0x680] sm:$0xf0]  ;;  %v7689_v37 = vld [vmem:[#allocation14 + $0x2c] sm:$0xf0]  ;;  %v8781_v34 = vld [vmem:[#allocation14 + $0x8b4] sm:$0xf0] }
 0x344   :  { %6065 = vmatpush.bf16.msrb.mxu2 %v8640_v51  ;;  %v10256_v51 = vpop.eup %10255  ;;  %v10144_v44 = vld [vmem:[#allocation14 + $0xb18] sm:$0xf0]  ;;  %v7692_v7 = vor.u32 %v9791_v33, %v7689_v37  ;;  %v8387_v61 = vld [vmem:[#allocation14 + $0x588] sm:$0xf] }
 0x345   :  { %6327 = vst [vmem:[#allocation17] sm:$0xff] %v10256_v51  ;;  %v8053_v51 = vld [vmem:[#allocation14 + $0x304] sm:$0xf0] }
 0x346   :  { %6040 = vmatpush.bf16.msrb.mxu0 %v8164_v59  ;;  %6001 = vmatpush.bf16.msra.mxu1 %v9280_v29  ;;  %v8056_v28 = vor.u32 %v9882_v49, %v8053_v51  ;;  %v7745_v59 = vld [vmem:[#allocation14 + $0x9c] sm:$0xf0]  ;;  %v8500_v29 = vor.u32 %v9997_v20, %v8499_v56  ;;  %v7972_v51 = vor.u32 %v9861_v35, %v7969_v39  ;;  %v7941_v56 = vld [vmem:[#allocation14 + $0x224] sm:$0xf0]  ;;  %v10057_v20 = vld [vmem:[#allocation14 + $0x864] sm:$0xf] }
 0x347   :  { %6080 = vmatpush.bf16.msrb.mxu3 %v8808_v14  ;;  %v9798_v14 = vld [vmem:[#allocation14 + $0x4c] sm:$0xf]  ;;  %v7944_v1 = vor.u32 %v9854_v52, %v7941_v56  ;;  %v8949_v56 = vld [vmem:[#allocation14 + $0xa04] sm:$0xf0] }
 0x348   :  { %6066 = vmatpush.bf16.msrb.mxu2 %v8612_v9  ;;  %v8109_v9 = vld [vmem:[#allocation14 + $0x374] sm:$0xf0] }
 0x349   :  { %v8112_v26 = vor.u32 %v9896_v4, %v8109_v9  ;;  %v10158_v4 = vld [vmem:[#allocation14 + $0xb88] sm:$0xf0]  ;;  %v7748_v9 = vor.u32 %v9805_v50, %v7745_v59  ;;  %v9059_v50 = vld [vmem:[#allocation14 + $0xac8] sm:$0xf]  ;;  %v10137_v59 = vld [vmem:[#allocation14 + $0xae0] sm:$0xf0] }
 0x34a   :  { %6041 = vmatpush.bf16.msrb.mxu0 %v8136_v25  ;;  %6002 = vmatpush.bf16.msra.mxu1 %v9252_v45  ;;  %v9115_v25 = vld [vmem:[#allocation14 + $0xb38] sm:$0xf]  ;;  %v10824_v45 = vpop.f32.mrf.mxu0  ;;  %v9060_v12 = vor.u32 %v10137_v59, %v9059_v50  ;;  %v9395_v59 = vld [vmem:[#allocation14 + $0xd68] sm:$0xf] }
 0x34b   :  { %6125 = vmatpush.bf16.msra.mxu3 %v8112_v26  ;;  %v10151_v26 = vld [vmem:[#allocation14 + $0xb50] sm:$0xf0] }
 0x34c   :  { %6067 = vmatpush.bf16.msrb.mxu2 %v8584_v5  ;;  %v7801_v5 = vld [vmem:[#allocation14 + $0x10c] sm:$0xf0]  ;;  %6081 = vmatmul.bf16.vlgmr.msrb.gmra.mxu3 %v10745_v2  ;;  %v9116_v38 = vor.u32 %v10151_v26, %v9115_v25  ;;  %v10827_v53 = vpop.f32.mrf.mxu3  ;;  %v9005_v25 = vld [vmem:[#allocation14 + $0xa74] sm:$0xf0]  ;;  %v9952_v26 = vld [vmem:[#allocation14 + $0x51c] sm:$0xf] }
 0x34d   :  { %v7804_v23 = vor.u32 %v9819_v19, %v7801_v5  ;;  %6042 = vmatmul.bf16.vlgmr.msrb.gmra.mxu0 %v10731_v58  ;;  %6003 = vmatmul.bf16.vlgmr.msra.gmra.mxu1 %v10761_v41  ;;  %v8443_v5 = vld [vmem:[#allocation14 + $0x5f8] sm:$0xf] }
 0x34e   :  { %6086 = vmatpush.bf16.msra.mxu0 %v9228_v32 }
 0x34f   :  { %6068 = vmatmul.bf16.vlgmr.msrb.gmra.mxu2 %v10735_v31  ;;  %6126 = vmatpush.bf16.msra.mxu3 %v8084_v43  ;;  %v9087_v43 = vld [vmem:[#allocation14 + $0xb00] sm:$0xf] }
 0x350   :  { %6112 = vmatpush.bf16.msra.mxu2 %v7888_v11  ;;  %v8556_v11 = vor.u32 %v10011_v22, %v8555_v21  ;;  %v9144_v21 = vor.u32 %v10158_v4, %v9143_v3  ;;  %v9868_v22 = vld [vmem:[#allocation14 + $0x27c] sm:$0xf]  ;;  %v9031_v3 = vld [vmem:[#allocation14 + $0xa90] sm:$0xf]  ;;  %v9847_v4 = vld [vmem:[#allocation14 + $0x1d4] sm:$0xf] }
 0x352   :  { %6047 = vmatpush.bf16.msrb.mxu1 %v8556_v11  ;;  %6087 = vmatpush.bf16.msra.mxu0 %v9200_v18  ;;  %v5796_v11 = vpop.f32.mrf.mxu1  ;;  %v8415_v18 = vld [vmem:[#allocation14 + $0x5c0] sm:$0xf]  ;;  %v5837_v63 = vpop.f32.mrf.mxu0 }
 0x353   :  { %6127 = vmatpush.bf16.msra.mxu3 %v8056_v28  ;;  %v10029_v63 = vld [vmem:[#allocation14 + $0x784] sm:$0xf] }
 0x354   :  { %6113 = vmatpush.bf16.msra.mxu2 %v7860_v57  ;;  %v5758_v57 = vadd.f32 %v10790_v48, %v5745_v42  ;;  %v10821_v48 = vpop.f32.mrf.mxu2  ;;  %v8444_v42 = vor.u32 %v9983_v30, %v8443_v5  ;;  %v5876_v33 = vpop.f32.mrf.mxu3 }
 0x355   :  { %v9339_v33 = vld [vmem:[#allocation14 + $0xcf8] sm:$0xf] }
 0x356   :  { %6048 = vmatpush.bf16.msrb.mxu1 %v8528_v8  ;;  %v5771_v6 = vadd.f32 %v10794_v27, %v5758_v57  ;;  %6088 = vmatpush.bf16.msra.mxu0 %v9172_v62  ;;  %v8000_v27 = vor.u32 %v9868_v22, %v7997_v36  ;;  %v8753_v57 = vld [vmem:[#allocation14 + $0x87c] sm:$0xf0]  ;;  %v9969_v62 = vld [vmem:[#allocation14 + $0x5a0] sm:$0xf0]  ;;  %v10130_v36 = vld [vmem:[#allocation14 + $0xaa8] sm:$0xf0] }
 0x357   :  { %6128 = vmatpush.bf16.msra.mxu3 %v8028_v54  ;;  %v7913_v54 = vld [vmem:[#allocation14 + $0x1ec] sm:$0xf0]  ;;  %v8388_v22 = vor.u32 %v9969_v62, %v8387_v61  ;;  %v9032_v37 = vor.u32 %v10130_v36, %v9031_v3  ;;  %v10221_v61 = vld [vmem:[#allocation14 + $0xd80] sm:$0xf0]  ;;  %v10099_v3 = vld [vmem:[#allocation14 + $0x9b4] sm:$0xf] }
 0x358   :  { %6114 = vmatpush.bf16.msra.mxu2 %v7832_v16  ;;  %v7717_v16 = vld [vmem:[#allocation14 + $0x64] sm:$0xf0]  ;;  %v5784_v32 = vadd.f32 %v10808_v13, %v5771_v6  ;;  %v9976_v13 = vld [vmem:[#allocation14 + $0x5d8] sm:$0xf0]  ;;  %v9962_v6 = vld [vmem:[#allocation14 + $0x568] sm:$0xf0]  ;;  %v7916_v5 = vor.u32 %v9847_v4, %v7913_v54 }
 0x359   :  { %v7720_v19 = vor.u32 %v9798_v14, %v7717_v16  ;;  %v8416_v28 = vor.u32 %v9976_v13, %v8415_v18  ;;  %v10050_v14 = vld [vmem:[#allocation14 + $0x82c] sm:$0xf]  ;;  %v8725_v16 = vld [vmem:[#allocation14 + $0x844] sm:$0xf0]  ;;  %v8360_v39 = vor.u32 %v9962_v6, %v8359_v0  ;;  %v9423_v18 = vld [vmem:[#allocation14 + $0xda0] sm:$0xf] }
 0x35a   :  { %6049 = vmatpush.bf16.msrb.mxu1 %v8500_v29  ;;  %6089 = vmatpush.bf16.msra.mxu0 %v9144_v21  ;;  %v5797_v40 = vadd.f32 %v5796_v11, %v5784_v32  ;;  %v8756_v29 = vor.u32 %v10057_v20, %v8753_v57  ;;  %v8728_v30 = vor.u32 %v10050_v14, %v8725_v16  ;;  %v9451_v32 = vld [vmem:[#allocation14 + $0xdd8] sm:$0xf]  ;;  %v10043_v11 = vld [vmem:[#allocation14 + $0x7f4] sm:$0xf]  ;;  %v10228_v13 = vld [vmem:[#allocation14 + $0xdb8] sm:$0xf0] }
 0x35b   :  { %6129 = vmatpush.bf16.msra.mxu3 %v8000_v27  ;;  %v10235_v27 = vld [vmem:[#allocation14 + $0xdf0] sm:$0xf0]  ;;  %v9424_v20 = vor.u32 %v10228_v13, %v9423_v18  ;;  %v9938_v57 = vld [vmem:[#allocation14 + $0x4ac] sm:$0xf]  ;;  %v8921_v4 = vld [vmem:[#allocation14 + $0x9cc] sm:$0xf0] }
 0x35c   :  { %6115 = vmatpush.bf16.msra.mxu2 %v7804_v23  ;;  %v10064_v23 = vld [vmem:[#allocation14 + $0x89c] sm:$0xf]  ;;  %10257 = vtanh.f32 %v5797_v40  ;;  %v5863_v49 = vpop.f32.mrf.mxu2  ;;  %v8977_v40 = vld [vmem:[#allocation14 + $0xa3c] sm:$0xf0]  ;;  %v8249_v0 = vld [vmem:[#allocation14 + $0x48c] sm:$0xf0] }
 0x35d   :  { %v8784_v8 = vor.u32 %v10064_v23, %v8781_v34  ;;  %v10113_v34 = vld [vmem:[#allocation14 + $0xa24] sm:$0xf]  ;;  %v9367_v54 = vld [vmem:[#allocation14 + $0xd30] sm:$0xf]  ;;  %v10214_v14 = vld [vmem:[#allocation14 + $0xd48] sm:$0xf0] }
 0x35e   :  { %6050 = vmatpush.bf16.msrb.mxu1 %v8472_v24  ;;  %6090 = vmatpush.bf16.msra.mxu0 %v9116_v38  ;;  %v10120_v24 = vld [vmem:[#allocation14 + $0xa5c] sm:$0xf]  ;;  %v8697_v38 = vld [vmem:[#allocation14 + $0x80c] sm:$0xf0]  ;;  %v8980_v49 = vor.u32 %v10113_v34, %v8977_v40  ;;  %v8613_v36 = vld [vmem:[#allocation14 + $0x764] sm:$0xf0] }
 0x35f   :  { %6130 = vmatpush.bf16.msra.mxu3 %v7972_v51  ;;  %v9008_v35 = vor.u32 %v10120_v24, %v9005_v25  ;;  %v10036_v51 = vld [vmem:[#allocation14 + $0x7bc] sm:$0xf]  ;;  %v8193_v18 = vld [vmem:[#allocation14 + $0x41c] sm:$0xf0] }
 0x360   :  { %6116 = vmatpush.bf16.msra.mxu2 %v7776_v55  ;;  %v9088_v55 = vor.u32 %v10144_v44, %v9087_v43  ;;  %v9945_v43 = vld [vmem:[#allocation14 + $0x4e4] sm:$0xf]  ;;  %v8305_v44 = vld [vmem:[#allocation14 + $0x4fc] sm:$0xf0]  ;;  %v10092_v25 = vld [vmem:[#allocation14 + $0x97c] sm:$0xf] }
 0x361   :  { %v8308_v52 = vor.u32 %v9945_v43, %v8305_v44  ;;  %v7891_v43 = vld [vmem:[#allocation14 + $0x1a0] sm:$0xf]  ;;  %v9844_v44 = vld [vmem:[#allocation14 + $0x1b8] sm:$0xf0] }
 0x362   :  { %6051 = vmatpush.bf16.msrb.mxu1 %v8444_v42  ;;  %6091 = vmatpush.bf16.msra.mxu0 %v9088_v55  ;;  %v10258_v21 = vpop.eup %10257  ;;  %v9452_v42 = vor.u32 %v10235_v27, %v9451_v32  ;;  %v10106_v55 = vld [vmem:[#allocation14 + $0x9ec] sm:$0xf]  ;;  %v3277_v32 = vperm.slane %v10805_v15, 3 }
 0x363   :  { %6328 = vst [vmem:[#allocation17 + $0x8] sm:$0xff] %v10258_v21  ;;  %6131 = vmatpush.bf16.msra.mxu3 %v7944_v1  ;;  %v8952_v62 = vor.u32 %v10106_v55, %v8949_v56  ;;  %v8641_v1 = vld [vmem:[#allocation14 + $0x79c] sm:$0xf0]  ;;  %v8924_v21 = vor.u32 %v10099_v3, %v8921_v4  ;;  %v7892_v56 = vor.u32 %v9844_v44, %v7891_v43  ;;  %v9283_v3 = vld [vmem:[#allocation14 + $0xc88] sm:$0xf] }
 0x364   :  { %6117 = vmatpush.bf16.msra.mxu2 %v7748_v9  ;;  %v5798_v9 = vpop.f32.mrf.mxu1  ;;  %v8644_v6 = vor.u32 %v10029_v63, %v8641_v1  ;;  %v9910_v1 = vld [vmem:[#allocation14 + $0x3cc] sm:$0xf]  ;;  %v10193_v4 = vld [vmem:[#allocation14 + $0xca0] sm:$0xf0]  ;;  %v9823_v43 = vld [vmem:[#allocation14 + $0x110] sm:$0xf0] }
 0x365   :  { %v9396_v9 = vor.u32 %v10221_v61, %v9395_v59  ;;  %v7863_v59 = vld [vmem:[#allocation14 + $0x168] sm:$0xf]  ;;  %v9837_v61 = vld [vmem:[#allocation14 + $0x180] sm:$0xf0] }
 0x366   :  { %6052 = vmatpush.bf16.msrb.mxu1 %v8416_v28  ;;  %6092 = vmatpush.bf16.msra.mxu0 %v9060_v12  ;;  %v8277_v28 = vld [vmem:[#allocation14 + $0x4c4] sm:$0xf0]  ;;  %v9931_v12 = vld [vmem:[#allocation14 + $0x474] sm:$0xf] }
 0x367   :  { %6132 = vmatpush.bf16.msra.mxu3 %v7916_v5  ;;  %v8252_v24 = vor.u32 %v9931_v12, %v8249_v0  ;;  %v9924_v5 = vld [vmem:[#allocation14 + $0x43c] sm:$0xf]  ;;  %v7864_v0 = vor.u32 %v9837_v61, %v7863_v59  ;;  %v8059_v61 = vld [vmem:[#allocation14 + $0x2f0] sm:$0xf] }
 0x368   :  { %6118 = vmatpush.bf16.msra.mxu2 %v7720_v19  ;;  %v8333_v19 = vld [vmem:[#allocation14 + $0x534] sm:$0xf0] }
 0x369   :  { %v8336_v23 = vor.u32 %v9952_v26, %v8333_v19  ;;  %v8893_v26 = vld [vmem:[#allocation14 + $0x994] sm:$0xf0]  ;;  %v9368_v19 = vor.u32 %v10214_v14, %v9367_v54  ;;  %v10071_v54 = vld [vmem:[#allocation14 + $0x8d4] sm:$0xf] }
 0x36a   :  { %6053 = vmatpush.bf16.msrb.mxu1 %v8388_v22  ;;  %6093 = vmatpush.bf16.msra.mxu0 %v9032_v37  ;;  %v10022_v22 = vld [vmem:[#allocation14 + $0x74c] sm:$0xf]  ;;  %v10207_v37 = vld [vmem:[#allocation14 + $0xd10] sm:$0xf0] }
 0x36b   :  { %6177 = vmatpush.bf16.msrb.mxu3 %v9008_v35  ;;  %v8616_v27 = vor.u32 %v10022_v22, %v8613_v36  ;;  %v10834_v35 = vpop.f32.mrf.mxu0  ;;  %v9340_v15 = vor.u32 %v10207_v37, %v9339_v33  ;;  %v8809_v22 = vld [vmem:[#allocation14 + $0x8ec] sm:$0xf0] }
 0x36c   :  { %6119 = vmatpush.bf16.msra.mxu2 %v7692_v7  ;;  %v8700_v7 = vor.u32 %v10043_v11, %v8697_v38  ;;  %6133 = vmatmul.bf16.vlgmr.msra.gmra.mxu3 %v10716_v10  ;;  %v8896_v11 = vor.u32 %v10092_v25, %v8893_v26  ;;  %v10015_v38 = vld [vmem:[#allocation14 + $0x714] sm:$0xf]  ;;  %v10836_v34 = vpop.f32.mrf.mxu1  ;;  %v7835_v36 = vld [vmem:[#allocation14 + $0x130] sm:$0xf]  ;;  %v9284_v25 = vor.u32 %v10193_v4, %v9283_v3  ;;  %v8501_v3 = vld [vmem:[#allocation14 + $0x684] sm:$0xf0] }
 0x36d   :  { %6094 = vmatmul.bf16.vlgmr.msra.gmra.mxu0 %v10754_v60  ;;  %v8137_v26 = vld [vmem:[#allocation14 + $0x3ac] sm:$0xf0]  ;;  %v8812_v33 = vor.u32 %v10071_v54, %v8809_v22  ;;  %v8031_v54 = vld [vmem:[#allocation14 + $0x2b8] sm:$0xf] }
 0x36e   :  { %6054 = vmatpush.bf16.msrb.mxu1 %v8360_v39  ;;  %6138 = vmatpush.bf16.msrb.mxu0 %v8336_v23  ;;  %v8585_v39 = vld [vmem:[#allocation14 + $0x72c] sm:$0xf0]  ;;  %v10085_v23 = vld [vmem:[#allocation14 + $0x944] sm:$0xf] }
 0x36f   :  { %6120 = vmatmul.bf16.vlgmr.msra.gmra.mxu2 %v10720_v46  ;;  %6178 = vmatpush.bf16.msrb.mxu3 %v8980_v49  ;;  %v8588_v13 = vor.u32 %v10015_v38, %v8585_v39  ;;  %v9311_v49 = vld [vmem:[#allocation14 + $0xcc0] sm:$0xf]  ;;  %v8557_v38 = vld [vmem:[#allocation14 + $0x6f4] sm:$0xf0]  ;;  %v9145_v22 = vld [vmem:[#allocation14 + $0xb8c] sm:$0xf0] }
 0x370   :  { %6164 = vmatpush.bf16.msrb.mxu2 %v8784_v8  ;;  %v8669_v8 = vld [vmem:[#allocation14 + $0x7d4] sm:$0xf0] }
 0x371   :  { %v8672_v50 = vor.u32 %v10036_v51, %v8669_v8  ;;  %6055 = vmatmul.bf16.vlgmr.msrb.gmra.mxu1 %v10727_v17  ;;  %v10200_v51 = vld [vmem:[#allocation14 + $0xcd8] sm:$0xf0] }
 0x372   :  { %6099 = vmatpush.bf16.msra.mxu1 %v9452_v42  ;;  %6139 = vmatpush.bf16.msrb.mxu0 %v8308_v52  ;;  %v5913_v16 = vpop.f32.mrf.mxu2  ;;  %v8865_v42 = vld [vmem:[#allocation14 + $0x95c] sm:$0xf0]  ;;  %v9312_v63 = vor.u32 %v10200_v51, %v9311_v49  ;;  %v10169_v51 = vld [vmem:[#allocation14 + $0xbe4] sm:$0xf] }
 0x373   :  { %6179 = vmatpush.bf16.msrb.mxu3 %v8952_v62  ;;  %v5914_v8 = vadd.f32 %v5913_v16, %v3277_v32  ;;  %v8868_v55 = vor.u32 %v10085_v23, %v8865_v42  ;;  %v10176_v32 = vld [vmem:[#allocation14 + $0xc1c] sm:$0xf]  ;;  %v7807_v42 = vld [vmem:[#allocation14 + $0xf8] sm:$0xf] }
 0x374   :  { %6165 = vmatpush.bf16.msrb.mxu2 %v8756_v29  ;;  %v8280_v29 = vor.u32 %v9938_v57, %v8277_v28  ;;  %v5926_v57 = vpop.f32.mrf.mxu3  ;;  %v5850_v14 = vpop.f32.mrf.mxu1 }
 0x375   :  { %v10838_v62 = vadd.f32 %v5926_v57, %v5914_v8  ;;  %v9201_v8 = vld [vmem:[#allocation14 + $0xbfc] sm:$0xf0]  ;;  %v9879_v14 = vld [vmem:[#allocation14 + $0x2d0] sm:$0xf0] }
 0x376   :  { %6100 = vmatpush.bf16.msra.mxu1 %v9424_v20  ;;  %6140 = vmatpush.bf16.msrb.mxu0 %v8280_v29  ;;  %v10078_v20 = vld [vmem:[#allocation14 + $0x90c] sm:$0xf]  ;;  %v8165_v29 = vld [vmem:[#allocation14 + $0x3e4] sm:$0xf0]  ;;  %v9204_v59 = vor.u32 %v10169_v51, %v9201_v8  ;;  %v8787_v51 = vld [vmem:[#allocation14 + $0x8a0] sm:$0xf] }
 0x377   :  { %6180 = vmatpush.bf16.msrb.mxu3 %v8924_v21  ;;  %v8168_v16 = vor.u32 %v9910_v1, %v8165_v29  ;;  %v9255_v21 = vld [vmem:[#allocation14 + $0xc50] sm:$0xf]  ;;  %v9173_v1 = vld [vmem:[#allocation14 + $0xbc4] sm:$0xf0]  ;;  %v9994_v29 = vld [vmem:[#allocation14 + $0x66c] sm:$0xf] }
 0x378   :  { %6166 = vmatpush.bf16.msrb.mxu2 %v8728_v30  ;;  %v8221_v30 = vld [vmem:[#allocation14 + $0x454] sm:$0xf0]  ;;  %v10068_v8 = vld [vmem:[#allocation14 + $0x8b8] sm:$0xf0] }
 0x379   :  { %v8224_v40 = vor.u32 %v9924_v5, %v8221_v30  ;;  %v9900_v5 = vld [vmem:[#allocation14 + $0x378] sm:$0xf0]  ;;  %v10186_v30 = vld [vmem:[#allocation14 + $0xc68] sm:$0xf0] }
 0x37a   :  { %6101 = vmatpush.bf16.msra.mxu1 %v9396_v9  ;;  %6141 = vmatpush.bf16.msrb.mxu0 %v8252_v24  ;;  %v5915_v52 = vpop.f32.mrf.mxu2  ;;  %v5889_v9 = vpop.f32.mrf.mxu0  ;;  %v9830_v24 = vld [vmem:[#allocation14 + $0x148] sm:$0xf0]  ;;  %v9256_v44 = vor.u32 %v10186_v30, %v9255_v21  ;;  %v10155_v21 = vld [vmem:[#allocation14 + $0xb74] sm:$0xf] }
 0x37b   :  { %6181 = vmatpush.bf16.msrb.mxu3 %v8896_v11  ;;  %v7836_v37 = vor.u32 %v9830_v24, %v7835_v36  ;;  %v10008_v11 = vld [vmem:[#allocation14 + $0x6dc] sm:$0xf]  ;;  %v7808_v52 = vor.u32 %v9823_v43, %v7807_v42  ;;  %v9987_v24 = vld [vmem:[#allocation14 + $0x634] sm:$0xf]  ;;  %v9802_v30 = vld [vmem:[#allocation14 + $0x68] sm:$0xf0] }
 0x37c   :  { %6167 = vmatpush.bf16.msrb.mxu2 %v8700_v7  ;;  %v9917_v7 = vld [vmem:[#allocation14 + $0x404] sm:$0xf]  ;;  %v5928_v39 = vpop.f32.mrf.mxu3  ;;  %v8560_v49 = vor.u32 %v10008_v11, %v8557_v38  ;;  %v10148_v11 = vld [vmem:[#allocation14 + $0xb3c] sm:$0xf]  ;;  %v9117_v38 = vld [vmem:[#allocation14 + $0xb54] sm:$0xf0] }
 0x37d   :  { %v8196_v28 = vor.u32 %v9917_v7, %v8193_v18  ;;  %v8087_v7 = vld [vmem:[#allocation14 + $0x328] sm:$0xf]  ;;  %v9893_v18 = vld [vmem:[#allocation14 + $0x340] sm:$0xf0] }
 0x37e   :  { %6102 = vmatpush.bf16.msra.mxu1 %v9368_v19  ;;  %6142 = vmatpush.bf16.msrb.mxu0 %v8224_v40  ;;  %v8115_v19 = vld [vmem:[#allocation14 + $0x360] sm:$0xf]  ;;  %v8088_v57 = vor.u32 %v9893_v18, %v8087_v7  ;;  %v7975_v7 = vld [vmem:[#allocation14 + $0x248] sm:$0xf] }
 0x37f   :  { %6182 = vmatpush.bf16.msrb.mxu3 %v8868_v55  ;;  %v8116_v40 = vor.u32 %v9900_v5, %v8115_v19  ;;  %v10001_v55 = vld [vmem:[#allocation14 + $0x6a4] sm:$0xf]  ;;  %v8032_v19 = vor.u32 %v9879_v14, %v8031_v54  ;;  %v7723_v5 = vld [vmem:[#allocation14 + $0x50] sm:$0xf] }
 0x380   :  { %6168 = vmatpush.bf16.msrb.mxu2 %v8672_v50  ;;  %v8837_v50 = vld [vmem:[#allocation14 + $0x924] sm:$0xf0]  ;;  %v7724_v39 = vor.u32 %v9802_v30, %v7723_v5  ;;  %v10054_v5 = vld [vmem:[#allocation14 + $0x848] sm:$0xf0] }
 0x381   :  { %v8840_v12 = vor.u32 %v10078_v20, %v8837_v50  ;;  %v9816_v50 = vld [vmem:[#allocation14 + $0xd8] sm:$0xf0] }
 0x382   :  { %6103 = vmatpush.bf16.msra.mxu1 %v9340_v15  ;;  %6143 = vmatpush.bf16.msrb.mxu0 %v8196_v28  ;;  %v7779_v28 = vld [vmem:[#allocation14 + $0xc0] sm:$0xf] }
 0x383   :  { %6183 = vmatpush.bf16.msrb.mxu3 %v8840_v12  ;;  %v7751_v12 = vld [vmem:[#allocation14 + $0x88] sm:$0xf] }
 0x384   :  { %6169 = vmatpush.bf16.msrb.mxu2 %v8644_v6  ;;  %v9903_v6 = vld [vmem:[#allocation14 + $0x394] sm:$0xf] }
 0x385   :  { %v8140_v23 = vor.u32 %v9903_v6, %v8137_v26 }
 0x386   :  { %6104 = vmatpush.bf16.msra.mxu1 %v9312_v63  ;;  %6144 = vmatpush.bf16.msrb.mxu0 %v8168_v16  ;;  %v10162_v63 = vld [vmem:[#allocation14 + $0xbac] sm:$0xf]  ;;  %v8504_v16 = vor.u32 %v9994_v29, %v8501_v3  ;;  %v10061_v29 = vld [vmem:[#allocation14 + $0x880] sm:$0xf0] }
 0x387   :  { %6184 = vmatpush.bf16.msrb.mxu3 %v8812_v33  ;;  %v9176_v6 = vor.u32 %v10162_v63, %v9173_v1  ;;  %v9872_v33 = vld [vmem:[#allocation14 + $0x298] sm:$0xf0]  ;;  %v9858_v1 = vld [vmem:[#allocation14 + $0x228] sm:$0xf0] }
 0x388   :  { %6170 = vmatpush.bf16.msrb.mxu2 %v8616_v27  ;;  %v9229_v27 = vld [vmem:[#allocation14 + $0xc34] sm:$0xf0] }
 0x389   :  { %v9232_v15 = vor.u32 %v10176_v32, %v9229_v27  ;;  %v9148_v32 = vor.u32 %v10155_v21, %v9145_v22  ;;  %v8003_v27 = vld [vmem:[#allocation14 + $0x280] sm:$0xf]  ;;  %v7919_v21 = vld [vmem:[#allocation14 + $0x1d8] sm:$0xf] }
 0x38a   :  { %6105 = vmatpush.bf16.msra.mxu1 %v9284_v25  ;;  %6145 = vmatpush.bf16.msrb.mxu0 %v8140_v23  ;;  %v8473_v25 = vld [vmem:[#allocation14 + $0x64c] sm:$0xf0]  ;;  %v9980_v23 = vld [vmem:[#allocation14 + $0x5fc] sm:$0xf]  ;;  %v10852_v42 = vpop.f32.mrf.mxu0  ;;  %v8004_v43 = vor.u32 %v9872_v33, %v8003_v27  ;;  %v5900_v18 = vpop.f32.mrf.mxu1  ;;  %v9011_v33 = vld [vmem:[#allocation14 + $0xa60] sm:$0xf] }
 0x38b   :  { %6229 = vmatpush.bf16.msra.mxu3 %v8116_v40  ;;  %v8445_v40 = vld [vmem:[#allocation14 + $0x614] sm:$0xf0]  ;;  %v9033_v27 = vld [vmem:[#allocation14 + $0xaac] sm:$0xf0] }
 0x38c   :  { %6171 = vmatpush.bf16.msrb.mxu2 %v8588_v13  ;;  %v5836_v13 = vadd.f32 %v10824_v45, %v10810_v47  ;;  %v9886_v47 = vld [vmem:[#allocation14 + $0x308] sm:$0xf0]  ;;  %6185 = vmatmul.bf16.vlgmr.msrb.gmra.mxu3 %v10745_v2 }
 0x38d   :  { %6146 = vmatmul.bf16.vlgmr.msrb.gmra.mxu0 %v10731_v58  ;;  %v8060_v9 = vor.u32 %v9886_v47, %v8059_v61  ;;  %v8788_v61 = vor.u32 %v10068_v8, %v8787_v51  ;;  %v7947_v47 = vld [vmem:[#allocation14 + $0x210] sm:$0xf]  ;;  %v10117_v51 = vld [vmem:[#allocation14 + $0xa40] sm:$0xf0] }
 0x38e   :  { %v5849_v20 = vadd.f32 %v10836_v34, %v5836_v13  ;;  %6106 = vmatpush.bf16.msra.mxu1 %v9256_v44  ;;  %6190 = vmatpush.bf16.msra.mxu0 %v9232_v15  ;;  %v7780_v34 = vor.u32 %v9816_v50, %v7779_v28  ;;  %v7695_v44 = vld [vmem:[#allocation14 + $0x18] sm:$0xf]  ;;  %v9795_v15 = vld [vmem:[#allocation14 + $0x30] sm:$0xf0]  ;;  %v9120_v13 = vor.u32 %v10148_v11, %v9117_v38  ;;  %v8417_v28 = vld [vmem:[#allocation14 + $0x5dc] sm:$0xf0] }
 0x38f   :  { %6172 = vmatmul.bf16.vlgmr.msrb.gmra.mxu2 %v10735_v31  ;;  %6230 = vmatpush.bf16.msra.mxu3 %v8088_v57  ;;  %v9973_v57 = vld [vmem:[#allocation14 + $0x5c4] sm:$0xf]  ;;  %v7948_v54 = vor.u32 %v9858_v1, %v7947_v47  ;;  %v8339_v11 = vld [vmem:[#allocation14 + $0x520] sm:$0xf]  ;;  %v9956_v38 = vld [vmem:[#allocation14 + $0x538] sm:$0xf0] }
 0x390   :  { %6216 = vmatpush.bf16.msra.mxu2 %v7892_v56  ;;  %v8529_v56 = vld [vmem:[#allocation14 + $0x6bc] sm:$0xf0]  ;;  %v5862_v4 = vadd.f32 %v10821_v48, %v5849_v20  ;;  %v8420_v3 = vor.u32 %v9973_v57, %v8417_v28  ;;  %v10110_v47 = vld [vmem:[#allocation14 + $0xa08] sm:$0xf0]  ;;  %v8283_v1 = vld [vmem:[#allocation14 + $0x4b0] sm:$0xf] }
 0x391   :  { %v8532_v45 = vor.u32 %v10001_v55, %v8529_v56  ;;  %6107 = vmatmul.bf16.vlgmr.msra.gmra.mxu1 %v10761_v41  ;;  %v8448_v55 = vor.u32 %v9980_v23, %v8445_v40  ;;  %v10141_v56 = vld [vmem:[#allocation14 + $0xb04] sm:$0xf]  ;;  %v9089_v20 = vld [vmem:[#allocation14 + $0xb1c] sm:$0xf0]  ;;  %v10232_v40 = vld [vmem:[#allocation14 + $0xddc] sm:$0xf] }
 0x392   :  { %6151 = vmatpush.bf16.msrb.mxu1 %v8560_v49  ;;  %6191 = vmatpush.bf16.msra.mxu0 %v9204_v59  ;;  %v5875_v48 = vadd.f32 %v10827_v53, %v5862_v4  ;;  %v10849_v26 = vpop.f32.mrf.mxu2  ;;  %v9865_v49 = vld [vmem:[#allocation14 + $0x260] sm:$0xf0]  ;;  %v9092_v63 = vor.u32 %v10141_v56, %v9089_v20  ;;  %v10134_v4 = vld [vmem:[#allocation14 + $0xacc] sm:$0xf]  ;;  %v5902_v22 = vpop.f32.mrf.mxu1  ;;  %v8675_v28 = vld [vmem:[#allocation14 + $0x7c0] sm:$0xf] }
 0x393   :  { %6231 = vmatpush.bf16.msra.mxu3 %v8060_v9  ;;  %v7976_v59 = vor.u32 %v9865_v49, %v7975_v7  ;;  %v9061_v9 = vld [vmem:[#allocation14 + $0xae4] sm:$0xf0]  ;;  %v8703_v7 = vld [vmem:[#allocation14 + $0x7f8] sm:$0xf]  ;;  %v10225_v20 = vld [vmem:[#allocation14 + $0xda4] sm:$0xf] }
 0x394   :  { %6217 = vmatpush.bf16.msra.mxu2 %v7864_v0  ;;  %v9809_v0 = vld [vmem:[#allocation14 + $0xa0] sm:$0xf0]  ;;  %v5888_v53 = vadd.f32 %v10834_v35, %v5875_v48  ;;  %v7696_v35 = vor.u32 %v9795_v15, %v7695_v44  ;;  %v9851_v48 = vld [vmem:[#allocation14 + $0x1f0] sm:$0xf0]  ;;  %v8983_v49 = vld [vmem:[#allocation14 + $0xa28] sm:$0xf] }
 0x395   :  { %v7752_v36 = vor.u32 %v9809_v0, %v7751_v12  ;;  %v9966_v12 = vld [vmem:[#allocation14 + $0x58c] sm:$0xf]  ;;  %v8389_v0 = vld [vmem:[#allocation14 + $0x5a4] sm:$0xf0]  ;;  %v8984_v57 = vor.u32 %v10117_v51, %v8983_v49  ;;  %v10089_v49 = vld [vmem:[#allocation14 + $0x960] sm:$0xf0] }
 0x396   :  { %6152 = vmatpush.bf16.msrb.mxu1 %v8532_v45  ;;  %6192 = vmatpush.bf16.msra.mxu0 %v9176_v6  ;;  %v10854_v45 = vpop.f32.mrf.mxu3  ;;  %v5941_v6 = vpop.f32.mrf.mxu0 }
 0x397   :  { %6232 = vmatpush.bf16.msra.mxu3 %v8032_v19  ;;  %v8731_v19 = vld [vmem:[#allocation14 + $0x830] sm:$0xf] }
 0x398   :  { %6218 = vmatpush.bf16.msra.mxu2 %v7836_v37  ;;  %v8476_v37 = vor.u32 %v9987_v24, %v8473_v25  ;;  %v9959_v24 = vld [vmem:[#allocation14 + $0x554] sm:$0xf]  ;;  %v8361_v25 = vld [vmem:[#allocation14 + $0x56c] sm:$0xf0]  ;;  %v8732_v23 = vor.u32 %v10054_v5, %v8731_v19  ;;  %v10026_v5 = vld [vmem:[#allocation14 + $0x768] sm:$0xf0] }
 0x399   :  { %v8619_v19 = vld [vmem:[#allocation14 + $0x750] sm:$0xf] }
 0x39a   :  { %6153 = vmatpush.bf16.msrb.mxu1 %v8504_v16  ;;  %6193 = vmatpush.bf16.msra.mxu0 %v9148_v32  ;;  %v5967_v50 = vpop.f32.mrf.mxu2  ;;  %v10127_v16 = vld [vmem:[#allocation14 + $0xa94] sm:$0xf]  ;;  %v8392_v32 = vor.u32 %v9966_v12, %v8389_v0  ;;  %v8647_v12 = vld [vmem:[#allocation14 + $0x788] sm:$0xf]  ;;  %v10033_v0 = vld [vmem:[#allocation14 + $0x7a0] sm:$0xf0] }
 0x39b   :  { %6233 = vmatpush.bf16.msra.mxu3 %v8004_v43  ;;  %v9036_v44 = vor.u32 %v10127_v16, %v9033_v27  ;;  %v10040_v50 = vld [vmem:[#allocation14 + $0x7d8] sm:$0xf0]  ;;  %v8255_v16 = vld [vmem:[#allocation14 + $0x478] sm:$0xf]  ;;  %v8648_v22 = vor.u32 %v10033_v0, %v8647_v12 }
 0x39c   :  { %6219 = vmatpush.bf16.msra.mxu2 %v7808_v52  ;;  %v5901_v52 = vadd.f32 %v5900_v18, %v5888_v53  ;;  %v9453_v53 = vld [vmem:[#allocation14 + $0xdf4] sm:$0xf0]  ;;  %v10047_v18 = vld [vmem:[#allocation14 + $0x810] sm:$0xf0]  ;;  %v10096_v27 = vld [vmem:[#allocation14 + $0x998] sm:$0xf0] }
 0x39d   :  { %v9456_v8 = vor.u32 %v10232_v40, %v9453_v53  ;;  %v8704_v56 = vor.u32 %v10047_v18, %v8703_v7  ;;  %v10860_v40 = vld [vmem:[#allocation16] sm:$0xff]  ;;  %v10019_v7 = vld [vmem:[#allocation14 + $0x730] sm:$0xf0] }
 0x39e   :  { %6154 = vmatpush.bf16.msrb.mxu1 %v8476_v37  ;;  %10259 = vtanh.f32 %v5901_v52  ;;  %6194 = vmatpush.bf16.msra.mxu0 %v9120_v13  ;;  %v10124_v37 = vld [vmem:[#allocation14 + $0xa78] sm:$0xf0]  ;;  %v5980_v43 = vpop.f32.mrf.mxu3  ;;  %v8340_v13 = vor.u32 %v9956_v38, %v8339_v11  ;;  %v8311_v52 = vld [vmem:[#allocation14 + $0x4e8] sm:$0xf]  ;;  %v8620_v38 = vor.u32 %v10026_v5, %v8619_v19  ;;  %v3278_v53 = vperm.slane %v10860_v40, 4 }
 0x39f   :  { %6234 = vmatpush.bf16.msra.mxu3 %v7976_v59  ;;  %v9012_v15 = vor.u32 %v10124_v37, %v9011_v33  ;;  %v8227_v37 = vld [vmem:[#allocation14 + $0x440] sm:$0xf]  ;;  %v9928_v11 = vld [vmem:[#allocation14 + $0x458] sm:$0xf0] }
 0x3a0   :  { %6220 = vmatpush.bf16.msra.mxu2 %v7780_v34  ;;  %v8759_v34 = vld [vmem:[#allocation14 + $0x868] sm:$0xf]  ;;  %v8563_v19 = vld [vmem:[#allocation14 + $0x6e0] sm:$0xf]  ;;  %v10012_v5 = vld [vmem:[#allocation14 + $0x6f8] sm:$0xf0] }
 0x3a1   :  { %v8760_v14 = vor.u32 %v10061_v29, %v8759_v34  ;;  %v9942_v34 = vld [vmem:[#allocation14 + $0x4c8] sm:$0xf0]  ;;  %v8676_v29 = vor.u32 %v10040_v50, %v8675_v28 }
 0x3a2   :  { %6155 = vmatpush.bf16.msrb.mxu1 %v8448_v55  ;;  %6195 = vmatpush.bf16.msra.mxu0 %v9092_v63  ;;  %v9949_v55 = vld [vmem:[#allocation14 + $0x500] sm:$0xf0]  ;;  %v8284_v6 = vor.u32 %v9942_v34, %v8283_v1  ;;  %v8171_v34 = vld [vmem:[#allocation14 + $0x3d0] sm:$0xf] }
 0x3a3   :  { %6235 = vmatpush.bf16.msra.mxu3 %v7948_v54  ;;  %v8312_v59 = vor.u32 %v9949_v55, %v8311_v52  ;;  %v8927_v54 = vld [vmem:[#allocation14 + $0x9b8] sm:$0xf]  ;;  %v9921_v52 = vld [vmem:[#allocation14 + $0x420] sm:$0xf0] }
 0x3a4   :  { %6221 = vmatpush.bf16.msra.mxu2 %v7752_v36  ;;  %v9064_v36 = vor.u32 %v10134_v4, %v9061_v9  ;;  %v10260_v30 = vpop.eup %10259  ;;  %v9397_v4 = vld [vmem:[#allocation14 + $0xd84] sm:$0xf0] }
 0x3a5   :  { %6329 = vst [vmem:[#allocation17 + $0x10] sm:$0xff] %v10260_v30 }
 0x3a6   :  { %6156 = vmatpush.bf16.msrb.mxu1 %v8420_v3  ;;  %6196 = vmatpush.bf16.msra.mxu0 %v9064_v36  ;;  %v10218_v3 = vld [vmem:[#allocation14 + $0xd6c] sm:$0xf]  ;;  %v10211_v36 = vld [vmem:[#allocation14 + $0xd34] sm:$0xf] }
 0x3a8   :  { %6222 = vmatpush.bf16.msra.mxu2 %v7724_v39  ;;  %v7920_v39 = vor.u32 %v9851_v48, %v7919_v21  ;;  %v9935_v21 = vld [vmem:[#allocation14 + $0x490] sm:$0xf0] }
 0x3a9   :  { %v8256_v30 = vor.u32 %v9935_v21, %v8255_v16  ;;  %v10183_v16 = vld [vmem:[#allocation14 + $0xc54] sm:$0xf]  ;;  %v8143_v21 = vld [vmem:[#allocation14 + $0x398] sm:$0xf] }
 0x3aa   :  { %6157 = vmatpush.bf16.msrb.mxu1 %v8392_v32  ;;  %6236 = vmatpush.bf16.msra.mxu3 %v7920_v39  ;;  %v8899_v32 = vld [vmem:[#allocation14 + $0x980] sm:$0xf]  ;;  %v10204_v39 = vld [vmem:[#allocation14 + $0xcfc] sm:$0xf]  ;;  %v10863_v43 = vpop.f32.mrf.mxu0  ;;  %v10865_v18 = vpop.f32.mrf.mxu1 }
 0x3ab   :  { %6197 = vmatpush.bf16.msra.mxu0 %v9036_v44  ;;  %v8900_v44 = vor.u32 %v10096_v27, %v8899_v32 }
 0x3ac   :  { %6223 = vmatpush.bf16.msra.mxu2 %v7696_v35  ;;  %v9425_v35 = vld [vmem:[#allocation14 + $0xdbc] sm:$0xf0] }
 0x3ad   :  { %6237 = vmatmul.bf16.vlgmr.msra.gmra.mxu3 %v10716_v10  ;;  %v9428_v63 = vor.u32 %v10225_v20, %v9425_v35  ;;  %v9400_v10 = vor.u32 %v10218_v3, %v9397_v4  ;;  %v9313_v20 = vld [vmem:[#allocation14 + $0xcdc] sm:$0xf0]  ;;  %v10190_v3 = vld [vmem:[#allocation14 + $0xc8c] sm:$0xf]  ;;  %v9285_v4 = vld [vmem:[#allocation14 + $0xca4] sm:$0xf0] }
 0x3ae   :  { %6281 = vmatpush.bf16.msrb.mxu3 %v9012_v15  ;;  %6198 = vmatmul.bf16.vlgmr.msra.gmra.mxu0 %v10754_v60  ;;  %v8591_v15 = vld [vmem:[#allocation14 + $0x718] sm:$0xf] }
 0x3af   :  { %6224 = vmatmul.bf16.vlgmr.msra.gmra.mxu2 %v10720_v46  ;;  %v8364_v46 = vor.u32 %v9959_v24, %v8361_v25  ;;  %6242 = vmatpush.bf16.msrb.mxu0 %v8340_v13  ;;  %v9369_v24 = vld [vmem:[#allocation14 + $0xd4c] sm:$0xf0]  ;;  %v8871_v13 = vld [vmem:[#allocation14 + $0x948] sm:$0xf]  ;;  %v8592_v55 = vor.u32 %v10019_v7, %v8591_v15  ;;  %v6030_v50 = vpop.f32.mrf.mxu3 }
 0x3b0   :  { %6268 = vmatpush.bf16.msrb.mxu2 %v8788_v61  ;;  %v8955_v61 = vld [vmem:[#allocation14 + $0x9f0] sm:$0xf]  ;;  %v9372_v33 = vor.u32 %v10211_v36, %v9369_v24  ;;  %v8872_v28 = vor.u32 %v10089_v49, %v8871_v13  ;;  %v9235_v24 = vld [vmem:[#allocation14 + $0xc20] sm:$0xf] }
 0x3b1   :  { %6158 = vmatpush.bf16.msrb.mxu1 %v8364_v46  ;;  %v8956_v9 = vor.u32 %v10110_v47, %v8955_v61  ;;  %v8228_v46 = vor.u32 %v9928_v11, %v8227_v37  ;;  %v8843_v61 = vld [vmem:[#allocation14 + $0x910] sm:$0xf]  ;;  %v10082_v47 = vld [vmem:[#allocation14 + $0x928] sm:$0xf0]  ;;  %v8564_v37 = vor.u32 %v10012_v5, %v8563_v19  ;;  %v9207_v11 = vld [vmem:[#allocation14 + $0xbe8] sm:$0xf] }
 0x3b2   :  { %6282 = vmatpush.bf16.msrb.mxu3 %v8984_v57  ;;  %v6017_v25 = vpop.f32.mrf.mxu2  ;;  %v8844_v12 = vor.u32 %v10082_v47, %v8843_v61  ;;  %v5954_v0 = vpop.f32.mrf.mxu1  ;;  %v9257_v36 = vld [vmem:[#allocation14 + $0xc6c] sm:$0xf0]  ;;  %v8367_v19 = vld [vmem:[#allocation14 + $0x558] sm:$0xf]  ;;  %v9963_v5 = vld [vmem:[#allocation14 + $0x570] sm:$0xf0] }
 0x3b3   :  { %6243 = vmatpush.bf16.msrb.mxu0 %v8312_v59  ;;  %v6018_v35 = vadd.f32 %v6017_v25, %v3278_v53  ;;  %v10180_v25 = vld [vmem:[#allocation14 + $0xc38] sm:$0xf0]  ;;  %v9260_v27 = vor.u32 %v10183_v16, %v9257_v36  ;;  %v9179_v7 = vld [vmem:[#allocation14 + $0xbb0] sm:$0xf] }
 0x3b4   :  { %6269 = vmatpush.bf16.msrb.mxu2 %v8760_v14  ;;  %6159 = vmatmul.bf16.vlgmr.msrb.gmra.mxu1 %v10727_v17  ;;  %v10103_v14 = vld [vmem:[#allocation14 + $0x9d0] sm:$0xf0] }
 0x3b5   :  { %6203 = vmatpush.bf16.msra.mxu1 %v9456_v8  ;;  %v8928_v48 = vor.u32 %v10103_v14, %v8927_v54  ;;  %v8199_v8 = vld [vmem:[#allocation14 + $0x408] sm:$0xf]  ;;  %v8815_v54 = vld [vmem:[#allocation14 + $0x8d8] sm:$0xf]  ;;  %v10075_v14 = vld [vmem:[#allocation14 + $0x8f0] sm:$0xf0] }
 0x3b6   :  { %6283 = vmatpush.bf16.msrb.mxu3 %v8956_v9  ;;  %v8200_v59 = vor.u32 %v9921_v52, %v8199_v8  ;;  %v5993_v9 = vpop.f32.mrf.mxu0  ;;  %v10159_v8 = vld [vmem:[#allocation14 + $0xb90] sm:$0xf0]  ;;  %v8479_v52 = vld [vmem:[#allocation14 + $0x638] sm:$0xf] }
 0x3b7   :  { %6244 = vmatpush.bf16.msrb.mxu0 %v8284_v6 }
 0x3b8   :  { %6270 = vmatpush.bf16.msrb.mxu2 %v8732_v23  ;;  %v9341_v23 = vld [vmem:[#allocation14 + $0xd14] sm:$0xf0] }
 0x3b9   :  { %6204 = vmatpush.bf16.msra.mxu1 %v9428_v63  ;;  %v9344_v51 = vor.u32 %v10204_v39, %v9341_v23  ;;  %v10867_v63 = vadd.f32 %v6030_v50, %v6018_v35  ;;  %v8535_v39 = vld [vmem:[#allocation14 + $0x6a8] sm:$0xf]  ;;  %v10005_v23 = vld [vmem:[#allocation14 + $0x6c0] sm:$0xf0]  ;;  %v9123_v35 = vld [vmem:[#allocation14 + $0xb40] sm:$0xf] }
 0x3ba   :  { %6284 = vmatpush.bf16.msrb.mxu3 %v8928_v48  ;;  %v6019_v57 = vpop.f32.mrf.mxu2  ;;  %v8816_v48 = vor.u32 %v10075_v14, %v8815_v54  ;;  %v8536_v15 = vor.u32 %v10005_v23, %v8535_v39  ;;  %v10138_v54 = vld [vmem:[#allocation14 + $0xae8] sm:$0xf0]  ;;  %v8395_v14 = vld [vmem:[#allocation14 + $0x590] sm:$0xf] }
 0x3bb   :  { %6245 = vmatpush.bf16.msrb.mxu0 %v8256_v30  ;;  %v6032_v30 = vpop.f32.mrf.mxu3  ;;  %v8451_v57 = vld [vmem:[#allocation14 + $0x600] sm:$0xf]  ;;  %v9403_v23 = vld [vmem:[#allocation14 + $0xd70] sm:$0xf] }
 0x3bc   :  { %6271 = vmatpush.bf16.msrb.mxu2 %v8704_v56  ;;  %v10197_v56 = vld [vmem:[#allocation14 + $0xcc4] sm:$0xf]  ;;  %v9459_v30 = vld [vmem:[#allocation14 + $0xde0] sm:$0xf] }
 0x3bd   :  { %6205 = vmatpush.bf16.msra.mxu1 %v9400_v10  ;;  %v9316_v1 = vor.u32 %v10197_v56, %v9313_v20  ;;  %v9288_v10 = vor.u32 %v10190_v3, %v9285_v4  ;;  %v8423_v3 = vld [vmem:[#allocation14 + $0x5c8] sm:$0xf]  ;;  %v9977_v4 = vld [vmem:[#allocation14 + $0x5e0] sm:$0xf0] }
 0x3be   :  { %6285 = vmatpush.bf16.msrb.mxu3 %v8900_v44 }
 0x3bf   :  { %6246 = vmatpush.bf16.msrb.mxu0 %v8228_v46  ;;  %v10166_v46 = vld [vmem:[#allocation14 + $0xbc8] sm:$0xf0] }
 0x3c0   :  { %6272 = vmatpush.bf16.msrb.mxu2 %v8676_v29  ;;  %v9914_v29 = vld [vmem:[#allocation14 + $0x3e8] sm:$0xf0] }
 0x3c1   :  { %6206 = vmatpush.bf16.msra.mxu1 %v9372_v33  ;;  %v8172_v6 = vor.u32 %v9914_v29, %v8171_v34  ;;  %v9236_v33 = vor.u32 %v10180_v25, %v9235_v24  ;;  %v9095_v34 = vld [vmem:[#allocation14 + $0xb08] sm:$0xf]  ;;  %v10145_v29 = vld [vmem:[#allocation14 + $0xb20] sm:$0xf0]  ;;  %v9039_v25 = vld [vmem:[#allocation14 + $0xa98] sm:$0xf] }
 0x3c2   :  { %6286 = vmatpush.bf16.msrb.mxu3 %v8872_v28  ;;  %v9984_v28 = vld [vmem:[#allocation14 + $0x618] sm:$0xf0]  ;;  %v9096_v0 = vor.u32 %v10145_v29, %v9095_v34 }
 0x3c3   :  { %6247 = vmatpush.bf16.msrb.mxu0 %v8200_v59 }
 0x3c4   :  { %6273 = vmatpush.bf16.msrb.mxu2 %v8648_v22  ;;  %v9907_v22 = vld [vmem:[#allocation14 + $0x3b0] sm:$0xf0] }
 0x3c5   :  { %6207 = vmatpush.bf16.msra.mxu1 %v9344_v51  ;;  %v8144_v32 = vor.u32 %v9907_v22, %v8143_v21  ;;  %v9151_v51 = vld [vmem:[#allocation14 + $0xb78] sm:$0xf] }
 0x3c6   :  { %6287 = vmatpush.bf16.msrb.mxu3 %v8844_v12 }
 0x3c7   :  { %6248 = vmatpush.bf16.msrb.mxu0 %v8172_v6  ;;  %v9067_v6 = vld [vmem:[#allocation14 + $0xad0] sm:$0xf] }
 0x3c8   :  { %6274 = vmatpush.bf16.msrb.mxu2 %v8620_v38  ;;  %v10173_v38 = vld [vmem:[#allocation14 + $0xc00] sm:$0xf0]  ;;  %v9068_v22 = vor.u32 %v10138_v54, %v9067_v6 }
 0x3c9   :  { %6208 = vmatpush.bf16.msra.mxu1 %v9316_v1  ;;  %v9208_v44 = vor.u32 %v10173_v38, %v9207_v11  ;;  %v9431_v11 = vld [vmem:[#allocation14 + $0xda8] sm:$0xf]  ;;  %v10229_v38 = vld [vmem:[#allocation14 + $0xdc0] sm:$0xf0] }
 0x3ca   :  { %6288 = vmatpush.bf16.msrb.mxu3 %v8816_v48  ;;  %v10881_v59 = vpop.f32.mrf.mxu0  ;;  %v6004_v61 = vpop.f32.mrf.mxu1  ;;  %v10131_v48 = vld [vmem:[#allocation14 + $0xab0] sm:$0xf0]  ;;  %v9432_v39 = vor.u32 %v10229_v38, %v9431_v11 }
 0x3cb   :  { %6249 = vmatpush.bf16.msrb.mxu0 %v8144_v32  ;;  %v10236_v32 = vld [vmem:[#allocation14 + $0xdf8] sm:$0xf0]  ;;  %v6044_v34 = vadd.f32 %v10881_v59, %v10867_v63 }
 0x3cc   :  { %6275 = vmatpush.bf16.msrb.mxu2 %v8592_v55  ;;  %v9991_v55 = vld [vmem:[#allocation14 + $0x650] sm:$0xf0] }
 0x3cd   :  { %6209 = vmatpush.bf16.msra.mxu1 %v9288_v10  ;;  %6289 = vmatmul.bf16.vlgmr.msrb.gmra.mxu3 %v10745_v2  ;;  %v8480_v20 = vor.u32 %v9991_v55, %v8479_v52  ;;  %v9970_v10 = vld [vmem:[#allocation14 + $0x5a8] sm:$0xf0]  ;;  %v10201_v52 = vld [vmem:[#allocation14 + $0xce0] sm:$0xf0] }
 0x3ce   :  { %6250 = vmatmul.bf16.vlgmr.msrb.gmra.mxu0 %v10731_v58  ;;  %v9152_v58 = vor.u32 %v10159_v8, %v9151_v51  ;;  %v8396_v24 = vor.u32 %v9970_v10, %v8395_v14 }
 0x3cf   :  { %6276 = vmatmul.bf16.vlgmr.msrb.gmra.mxu2 %v10735_v31  ;;  %v5940_v31 = vadd.f32 %v10852_v42, %v10838_v62  ;;  %6294 = vmatpush.bf16.msra.mxu0 %v9236_v33  ;;  %v8507_v62 = vld [vmem:[#allocation14 + $0x670] sm:$0xf]  ;;  %v9998_v42 = vld [vmem:[#allocation14 + $0x688] sm:$0xf0]  ;;  %v10883_v12 = vpop.f32.mrf.mxu3  ;;  %v9040_v33 = vor.u32 %v10131_v48, %v9039_v25 }
 0x3d0   :  { %v8508_v49 = vor.u32 %v9998_v42, %v8507_v62  ;;  %v9347_v42 = vld [vmem:[#allocation14 + $0xd00] sm:$0xf] }
 0x3d1   :  { %v5953_v53 = vadd.f32 %v10865_v18, %v5940_v31  ;;  %6210 = vmatpush.bf16.msra.mxu1 %v9260_v27  ;;  %v9180_v18 = vor.u32 %v10166_v46, %v9179_v7  ;;  %v8368_v31 = vor.u32 %v9963_v5, %v8367_v19  ;;  %v10215_v7 = vld [vmem:[#allocation14 + $0xd50] sm:$0xf0] }
 0x3d2   :  { %v10878_v56 = vpop.f32.mrf.mxu2  ;;  %v6045_v16 = vpop.f32.mrf.mxu0 }
 0x3d3   :  { %v5966_v13 = vadd.f32 %v10849_v26, %v5953_v53  ;;  %6295 = vmatpush.bf16.msra.mxu0 %v9208_v44  ;;  %v10152_v26 = vld [vmem:[#allocation14 + $0xb58] sm:$0xf0]  ;;  %v6006_v21 = vpop.f32.mrf.mxu1  ;;  %v10222_v53 = vld [vmem:[#allocation14 + $0xd88] sm:$0xf0] }
 0x3d4   :  { %6211 = vmatmul.bf16.vlgmr.msra.gmra.mxu1 %v10761_v41  ;;  %v9124_v47 = vor.u32 %v10152_v26, %v9123_v35  ;;  %v9404_v44 = vor.u32 %v10222_v53, %v9403_v23  ;;  %v9291_v35 = vld [vmem:[#allocation14 + $0xc90] sm:$0xf]  ;;  %v10194_v26 = vld [vmem:[#allocation14 + $0xca8] sm:$0xf0] }
 0x3d5   :  { %6255 = vmatpush.bf16.msrb.mxu1 %v8564_v37  ;;  %v5979_v2 = vadd.f32 %v10854_v45, %v5966_v13  ;;  %v8452_v45 = vor.u32 %v9984_v28, %v8451_v57  ;;  %v9460_v37 = vor.u32 %v10236_v32, %v9459_v30  ;;  %v10208_v13 = vld [vmem:[#allocation14 + $0xd18] sm:$0xf0] }
 0x3d6   :  { %v9348_v8 = vor.u32 %v10208_v13, %v9347_v42 }
 0x3d7   :  { %6296 = vmatpush.bf16.msra.mxu0 %v9180_v18  ;;  %v5992_v50 = vadd.f32 %v10863_v43, %v5979_v2  ;;  %v8424_v43 = vor.u32 %v9977_v4, %v8423_v3  ;;  %v6084_v27 = vpop.f32.mrf.mxu3  ;;  %v3279_v18 = vperm.slane %v10860_v40, 5 }
 0x3d9   :  { %6256 = vmatpush.bf16.msrb.mxu1 %v8536_v15  ;;  %v6005_v1 = vadd.f32 %v6004_v61, %v5992_v50  ;;  %v9375_v15 = vld [vmem:[#allocation14 + $0xd38] sm:$0xf]  ;;  %v9292_v50 = vor.u32 %v10194_v26, %v9291_v35 }
 0x3da   :  { %v6071_v9 = vpop.f32.mrf.mxu2  ;;  %v9376_v62 = vor.u32 %v10215_v7, %v9375_v15  ;;  %v9263_v61 = vld [vmem:[#allocation14 + $0xc58] sm:$0xf] }
 0x3db   :  { %6297 = vmatpush.bf16.msra.mxu0 %v9152_v58  ;;  %10261 = vtanh.f32 %v6005_v1 }
 0x3dd   :  { %6257 = vmatpush.bf16.msrb.mxu1 %v8508_v49 }
 0x3df   :  { %6298 = vmatpush.bf16.msra.mxu0 %v9124_v47  ;;  %v10187_v47 = vld [vmem:[#allocation14 + $0xc70] sm:$0xf0] }
 0x3e1   :  { %6258 = vmatpush.bf16.msrb.mxu1 %v8480_v20  ;;  %v10262_v36 = vpop.eup %10261 }
 0x3e2   :  { %6330 = vst [vmem:[#allocation17 + $0x18] sm:$0xff] %v10262_v36 }
 0x3e3   :  { %6299 = vmatpush.bf16.msra.mxu0 %v9096_v0 }
 0x3e5   :  { %6259 = vmatpush.bf16.msrb.mxu1 %v8452_v45  ;;  %v9264_v45 = vor.u32 %v10187_v47, %v9263_v61 }
 0x3e7   :  { %6300 = vmatpush.bf16.msra.mxu0 %v9068_v22 }
 0x3e9   :  { %6260 = vmatpush.bf16.msrb.mxu1 %v8424_v43 }
 0x3ea   :  { %v6095_v49 = vpop.f32.mrf.mxu0 }
 0x3eb   :  { %6301 = vmatpush.bf16.msra.mxu0 %v9040_v33 }
 0x3ed   :  { %6261 = vmatpush.bf16.msrb.mxu1 %v8396_v24 }
 0x3ee   :  { %6302 = vmatmul.bf16.vlgmr.msra.gmra.mxu0 %v10754_v60  ;;  %v6056_v51 = vpop.f32.mrf.mxu1  ;;  %v9319_v60 = vld [vmem:[#allocation14 + $0xcc8] sm:$0xf] }
 0x3ef   :  { %v9320_v20 = vor.u32 %v10201_v52, %v9319_v60  ;;  %v6057_v29 = vadd.f32 %v6056_v51, %v6044_v34 }
 0x3f1   :  { %6262 = vmatpush.bf16.msrb.mxu1 %v8368_v31  ;;  %v6070_v3 = vadd.f32 %v10878_v56, %v6057_v29  ;;  %v3280_v56 = vperm.slane %v10860_v40, 6 }
 0x3f2   :  { %v6121_v46 = vpop.f32.mrf.mxu2  ;;  %v6097_v57 = vpop.f32.mrf.mxu0 }
 0x3f3   :  { %v6122_v55 = vadd.f32 %v6121_v46, %v3279_v18  ;;  %v6083_v4 = vadd.f32 %v10883_v12, %v6070_v3 }
 0x3f4   :  { %6263 = vmatmul.bf16.vlgmr.msrb.gmra.mxu1 %v10727_v17  ;;  %v6134_v17 = vpop.f32.mrf.mxu3 }
 0x3f5   :  { %6307 = vmatpush.bf16.msra.mxu1 %v9460_v37  ;;  %v6135_v58 = vadd.f32 %v6134_v17, %v6122_v55  ;;  %v6096_v0 = vadd.f32 %v6095_v49, %v6083_v4 }
 0x3f6   :  { %v6058_v28 = vpop.f32.mrf.mxu1 }
 0x3f9   :  { %6308 = vmatpush.bf16.msra.mxu1 %v9432_v39 }
 0x3fa   :  { %v6123_v2 = vpop.f32.mrf.mxu2 }
 0x3fc   :  { %v6136_v1 = vpop.f32.mrf.mxu3 }
 0x3fd   :  { %6309 = vmatpush.bf16.msra.mxu1 %v9404_v44 }
 0x401   :  { %6310 = vmatpush.bf16.msra.mxu1 %v9376_v62 }
 0x405   :  { %6311 = vmatpush.bf16.msra.mxu1 %v9348_v8 }
 0x409   :  { %6312 = vmatpush.bf16.msra.mxu1 %v9320_v20 }
 0x40a   :  { %v6147_v43 = vpop.f32.mrf.mxu0 }
 0x40b   :  { %v6148_v32 = vadd.f32 %v6147_v43, %v6135_v58 }
 0x40d   :  { %6313 = vmatpush.bf16.msra.mxu1 %v9292_v50 }
 0x40e   :  { %v6108_v6 = vpop.f32.mrf.mxu1 }
 0x40f   :  { %v6109_v54 = vadd.f32 %v6108_v6, %v6096_v0  ;;  %v6186_v10 = vpop.f32.mrf.mxu3 }
 0x411   :  { %6314 = vmatpush.bf16.msra.mxu1 %v9264_v45  ;;  %10263 = vtanh.f32 %v6109_v54 }
 0x412   :  { %v6173_v9 = vpop.f32.mrf.mxu2  ;;  %v6149_v16 = vpop.f32.mrf.mxu0 }
 0x414   :  { %6315 = vmatmul.bf16.vlgmr.msra.gmra.mxu1 %v10761_v41 }
 0x416   :  { %v6110_v21 = vpop.f32.mrf.mxu1 }
 0x417   :  { %v10264_v22 = vpop.eup %10263  ;;  %v6188_v63 = vpop.f32.mrf.mxu3 }
 0x418   :  { %6331 = vst [vmem:[#allocation17 + $0x20] sm:$0xff] %v10264_v22 }
 0x41a   :  { %v6175_v14 = vpop.f32.mrf.mxu2 }
 0x42b   :  { %v6199_v36 = vpop.f32.mrf.mxu0 }
 0x430   :  { %v6238_v25 = vpop.f32.mrf.mxu3 }
 0x431   :  { %v6160_v41 = vpop.f32.mrf.mxu1 }
 0x432   :  { %v6225_v59 = vpop.f32.mrf.mxu2  ;;  %v6161_v27 = vadd.f32 %v6160_v41, %v6148_v32 }
 0x433   :  { %v6226_v24 = vadd.f32 %v6225_v59, %v3280_v56  ;;  %v6201_v19 = vpop.f32.mrf.mxu0 }
 0x434   :  { %v6174_v33 = vadd.f32 %v6173_v9, %v6161_v27 }
 0x435   :  { %v6239_v48 = vadd.f32 %v6238_v25, %v6226_v24 }
 0x436   :  { %v6187_v31 = vadd.f32 %v6186_v10, %v6174_v33 }
 0x438   :  { %v6240_v30 = vpop.f32.mrf.mxu3  ;;  %v6200_v11 = vadd.f32 %v6199_v36, %v6187_v31 }
 0x439   :  { %v6162_v5 = vpop.f32.mrf.mxu1 }
 0x43a   :  { %v6227_v12 = vpop.f32.mrf.mxu2 }
 0x44b   :  { %v6251_v38 = vpop.f32.mrf.mxu0 }
 0x44c   :  { %v6252_v49 = vadd.f32 %v6251_v38, %v6239_v48 }
 0x450   :  { %v6290_v53 = vpop.f32.mrf.mxu3 }
 0x451   :  { %v6212_v39 = vpop.f32.mrf.mxu1 }
 0x452   :  { %v6277_v37 = vpop.f32.mrf.mxu2  ;;  %v6213_v23 = vadd.f32 %v6212_v39, %v6200_v11 }
 0x453   :  { %v6253_v44 = vpop.f32.mrf.mxu0 }
 0x454   :  { %10265 = vtanh.f32 %v6213_v23 }
 0x458   :  { %v6292_v46 = vpop.f32.mrf.mxu3 }
 0x459   :  { %v6214_v15 = vpop.f32.mrf.mxu1 }
 0x45a   :  { %v6279_v40 = vpop.f32.mrf.mxu2  ;;  %v10266_v7 = vpop.eup %10265 }
 0x45b   :  { %6332 = vst [vmem:[#allocation17 + $0x28] sm:$0xff] %v10266_v7 }
 0x46b   :  { %v6303_v62 = vpop.f32.mrf.mxu0 }
 0x471   :  { %v6264_v42 = vpop.f32.mrf.mxu1 }
 0x472   :  { %v6265_v51 = vadd.f32 %v6264_v42, %v6252_v49 }
 0x473   :  { %v6305_v13 = vpop.f32.mrf.mxu0 }
 0x474   :  { %v6278_v8 = vadd.f32 %v6277_v37, %v6265_v51 }
 0x476   :  { %v6291_v60 = vadd.f32 %v6290_v53, %v6278_v8 }
 0x478   :  { %v6304_v52 = vadd.f32 %v6303_v62, %v6291_v60 }
 0x479   :  { %v6266_v18 = vpop.f32.mrf.mxu1 }
 0x491   :  { %v6316_v55 = vpop.f32.mrf.mxu1 }
 0x492   :  { %v6317_v2 = vadd.f32 %v6316_v55, %v6304_v52 }
 0x494   :  { %10267 = vtanh.f32 %v6317_v2 }
 0x499   :  { %v6318_v17 = vpop.f32.mrf.mxu1 }
 0x49a   :  { %v10268_v58 = vpop.eup %10267 }
 0x49b   :  { %6333 = vst [vmem:[#allocation17 + $0x30] sm:$0xff] %v10268_v58 }
 0x49c   :  { %6344 = dma.vmem_to_hbm [thread:$0]  %s6340_s8, 896, %s6342_s13, [#allocation4]  }
 0x49d   :  { %10522 = dma.done.wait [#allocation4], 896  }
 0x49e   :  { %10523 = vsyncadd [#allocation4], 4294966400 }
 0x49f   :  { %6349 = vsyncpa [#allocation3], 1 }
 0x4a0   :  { %6350 = vsyncpa [#allocation6], 1 }
 0x4a1   :  { %6351 = vsyncpa [#allocation9], 1 }
 0x4a2   :  { %6352 = vsyncpa [#allocation12], 1 }
 0x4a3   :  { %6353 = vsyncpa [#allocation15], 1 }
 0x4a4   :  { %6354 = vsyncpa [#allocation4], 1 }

</bundles_post_ra>
